<compile_context>
chip_gen: v5e
topology: v5e:2x2
jax: 0.10.0
libtpu: 0.0.40
codegen_flags: <defaults>
</compile_context>

<pallas_src>
import jax
import jax.numpy as jnp
from jax.experimental import pallas as pl
from jax.experimental.pallas import tpu as pltpu

EPS = 1e-5


def _conv3x3_kernel(x_ref, w_ref, y_ref, psum_ref, psq_ref, xsh_ref):
    """3x3 SAME conv for one (batch, Cout-tile, row-tile) grid cell.

    x_ref    : (1, H, W, Cin)        full per-batch image (bf16, NHWC)
    w_ref    : (3, 3*Cin, tco)       ky-major weights, K index = kx*Cin + ci (bf16)
    y_ref    : (1, TH, W, tco)       conv output tile (bf16)
    psum_ref : (1, 1, 1, tco)        per-(n, co-tile) channel sum   (resident over r)
    psq_ref  : (1, 1, 1, tco)        per-(n, co-tile) channel sum of squares
    xsh_ref  : (H+2, W, 3*Cin)       VMEM scratch: row-padded, column-pre-shifted image
    """
    r = pl.program_id(2)
    _, H, W, Cin = x_ref.shape
    _, TH, _, tco = y_ref.shape
    K3 = 3 * Cin

    # Build the shifted scratch once per (batch, Cout-tile):
    #   xsh[p, w, kx*Cin + ci] = xpad[p, w + kx, ci]   (xpad = 1-pixel zero pad of x)
    # so every conv tap below is a contiguous, lane-aligned VMEM view.
    @pl.when(r == 0)
    def _build_shifted():
        zrow = jnp.zeros((1, W, K3), xsh_ref.dtype)
        zcol = jnp.zeros((H, 1, Cin), xsh_ref.dtype)
        xsh_ref[0:1, :, :] = zrow                     # top halo row
        xsh_ref[H + 1:H + 2, :, :] = zrow             # bottom halo row
        # kx = 0 tap: columns shifted right by one (first column = zero pad)
        xsh_ref[1:H + 1, :, 0:Cin] = jnp.concatenate(
            [zcol, x_ref[0, :, 0:W - 1, :]], axis=1)
        # kx = 1 tap: the image itself
        xsh_ref[1:H + 1, :, Cin:2 * Cin] = x_ref[0]
        # kx = 2 tap: columns shifted left by one (last column = zero pad)
        xsh_ref[1:H + 1, :, 2 * Cin:K3] = jnp.concatenate(
            [x_ref[0, :, 1:W, :], zcol], axis=1)

    # Zero the resident per-(n, co-tile) stats accumulators at the first row tile.
    @pl.when(r == 0)
    def _zero_stats():
        psum_ref[...] = jnp.zeros_like(psum_ref)
        psq_ref[...] = jnp.zeros_like(psq_ref)

    row0 = pl.multiple_of(r * TH, TH)

    # 3 MXU matmuls (one per ky) with K = 3*Cin, bf16 inputs, f32 accumulation.
    acc = jnp.zeros((TH * W, tco), jnp.float32)
    for ky in range(3):
        patch = xsh_ref[pl.ds(row0 + ky, TH)]                 # (TH, W, 3*Cin) bf16
        acc = acc + jnp.dot(patch.reshape(TH * W, K3), w_ref[ky],
                            preferred_element_type=jnp.float32)

    y_ref[...] = acc.reshape(1, TH, W, tco).astype(y_ref.dtype)
    psum_ref[...] += jnp.sum(acc, axis=0, keepdims=True).reshape(1, 1, 1, tco)
    psq_ref[...] += jnp.sum(acc * acc, axis=0, keepdims=True).reshape(1, 1, 1, tco)


def _bn_relu_kernel(y_ref, scale_ref, shift_ref, o_ref):
    """out = relu(y * scale + shift) — folded train-mode BatchNorm + ReLU."""
    z = y_ref[...].astype(jnp.float32) * scale_ref[...] + shift_ref[...]
    o_ref[...] = jnp.maximum(z, 0.0)


def _pick_tile_h(H, W, max_rows=2048):
    """Largest divisor of H with TH*W <= max_rows (amortizes per-step overhead)."""
    th = 1
    for cand in range(1, H + 1):
        if H % cand == 0 and cand * W <= max_rows:
            th = cand
    return th


def _pick_tile_co(Cout):
    """Cout tile: <=256 keeps weight slabs small; 256 fills the v6e/v7x MXU."""
    if Cout <= 256:
        return Cout
    for cand in (256, 128):
        if Cout % cand == 0:
            return cand
    return Cout


def block_of_dmt4(x, params, *, tile_h=None, tile_co=None):
    """Forward pass of Block_of_DMT4 (train-mode BN). x: (N, C, H, W) float32."""
    N, Cin, H, W = x.shape
    w = params["w"]                                   # (Cout, Cin, 3, 3) PyTorch OIHW
    Cout = w.shape[0]

    if tile_h is None:
        tile_h = _pick_tile_h(H, W)
    if H % tile_h != 0:
        tile_h = H
    if tile_co is None:
        tile_co = _pick_tile_co(Cout)
    if Cout % tile_co != 0:
        tile_co = Cout
    n_row = H // tile_h
    n_co = Cout // tile_co

    # Lane-dense channels-last + bf16 for the MXU (accumulation stays f32 in-kernel).
    x_nhwc = jnp.transpose(x, (0, 2, 3, 1)).astype(jnp.bfloat16)
    # (Cout, Cin, ky, kx) -> (ky, kx*Cin + ci, co), matching the xsh channel layout.
    w_taps = jnp.transpose(w, (2, 3, 1, 0)).reshape(3, 3 * Cin, Cout).astype(jnp.bfloat16)
    # NOTE: the conv bias is intentionally NOT applied in the kernel: train-mode BN
    # subtracts the batch mean, so a per-channel bias cancels exactly.

    # ---- pass 1: conv (bf16 MXU) + per-(n, co-tile) channel sums / sums-of-squares ----
    y, psum, psq = pl.pallas_call(
        _conv3x3_kernel,
        grid=(N, n_co, n_row),
        in_specs=[
            pl.BlockSpec((1, H, W, Cin), lambda n, c, r: (n, 0, 0, 0)),
            pl.BlockSpec((3, 3 * Cin, tile_co), lambda n, c, r: (0, 0, c)),
        ],
        out_specs=(
            pl.BlockSpec((1, tile_h, W, tile_co), lambda n, c, r: (n, r, 0, c)),
            pl.BlockSpec((1, 1, 1, tile_co), lambda n, c, r: (n, 0, 0, c)),
            pl.BlockSpec((1, 1, 1, tile_co), lambda n, c, r: (n, 0, 0, c)),
        ),
        out_shape=(
            jax.ShapeDtypeStruct((N, H, W, Cout), jnp.bfloat16),
            jax.ShapeDtypeStruct((N, 1, 1, Cout), jnp.float32),
            jax.ShapeDtypeStruct((N, 1, 1, Cout), jnp.float32),
        ),
        scratch_shapes=[pltpu.VMEM((H + 2, W, 3 * Cin), jnp.bfloat16)],
        compiler_params=pltpu.CompilerParams(
            dimension_semantics=("parallel", "parallel", "arbitrary"),
            vmem_limit_bytes=64 * 1024 * 1024),
    )(x_nhwc, w_taps)

    # ---- BatchNorm batch statistics (biased var, train mode) -> scale/shift ----
    count = jnp.float32(N * H * W)
    mean = jnp.sum(psum, axis=(0, 1, 2)) / count
    var = jnp.maximum(jnp.sum(psq, axis=(0, 1, 2)) / count - mean * mean, 0.0)
    inv = jax.lax.rsqrt(var + EPS)
    scale = (params["gamma"] * inv).astype(jnp.float32)
    shift = (params["beta"] - mean * scale).astype(jnp.float32)

    # ---- pass 2: normalize + affine + ReLU (fully parallel, lane-dense) ----
    out_nhwc = pl.pallas_call(
        _bn_relu_kernel,
        grid=(N, n_row),
        in_specs=[
            pl.BlockSpec((1, tile_h, W, Cout), lambda n, r: (n, r, 0, 0)),
            pl.BlockSpec((1, 1, 1, Cout), lambda n, r: (0, 0, 0, 0)),
            pl.BlockSpec((1, 1, 1, Cout), lambda n, r: (0, 0, 0, 0)),
        ],
        out_specs=pl.BlockSpec((1, tile_h, W, Cout), lambda n, r: (n, r, 0, 0)),
        out_shape=jax.ShapeDtypeStruct((N, H, W, Cout), jnp.float32),
        compiler_params=pltpu.CompilerParams(
            dimension_semantics=("parallel", "parallel")),
    )(y, scale.reshape(1, 1, 1, Cout), shift.reshape(1, 1, 1, Cout))

    # TODO(synk): these layout transposes vanish in an all-NHWC pipeline; kept for
    # interface parity with the PyTorch NCHW module.
    return jnp.transpose(out_nhwc, (0, 3, 1, 2))


def ref_forward(x, params):
    """Pure-JAX reference (same semantics as the PyTorch module in train())."""
    w, b = params["w"], params["b"]
    y = jax.lax.conv_general_dilated(
        x, w, window_strides=(1, 1), padding="SAME",
        dimension_numbers=("NCHW", "OIHW", "NCHW"),
        precision=jax.lax.Precision.HIGHEST)
    y = y + b[None, :, None, None]
    mean = jnp.mean(y, axis=(0, 2, 3), keepdims=True)
    var = jnp.mean((y - mean) ** 2, axis=(0, 2, 3), keepdims=True)
    yn = (y - mean) * jax.lax.rsqrt(var + EPS)
    yn = yn * params["gamma"][None, :, None, None] + params["beta"][None, :, None, None]
    return jnp.maximum(yn, 0.0)


if __name__ == "__main__":
    # Small shapes consistent with the module (Conv2d(C, C, 3, pad=1)+BN+ReLU).
    # The real module uses C=1024; C=128 keeps the test small while staying
    # lane-dense (one full 128-lane vreg per pixel).
    N, C, H, W = 2, 128, 16, 16

    key = jax.random.PRNGKey(0)
    ks = jax.random.split(key, 5)
    f32 = jnp.float32
    params = {
        "w": (0.03 * jax.random.normal(ks[0], (C, C, 3, 3))).astype(f32),
        "b": (0.1 * jax.random.normal(ks[1], (C,))).astype(f32),
        "gamma": (1.0 + 0.1 * jax.random.normal(ks[2], (C,))).astype(f32),
        "beta": (0.1 * jax.random.normal(ks[3], (C,))).astype(f32),
    }
    x = jax.random.normal(ks[4], (N, C, H, W)).astype(f32)

    out = jax.block_until_ready(jax.jit(block_of_dmt4)(x, params))
    ref = jax.block_until_ready(ref_forward(x, params))

    assert out.shape == (N, C, H, W)
    err = float(jnp.max(jnp.abs(out - ref)))
    # Tolerance covers the bf16 MXU path and bf16 storage of the intermediate y
    # versus the HIGHEST-precision f32 XLA reference convolution.
    assert jnp.allclose(out, ref, rtol=5e-2, atol=5e-2), f"mismatch: max|err|={err}"

    print("KERNEL_OK")
</pallas_src>

<mosaic_0001>
module attributes {stable_mosaic.version = 11 : i64} {
  func.func @_conv3x3_kernel(%arg0: i32, %arg1: i32, %arg2: i32, %arg3: memref<1x16x16x128xbf16, #tpu.memory_space<vmem>>, %arg4: memref<3x384x128xbf16, #tpu.memory_space<vmem>>, %arg5: memref<1x16x16x128xbf16, #tpu.memory_space<vmem>>, %arg6: memref<1x1x1x128xf32, #tpu.memory_space<vmem>>, %arg7: memref<1x1x1x128xf32, #tpu.memory_space<vmem>>, %arg8: memref<18x16x384xbf16, #tpu.memory_space<vmem>>) attributes {dimension_semantics = [#tpu.dimension_semantics<parallel>, #tpu.dimension_semantics<parallel>, #tpu.dimension_semantics<arbitrary>], iteration_bounds = array<i64: 2, 1, 1>, scalar_prefetch = 0 : i64, scratch_operands = 1 : i64, tpu.core_type = #tpu.core_type<tc>, window_params = [{transform_indices = @transform_0, window_bounds = array<i64: 1, 16, 16, 128>}, {transform_indices = @transform_1, window_bounds = array<i64: 3, 384, 128>}, {transform_indices = @transform_2, window_bounds = array<i64: 1, 16, 16, 128>}, {transform_indices = @transform_3, window_bounds = array<i64: 1, 1, 1, 128>}, {transform_indices = @transform_4, window_bounds = array<i64: 1, 1, 1, 128>}]} {
    %c0_i32 = arith.constant 0 : i32
    %0 = arith.cmpi eq, %arg2, %c0_i32 : i32
    %1 = arith.extui %0 : i1 to i32
    %c0_i32_0 = arith.constant 0 : i32
    %2 = arith.cmpi ne, %1, %c0_i32_0 : i32
    scf.if %2 {
      %cst_41 = arith.constant 0.000000e+00 : bf16
      %49 = vector.broadcast %cst_41 : bf16 to vector<1x16x384xbf16>
      %cst_42 = arith.constant 0.000000e+00 : bf16
      %50 = vector.broadcast %cst_42 : bf16 to vector<16x1x128xbf16>
      %c0_43 = arith.constant 0 : index
      %c0_44 = arith.constant 0 : index
      %c0_45 = arith.constant 0 : index
      %51 = vector.load %arg8[%c0_43, %c0_44, %c0_45] : memref<18x16x384xbf16, #tpu.memory_space<vmem>>, vector<1x16x384xbf16>
      tpu.vector_store %arg8[%c0_43, %c0_44, %c0_45], %49 {strides = array<i32>} : memref<18x16x384xbf16, #tpu.memory_space<vmem>>, vector<1x16x384xbf16>,
      %c17 = arith.constant 17 : index
      %c0_46 = arith.constant 0 : index
      %c0_47 = arith.constant 0 : index
      %52 = vector.load %arg8[%c17, %c0_46, %c0_47] : memref<18x16x384xbf16, #tpu.memory_space<vmem>>, vector<1x16x384xbf16>
      tpu.vector_store %arg8[%c17, %c0_46, %c0_47], %49 {strides = array<i32>} : memref<18x16x384xbf16, #tpu.memory_space<vmem>>, vector<1x16x384xbf16>,
      %c0_48 = arith.constant 0 : index
      %c0_49 = arith.constant 0 : index
      %c0_50 = arith.constant 0 : index
      %c0_51 = arith.constant 0 : index
      %53 = vector.load %arg3[%c0_48, %c0_49, %c0_50, %c0_51] : memref<1x16x16x128xbf16, #tpu.memory_space<vmem>>, vector<1x16x15x128xbf16>
      %54 = vector.shape_cast %53 : vector<1x16x15x128xbf16> to vector<16x15x128xbf16>
      %55 = tpu.concatenate %50, %54 in 1 : vector<16x1x128xbf16>, vector<16x15x128xbf16> -> vector<16x16x128xbf16>
      %c1_52 = arith.constant 1 : index
      %c0_53 = arith.constant 0 : index
      %c0_54 = arith.constant 0 : index
      %56 = vector.load %arg8[%c1_52, %c0_53, %c0_54] : memref<18x16x384xbf16, #tpu.memory_space<vmem>>, vector<16x16x128xbf16>
      tpu.vector_store %arg8[%c1_52, %c0_53, %c0_54], %55 {strides = array<i32>} : memref<18x16x384xbf16, #tpu.memory_space<vmem>>, vector<16x16x128xbf16>,
      %c0_55 = arith.constant 0 : index
      %c0_56 = arith.constant 0 : index
      %c0_57 = arith.constant 0 : index
      %c0_58 = arith.constant 0 : index
      %57 = vector.load %arg3[%c0_55, %c0_56, %c0_57, %c0_58] : memref<1x16x16x128xbf16, #tpu.memory_space<vmem>>, vector<1x16x16x128xbf16>
      %58 = vector.shape_cast %57 : vector<1x16x16x128xbf16> to vector<16x16x128xbf16>
      %c1_59 = arith.constant 1 : index
      %c0_60 = arith.constant 0 : index
      %c128 = arith.constant 128 : index
      %59 = vector.load %arg8[%c1_59, %c0_60, %c128] : memref<18x16x384xbf16, #tpu.memory_space<vmem>>, vector<16x16x128xbf16>
      tpu.vector_store %arg8[%c1_59, %c0_60, %c128], %58 {strides = array<i32>} : memref<18x16x384xbf16, #tpu.memory_space<vmem>>, vector<16x16x128xbf16>,
      %c0_61 = arith.constant 0 : index
      %c0_62 = arith.constant 0 : index
      %c1_63 = arith.constant 1 : index
      %c0_64 = arith.constant 0 : index
      %60 = vector.load %arg3[%c0_61, %c0_62, %c1_63, %c0_64] : memref<1x16x16x128xbf16, #tpu.memory_space<vmem>>, vector<1x16x15x128xbf16>
      %61 = vector.shape_cast %60 : vector<1x16x15x128xbf16> to vector<16x15x128xbf16>
      %62 = tpu.concatenate %61, %50 in 1 : vector<16x15x128xbf16>, vector<16x1x128xbf16> -> vector<16x16x128xbf16>
      %c1_65 = arith.constant 1 : index
      %c0_66 = arith.constant 0 : index
      %c256 = arith.constant 256 : index
      %63 = vector.load %arg8[%c1_65, %c0_66, %c256] : memref<18x16x384xbf16, #tpu.memory_space<vmem>>, vector<16x16x128xbf16>
      tpu.vector_store %arg8[%c1_65, %c0_66, %c256], %62 {strides = array<i32>} : memref<18x16x384xbf16, #tpu.memory_space<vmem>>, vector<16x16x128xbf16>,
    } else {
    }
    %c0_i32_1 = arith.constant 0 : i32
    %3 = arith.cmpi eq, %arg2, %c0_i32_1 : i32
    %4 = arith.extui %3 : i1 to i32
    %c0_i32_2 = arith.constant 0 : i32
    %5 = arith.cmpi ne, %4, %c0_i32_2 : i32
    scf.if %5 {
      %cst_41 = arith.constant 0.000000e+00 : f32
      %49 = vector.broadcast %cst_41 : f32 to vector<1x1x1x128xf32>
      %c0_42 = arith.constant 0 : index
      %c0_43 = arith.constant 0 : index
      %c0_44 = arith.constant 0 : index
      %c0_45 = arith.constant 0 : index
      %50 = vector.load %arg6[%c0_42, %c0_43, %c0_44, %c0_45] : memref<1x1x1x128xf32, #tpu.memory_space<vmem>>, vector<1x1x1x128xf32>
      tpu.vector_store %arg6[%c0_42, %c0_43, %c0_44, %c0_45], %49 {strides = array<i32>} : memref<1x1x1x128xf32, #tpu.memory_space<vmem>>, vector<1x1x1x128xf32>,
      %cst_46 = arith.constant 0.000000e+00 : f32
      %51 = vector.broadcast %cst_46 : f32 to vector<1x1x1x128xf32>
      %c0_47 = arith.constant 0 : index
      %c0_48 = arith.constant 0 : index
      %c0_49 = arith.constant 0 : index
      %c0_50 = arith.constant 0 : index
      %52 = vector.load %arg7[%c0_47, %c0_48, %c0_49, %c0_50] : memref<1x1x1x128xf32, #tpu.memory_space<vmem>>, vector<1x1x1x128xf32>
      tpu.vector_store %arg7[%c0_47, %c0_48, %c0_49, %c0_50], %51 {strides = array<i32>} : memref<1x1x1x128xf32, #tpu.memory_space<vmem>>, vector<1x1x1x128xf32>,
    } else {
    }
    %c16_i32 = arith.constant 16 : i32
    %6 = arith.muli %arg2, %c16_i32 : i32
    %7 = tpu.assume_multiple %6, 16 : i32
    %cst = arith.constant 0.000000e+00 : f32
    %8 = vector.broadcast %cst : f32 to vector<256x128xf32>
    %c0_i32_3 = arith.constant 0 : i32
    %9 = arith.addi %7, %c0_i32_3 : i32
    %10 = arith.index_cast %9 : i32 to index
    %c0 = arith.constant 0 : index
    %c0_4 = arith.constant 0 : index
    %11 = vector.load %arg8[%10, %c0, %c0_4] : memref<18x16x384xbf16, #tpu.memory_space<vmem>>, vector<16x16x384xbf16>
    %12 = vector.shape_cast %11 : vector<16x16x384xbf16> to vector<256x384xbf16>
    %c0_5 = arith.constant 0 : index
    %c0_6 = arith.constant 0 : index
    %c0_7 = arith.constant 0 : index
    %13 = vector.load %arg4[%c0_5, %c0_6, %c0_7] : memref<3x384x128xbf16, #tpu.memory_space<vmem>>, vector<1x384x128xbf16>
    %14 = vector.shape_cast %13 : vector<1x384x128xbf16> to vector<384x128xbf16>
    %cst_8 = arith.constant dense<0.000000e+00> : vector<256x128xf32>
    %15 = tpu.matmul %12, %14, %cst_8 {dimension_numbers = #tpu.dot_dimension_numbers<[1], [0], [0], [1], [0, 0, 1, 1], [], []>} : vector<256x384xbf16>, vector<384x128xbf16>, vector<256x128xf32> -> vector<256x128xf32>
    %16 = arith.addf %8, %15 : vector<256x128xf32>
    %c1_i32 = arith.constant 1 : i32
    %17 = arith.addi %7, %c1_i32 : i32
    %18 = arith.index_cast %17 : i32 to index
    %c0_9 = arith.constant 0 : index
    %c0_10 = arith.constant 0 : index
    %19 = vector.load %arg8[%18, %c0_9, %c0_10] : memref<18x16x384xbf16, #tpu.memory_space<vmem>>, vector<16x16x384xbf16>
    %20 = vector.shape_cast %19 : vector<16x16x384xbf16> to vector<256x384xbf16>
    %c1 = arith.constant 1 : index
    %c0_11 = arith.constant 0 : index
    %c0_12 = arith.constant 0 : index
    %21 = vector.load %arg4[%c1, %c0_11, %c0_12] : memref<3x384x128xbf16, #tpu.memory_space<vmem>>, vector<1x384x128xbf16>
    %22 = vector.shape_cast %21 : vector<1x384x128xbf16> to vector<384x128xbf16>
    %cst_13 = arith.constant dense<0.000000e+00> : vector<256x128xf32>
    %23 = tpu.matmul %20, %22, %cst_13 {dimension_numbers = #tpu.dot_dimension_numbers<[1], [0], [0], [1], [0, 0, 1, 1], [], []>} : vector<256x384xbf16>, vector<384x128xbf16>, vector<256x128xf32> -> vector<256x128xf32>
    %24 = arith.addf %16, %23 : vector<256x128xf32>
    %c2_i32 = arith.constant 2 : i32
    %25 = arith.addi %7, %c2_i32 : i32
    %26 = arith.index_cast %25 : i32 to index
    %c0_14 = arith.constant 0 : index
    %c0_15 = arith.constant 0 : index
    %27 = vector.load %arg8[%26, %c0_14, %c0_15] : memref<18x16x384xbf16, #tpu.memory_space<vmem>>, vector<16x16x384xbf16>
    %28 = vector.shape_cast %27 : vector<16x16x384xbf16> to vector<256x384xbf16>
    %c2 = arith.constant 2 : index
    %c0_16 = arith.constant 0 : index
    %c0_17 = arith.constant 0 : index
    %29 = vector.load %arg4[%c2, %c0_16, %c0_17] : memref<3x384x128xbf16, #tpu.memory_space<vmem>>, vector<1x384x128xbf16>
    %30 = vector.shape_cast %29 : vector<1x384x128xbf16> to vector<384x128xbf16>
    %cst_18 = arith.constant dense<0.000000e+00> : vector<256x128xf32>
    %31 = tpu.matmul %28, %30, %cst_18 {dimension_numbers = #tpu.dot_dimension_numbers<[1], [0], [0], [1], [0, 0, 1, 1], [], []>} : vector<256x384xbf16>, vector<384x128xbf16>, vector<256x128xf32> -> vector<256x128xf32>
    %32 = arith.addf %24, %31 : vector<256x128xf32>
    %33 = vector.shape_cast %32 : vector<256x128xf32> to vector<1x16x16x128xf32>
    %34 = arith.truncf %33 : vector<1x16x16x128xf32> to vector<1x16x16x128xbf16>
    %c0_19 = arith.constant 0 : index
    %c0_20 = arith.constant 0 : index
    %c0_21 = arith.constant 0 : index
    %c0_22 = arith.constant 0 : index
    %35 = vector.load %arg5[%c0_19, %c0_20, %c0_21, %c0_22] : memref<1x16x16x128xbf16, #tpu.memory_space<vmem>>, vector<1x16x16x128xbf16>
    tpu.vector_store %arg5[%c0_19, %c0_20, %c0_21, %c0_22], %34 {strides = array<i32>} : memref<1x16x16x128xbf16, #tpu.memory_space<vmem>>, vector<1x16x16x128xbf16>,
    %c0_23 = arith.constant 0 : index
    %c0_24 = arith.constant 0 : index
    %c0_25 = arith.constant 0 : index
    %c0_26 = arith.constant 0 : index
    %36 = vector.load %arg6[%c0_23, %c0_24, %c0_25, %c0_26] : memref<1x1x1x128xf32, #tpu.memory_space<vmem>>, vector<1x1x1x128xf32>
    %cst_27 = arith.constant dense<0.000000e+00> : vector<128xf32>
    %37 = vector.multi_reduction <add>, %32, %cst_27 [0] : vector<256x128xf32> to vector<128xf32>
    %38 = vector.shape_cast %37 : vector<128xf32> to vector<1x128xf32>
    %39 = vector.shape_cast %38 : vector<1x128xf32> to vector<1x1x1x128xf32>
    %40 = arith.addf %36, %39 : vector<1x1x1x128xf32>
    %c0_28 = arith.constant 0 : index
    %c0_29 = arith.constant 0 : index
    %c0_30 = arith.constant 0 : index
    %c0_31 = arith.constant 0 : index
    %41 = vector.load %arg6[%c0_28, %c0_29, %c0_30, %c0_31] : memref<1x1x1x128xf32, #tpu.memory_space<vmem>>, vector<1x1x1x128xf32>
    tpu.vector_store %arg6[%c0_28, %c0_29, %c0_30, %c0_31], %40 {strides = array<i32>} : memref<1x1x1x128xf32, #tpu.memory_space<vmem>>, vector<1x1x1x128xf32>,
    %c0_32 = arith.constant 0 : index
    %c0_33 = arith.constant 0 : index
    %c0_34 = arith.constant 0 : index
    %c0_35 = arith.constant 0 : index
    %42 = vector.load %arg7[%c0_32, %c0_33, %c0_34, %c0_35] : memref<1x1x1x128xf32, #tpu.memory_space<vmem>>, vector<1x1x1x128xf32>
    %43 = arith.mulf %32, %32 : vector<256x128xf32>
    %cst_36 = arith.constant dense<0.000000e+00> : vector<128xf32>
    %44 = vector.multi_reduction <add>, %43, %cst_36 [0] : vector<256x128xf32> to vector<128xf32>
    %45 = vector.shape_cast %44 : vector<128xf32> to vector<1x128xf32>
    %46 = vector.shape_cast %45 : vector<1x128xf32> to vector<1x1x1x128xf32>
    %47 = arith.addf %42, %46 : vector<1x1x1x128xf32>
    %c0_37 = arith.constant 0 : index
    %c0_38 = arith.constant 0 : index
    %c0_39 = arith.constant 0 : index
    %c0_40 = arith.constant 0 : index
    %48 = vector.load %arg7[%c0_37, %c0_38, %c0_39, %c0_40] : memref<1x1x1x128xf32, #tpu.memory_space<vmem>>, vector<1x1x1x128xf32>
    tpu.vector_store %arg7[%c0_37, %c0_38, %c0_39, %c0_40], %47 {strides = array<i32>} : memref<1x1x1x128xf32, #tpu.memory_space<vmem>>, vector<1x1x1x128xf32>,
    return
  }
  func.func @transform_0(%arg0: i32, %arg1: i32, %arg2: i32) -> (i32, i32, i32, i32) {
    %c0_i32 = arith.constant 0 : i32
    %c0_i32_0 = arith.constant 0 : i32
    %c0_i32_1 = arith.constant 0 : i32
    %c0_i32_2 = arith.constant 0 : i32
    return %arg0, %c0_i32, %c0_i32_0, %c0_i32_1 : i32, i32, i32, i32
  }
  func.func @transform_1(%arg0: i32, %arg1: i32, %arg2: i32) -> (i32, i32, i32) {
    %c0_i32 = arith.constant 0 : i32
    %c0_i32_0 = arith.constant 0 : i32
    %c0_i32_1 = arith.constant 0 : i32
    return %c0_i32, %c0_i32_0, %arg1 : i32, i32, i32
  }
  func.func @transform_2(%arg0: i32, %arg1: i32, %arg2: i32) -> (i32, i32, i32, i32) {
    %c0_i32 = arith.constant 0 : i32
    %c0_i32_0 = arith.constant 0 : i32
    return %arg0, %arg2, %c0_i32, %arg1 : i32, i32, i32, i32
  }
  func.func @transform_3(%arg0: i32, %arg1: i32, %arg2: i32) -> (i32, i32, i32, i32) {
    %c0_i32 = arith.constant 0 : i32
    %c0_i32_0 = arith.constant 0 : i32
    %c0_i32_1 = arith.constant 0 : i32
    return %arg0, %c0_i32, %c0_i32_0, %arg1 : i32, i32, i32, i32
  }
  func.func @transform_4(%arg0: i32, %arg1: i32, %arg2: i32) -> (i32, i32, i32, i32) {
    %c0_i32 = arith.constant 0 : i32
    %c0_i32_0 = arith.constant 0 : i32
    %c0_i32_1 = arith.constant 0 : i32
    return %arg0, %c0_i32, %c0_i32_0, %arg1 : i32, i32, i32, i32
  }
}

module attributes {stable_mosaic.version = 11 : i64} {
  func.func @_bn_relu_kernel(%arg0: i32, %arg1: i32, %arg2: memref<1x16x16x128xbf16, #tpu.memory_space<vmem>>, %arg3: memref<1x1x1x128xf32, #tpu.memory_space<vmem>>, %arg4: memref<1x1x1x128xf32, #tpu.memory_space<vmem>>, %arg5: memref<1x16x16x128xf32, #tpu.memory_space<vmem>>) attributes {dimension_semantics = [#tpu.dimension_semantics<parallel>, #tpu.dimension_semantics<parallel>], iteration_bounds = array<i64: 2, 1>, scalar_prefetch = 0 : i64, scratch_operands = 0 : i64, tpu.core_type = #tpu.core_type<tc>, window_params = [{transform_indices = @transform_0, window_bounds = array<i64: 1, 16, 16, 128>}, {pipeline_mode = #tpu.pipeline_mode<synchronous>, transform_indices = @transform_1, window_bounds = array<i64: 1, 1, 1, 128>}, {pipeline_mode = #tpu.pipeline_mode<synchronous>, transform_indices = @transform_2, window_bounds = array<i64: 1, 1, 1, 128>}, {transform_indices = @transform_3, window_bounds = array<i64: 1, 16, 16, 128>}]} {
    %c0 = arith.constant 0 : index
    %c0_0 = arith.constant 0 : index
    %c0_1 = arith.constant 0 : index
    %c0_2 = arith.constant 0 : index
    %0 = vector.load %arg2[%c0, %c0_0, %c0_1, %c0_2] : memref<1x16x16x128xbf16, #tpu.memory_space<vmem>>, vector<1x16x16x128xbf16>
    %1 = arith.extf %0 : vector<1x16x16x128xbf16> to vector<1x16x16x128xf32>
    %c0_3 = arith.constant 0 : index
    %c0_4 = arith.constant 0 : index
    %c0_5 = arith.constant 0 : index
    %c0_6 = arith.constant 0 : index
    %2 = vector.load %arg3[%c0_3, %c0_4, %c0_5, %c0_6] : memref<1x1x1x128xf32, #tpu.memory_space<vmem>>, vector<1x1x1x128xf32>
    %3 = vector.broadcast %2 : vector<1x1x1x128xf32> to vector<1x16x16x128xf32>
    %4 = arith.mulf %1, %3 : vector<1x16x16x128xf32>
    %c0_7 = arith.constant 0 : index
    %c0_8 = arith.constant 0 : index
    %c0_9 = arith.constant 0 : index
    %c0_10 = arith.constant 0 : index
    %5 = vector.load %arg4[%c0_7, %c0_8, %c0_9, %c0_10] : memref<1x1x1x128xf32, #tpu.memory_space<vmem>>, vector<1x1x1x128xf32>
    %6 = vector.broadcast %5 : vector<1x1x1x128xf32> to vector<1x16x16x128xf32>
    %7 = arith.addf %4, %6 : vector<1x16x16x128xf32>
    %cst = arith.constant 0.000000e+00 : f32
    %8 = vector.broadcast %cst : f32 to vector<1x16x16x128xf32>
    %9 = arith.maximumf %7, %8 : vector<1x16x16x128xf32>
    %c0_11 = arith.constant 0 : index
    %c0_12 = arith.constant 0 : index
    %c0_13 = arith.constant 0 : index
    %c0_14 = arith.constant 0 : index
    %10 = vector.load %arg5[%c0_11, %c0_12, %c0_13, %c0_14] : memref<1x16x16x128xf32, #tpu.memory_space<vmem>>, vector<1x16x16x128xf32>
    tpu.vector_store %arg5[%c0_11, %c0_12, %c0_13, %c0_14], %9 {strides = array<i32>} : memref<1x16x16x128xf32, #tpu.memory_space<vmem>>, vector<1x16x16x128xf32>,
    return
  }
  func.func @transform_0(%arg0: i32, %arg1: i32) -> (i32, i32, i32, i32) {
    %c0_i32 = arith.constant 0 : i32
    %c0_i32_0 = arith.constant 0 : i32
    %c0_i32_1 = arith.constant 0 : i32
    return %arg0, %arg1, %c0_i32, %c0_i32_0 : i32, i32, i32, i32
  }
  func.func @transform_1(%arg0: i32, %arg1: i32) -> (i32, i32, i32, i32) {
    %c0_i32 = arith.constant 0 : i32
    %c0_i32_0 = arith.constant 0 : i32
    %c0_i32_1 = arith.constant 0 : i32
    %c0_i32_2 = arith.constant 0 : i32
    %c0_i32_3 = arith.constant 0 : i32
    return %c0_i32, %c0_i32_0, %c0_i32_1, %c0_i32_2 : i32, i32, i32, i32
  }
  func.func @transform_2(%arg0: i32, %arg1: i32) -> (i32, i32, i32, i32) {
    %c0_i32 = arith.constant 0 : i32
    %c0_i32_0 = arith.constant 0 : i32
    %c0_i32_1 = arith.constant 0 : i32
    %c0_i32_2 = arith.constant 0 : i32
    %c0_i32_3 = arith.constant 0 : i32
    return %c0_i32, %c0_i32_0, %c0_i32_1, %c0_i32_2 : i32, i32, i32, i32
  }
  func.func @transform_3(%arg0: i32, %arg1: i32) -> (i32, i32, i32, i32) {
    %c0_i32 = arith.constant 0 : i32
    %c0_i32_0 = arith.constant 0 : i32
    %c0_i32_1 = arith.constant 0 : i32
    return %arg0, %arg1, %c0_i32, %c0_i32_0 : i32, i32, i32, i32
  }
}

</mosaic_0001>

<bundles_post_ra>
// kernel: block_of_dmt4.3
= control target key start
LH: loop header
LB: loop body
LE: loop exit
PB: predicated region body
PF: predicated region fallthrough
CT: control target
= control target key end

     0   :  { %8 = vsyncpa [#allocation3], 0  ;;  %s987_s0 = inlined_call_operand.vmem [shape: bf16[2,16,16,128], index: 0, kind: input, shape index: {}]   ;;  %s988_s1 = inlined_call_operand.vmem [shape: f32[1,1,1,128], index: 1, kind: input, shape index: {}]   ;;  %s989_s2 = inlined_call_operand.vmem [shape: f32[1,1,1,128], index: 2, kind: input, shape index: {}]   ;;  %s990_s3 = inlined_call_operand.hbm [shape: f32[2,16,16,128], index: 3, kind: output, shape index: {}]  }
   0x1   :  { %10 = vsyncpa [#allocation3 + $0x1], 0  ;;  %s759_s12 = smov 0   ;;  %s761_s13 = smov 0  }
   0x2   :  { %s763_s14 = smov 0   ;;  %s765_s15 = smov 0  }
   0x3   :  { %s767_s16 = smov 0   ;;  %s769_s17 = smov 0  }
   0x4 LB: > { %s504_s18 = sadd.s32 4294967295, %s735_s17   ;;  %s505_s19 = sadd.s32 4294967294, %s735_s17   ;;  %s735_s17 = sphi %s769_s17, %s16_s17   ;;  %s731_s16 = sphi %s767_s16, %s997_s16   ;;  %s727_s15 = sphi %s765_s15, %s996_s15   ;;  %s723_s14 = sphi %s763_s14, %s995_s14   ;;  %s719_s13 = sphi %s761_s13, %s994_s13   ;;  %s715_s12 = sphi %s759_s12, %s993_s12  }
   0x5   : > { %s28_s20 = sadd.s32 1, %s731_s16  ;;  %s107_s21 = sadd.s32 1, %s723_s14 }
   0x6   : > { %p30_p0 = scmp.ge.s32.totalorder %s28_s20, 2  ;;  %p117_p1 = scmp.ne.s32.totalorder %s723_s14, %s719_s13 }
   0x7   : > { %p118_p2 = scmp.eq.s32.totalorder %s504_s18, 1  ;;  %p123_p3 = scmp.ne.s32.totalorder %s719_s13, %s715_s12 }
   0x8   : > { %s999_s20 = smov (%p30_p0, %s28_s20), 0  ;;  %p124_p5 = scmp.eq.s32.totalorder %s505_s19, 1 }
   0x9   : > { %p799_p4 = por %p118_p2, %p117_p1  ;;  %s102_s23 = ssub.s32 %s731_s16, %s999_s20 }
   0xa   : > { %p508_p6 = scmp.ge.s32.totalorder %s735_s17, 1  ;;  %p105_p7 = scmp.eq.s32.totalorder %s102_s23, 0 }
   0xb   : > { %p806_p8 = por %p124_p5, %p123_p3  ;;  %p162_p9 = scmp.lt.s32.totalorder %s735_s17, 3 }
   0xc   : > { %s812_s25 = scalar_select %p105_p7, %s723_s14, %s107_s21  }
   0xd   : > { %p163_p10 = pnand %p508_p6, %p162_p9 }
   0xe   : > { %p192_p11 = scmp.lt.s32.totalorder (!%p163_p10), %s727_s15, 1  ;;  %s188_s6 = sand.u32 (!%p163_p10), 1, %s719_s13  }
   0xf   : > { %166 = sbr.rel (%p163_p10) target bundleno = 68 (0x44), region = 32  ;;  %s509_s9 = sshll.u32 (!%p163_p10), %s188_s6, 8 }
  0x10   : > { %s858_s10 = scalar_lea.vmem (!%p163_p10), [#allocation2], %s509_s9  ;;  %s518_s11 = sshll.u32 (!%p163_p10), %s727_s15, 8 }
  0x11   : > { %s418_s19 = scalar_lea.hbm (!%p163_p10), %s990_s3, %s518_s11  ;;  %s419_s21 = sshll.u32 (!%p163_p10), %s858_s10, 4  ;;  %s420_s21 = int_to_ptr.vmem [resolvable:$true] %s419_s21 }
  0x12   : > { %s421_s23 = sshll.u32 (!%p163_p10), %s418_s19, 4  ;;  %s677_s4 = scalar_lea.hbm (!%p163_p10), %s990_s3, 512  ;;  %s422_s23 = int_to_ptr.hbm [resolvable:$true] %s421_s23 }
  0x14   : > { %s193_s26 = scalar_select %p192_p11, %s727_s15, 1  ;;  %v824_v0 = vld [vmem:[%s988_s1] ss:$0 sm:$0xff] }
  0x15   : > { %v833_v5 = vld [vmem:[%s989_s2] ss:$0 sm:$0xff] }
  0x16   : > { %s517_s27 = sshll.u32 %s193_s26, 7  ;;  %s404_s26 = scalar_lea.sflag [#allocation3], %s188_s6 }
  0x17   : > { %s819_s30 = scalar_lea.vmem %s987_s0, %s517_s27  ;;  %s671_s27 = sshra.s32 %s422_s23, 4  ;;  %s672_s27 = int_to_ptr.hbm [resolvable:$true] %s671_s27 }
  0x18   : > { %v520_v1 = vld [vmem:[%s819_s30] sm:$0xff]   ;;  %v583_v2 = vld [vmem:[%s819_s30 + $0x8] sm:$0xff]   ;;  %v584_v3 = vld [vmem:[%s819_s30 + $0x10] sm:$0xff]   ;;  %s673_s28 = scalar_lea.hbm %s672_s27, 256  ;;  %p678_p1 = scmp.lt.s32.totalorder %s672_s27, %s990_s3 }
  0x19   : > { %v521_v4 = vunpack.c.l.bf16 %v520_v1  ;;  %v522_v6 = vunpack.c.h.bf16 %v520_v1  ;;  %v525_v7 = vunpack.c.l.bf16 %v583_v2  ;;  %v526_v8 = vunpack.c.h.bf16 %v583_v2  ;;  %v585_v9 = vld [vmem:[%s819_s30 + $0x18] sm:$0xff]   ;;  %v586_v30 = vld [vmem:[%s819_s30 + $0x20] sm:$0xff]   ;;  %v587_v31 = vld [vmem:[%s819_s30 + $0x28] sm:$0xff]   ;;  %p674_p12 = scmp.ne.s32.totalorder %s672_s27, %s673_s28  ;;  %p679_p2 = scmp.lt.s32.totalorder %s677_s4, %s673_s28 }
  0x1a   : > { %v529_v10 = vunpack.c.l.bf16 %v584_v3  ;;  %v530_v11 = vunpack.c.h.bf16 %v584_v3  ;;  %v533_v12 = vunpack.c.l.bf16 %v585_v9  ;;  %v534_v13 = vunpack.c.h.bf16 %v585_v9  ;;  %v588_v36 = vld [vmem:[%s819_s30 + $0x30] sm:$0xff]   ;;  %v589_v37 = vld [vmem:[%s819_s30 + $0x38] sm:$0xff]   ;;  %v590_v3 = vld [vmem:[%s819_s30 + $0x40] sm:$0xff]  }
  0x1b   : > { %v271_v14 = vmul.f32 %v824_v0, %v521_v4  ;;  %v272_v15 = vmul.f32 %v824_v0, %v522_v6  ;;  %v273_v16 = vmul.f32 %v824_v0, %v525_v7  ;;  %v274_v17 = vmul.f32 %v824_v0, %v526_v8  ;;  %v591_v4 = vld [vmem:[%s819_s30 + $0x48] sm:$0xff]   ;;  %v592_v6 = vld [vmem:[%s819_s30 + $0x50] sm:$0xff]   ;;  %p675_p13 = pnand %p674_p12, %p799_p4  ;;  %p680_p3 = por %p679_p2, %p678_p1 }
  0x1c   : > { %v275_v18 = vmul.f32 %v824_v0, %v529_v10  ;;  %v276_v19 = vmul.f32 %v824_v0, %v530_v11  ;;  %v277_v20 = vmul.f32 %v824_v0, %v533_v12  ;;  %v278_v21 = vmul.f32 %v824_v0, %v534_v13  ;;  %v593_v11 = vld [vmem:[%s819_s30 + $0x58] sm:$0xff]  }
  0x1d   : > { %v307_v22 = vadd.f32 %v833_v5, %v271_v14  ;;  %v308_v23 = vadd.f32 %v833_v5, %v272_v15  ;;  %v309_v24 = vadd.f32 %v833_v5, %v273_v16  ;;  %v310_v25 = vadd.f32 %v833_v5, %v274_v17  ;;  %p676_p0 = pneg %p675_p13 }
  0x1e   : > { %v311_v26 = vadd.f32 %v833_v5, %v275_v18  ;;  %v312_v27 = vadd.f32 %v833_v5, %v276_v19  ;;  %v313_v28 = vadd.f32 %v833_v5, %v277_v20  ;;  %v314_v29 = vadd.f32 %v833_v5, %v278_v21 }
  0x1f   : > { %v339_v32 = vmax.f32 %v307_v22, 0.0  ;;  %v340_v33 = vmax.f32 %v308_v23, 0.0  ;;  %v341_v34 = vmax.f32 %v309_v24, 0.0  ;;  %v342_v35 = vmax.f32 %v310_v25, 0.0  ;;  %p681_p5 = pnand %p680_p3, %p676_p0 }
  0x20   : > { %v343_v38 = vmax.f32 %v311_v26, 0.0  ;;  %v344_v39 = vmax.f32 %v312_v27, 0.0  ;;  %v345_v40 = vmax.f32 %v313_v28, 0.0  ;;  %v346_v41 = vmax.f32 %v314_v29, 0.0 }
  0x21   : > { %371 = vst [vmem:[%s858_s10] sm:$0xff] %v339_v32  ;;  %v537_v42 = vunpack.c.l.bf16 %v586_v30  ;;  %v538_v43 = vunpack.c.h.bf16 %v586_v30  ;;  %v541_v44 = vunpack.c.l.bf16 %v587_v31  ;;  %v542_v45 = vunpack.c.h.bf16 %v587_v31 }
  0x22   : > { %372 = vst [vmem:[%s858_s10 + $0x8] sm:$0xff] %v340_v33  ;;  %v545_v46 = vunpack.c.l.bf16 %v588_v36  ;;  %v546_v47 = vunpack.c.h.bf16 %v588_v36  ;;  %v549_v48 = vunpack.c.l.bf16 %v589_v37  ;;  %v550_v49 = vunpack.c.h.bf16 %v589_v37 }
  0x23   : > { %373 = vst [vmem:[%s858_s10 + $0x10] sm:$0xff] %v341_v34  ;;  %v279_v50 = vmul.f32 %v824_v0, %v537_v42  ;;  %v280_v51 = vmul.f32 %v824_v0, %v538_v43  ;;  %v281_v52 = vmul.f32 %v824_v0, %v541_v44  ;;  %v282_v53 = vmul.f32 %v824_v0, %v542_v45  ;;  %v596_v42 = vld [vmem:[%s819_s30 + $0x70] sm:$0xff]  }
  0x24   : > { %374 = vst [vmem:[%s858_s10 + $0x18] sm:$0xff] %v342_v35  ;;  %v283_v54 = vmul.f32 %v824_v0, %v545_v46  ;;  %v284_v55 = vmul.f32 %v824_v0, %v546_v47  ;;  %v285_v56 = vmul.f32 %v824_v0, %v549_v48  ;;  %v286_v57 = vmul.f32 %v824_v0, %v550_v49  ;;  %v597_v47 = vld [vmem:[%s819_s30 + $0x78] sm:$0xff]  }
  0x25   : > { %375 = vst [vmem:[%s858_s10 + $0x20] sm:$0xff] %v343_v38  ;;  %v315_v58 = vadd.f32 %v833_v5, %v279_v50  ;;  %v316_v59 = vadd.f32 %v833_v5, %v280_v51  ;;  %v317_v60 = vadd.f32 %v833_v5, %v281_v52  ;;  %v318_v61 = vadd.f32 %v833_v5, %v282_v53 }
  0x26   : > { %376 = vst [vmem:[%s858_s10 + $0x28] sm:$0xff] %v344_v39  ;;  %v319_v62 = vadd.f32 %v833_v5, %v283_v54  ;;  %v320_v63 = vadd.f32 %v833_v5, %v284_v55  ;;  %v321_v1 = vadd.f32 %v833_v5, %v285_v56  ;;  %v322_v2 = vadd.f32 %v833_v5, %v286_v57 }
  0x27   : > { %377 = vst [vmem:[%s858_s10 + $0x30] sm:$0xff] %v345_v40  ;;  %v347_v7 = vmax.f32 %v315_v58, 0.0  ;;  %v348_v8 = vmax.f32 %v316_v59, 0.0  ;;  %v349_v9 = vmax.f32 %v317_v60, 0.0  ;;  %v350_v10 = vmax.f32 %v318_v61, 0.0  ;;  %v594_v40 = vld [vmem:[%s819_s30 + $0x60] sm:$0xff]  }
  0x28   : > { %378 = vst [vmem:[%s858_s10 + $0x38] sm:$0xff] %v346_v41  ;;  %v351_v12 = vmax.f32 %v319_v62, 0.0  ;;  %v352_v13 = vmax.f32 %v320_v63, 0.0  ;;  %v353_v14 = vmax.f32 %v321_v1, 0.0  ;;  %v354_v15 = vmax.f32 %v322_v2, 0.0  ;;  %v595_v41 = vld [vmem:[%s819_s30 + $0x68] sm:$0xff]  }
  0x29   : > { %379 = vst [vmem:[%s858_s10 + $0x40] sm:$0xff] %v347_v7  ;;  %v553_v16 = vunpack.c.l.bf16 %v590_v3  ;;  %v554_v17 = vunpack.c.h.bf16 %v590_v3  ;;  %v557_v18 = vunpack.c.l.bf16 %v591_v4  ;;  %v558_v19 = vunpack.c.h.bf16 %v591_v4 }
  0x2a   : > { %380 = vst [vmem:[%s858_s10 + $0x48] sm:$0xff] %v348_v8  ;;  %v561_v20 = vunpack.c.l.bf16 %v592_v6  ;;  %v562_v21 = vunpack.c.h.bf16 %v592_v6  ;;  %v565_v22 = vunpack.c.l.bf16 %v593_v11  ;;  %v566_v23 = vunpack.c.h.bf16 %v593_v11 }
  0x2b   : > { %381 = vst [vmem:[%s858_s10 + $0x50] sm:$0xff] %v349_v9  ;;  %v287_v24 = vmul.f32 %v824_v0, %v553_v16  ;;  %v288_v25 = vmul.f32 %v824_v0, %v554_v17  ;;  %v289_v26 = vmul.f32 %v824_v0, %v557_v18  ;;  %v290_v27 = vmul.f32 %v824_v0, %v558_v19 }
  0x2c   : > { %382 = vst [vmem:[%s858_s10 + $0x58] sm:$0xff] %v350_v10  ;;  %v291_v28 = vmul.f32 %v824_v0, %v561_v20  ;;  %v292_v29 = vmul.f32 %v824_v0, %v562_v21  ;;  %v293_v30 = vmul.f32 %v824_v0, %v565_v22  ;;  %v294_v31 = vmul.f32 %v824_v0, %v566_v23 }
  0x2d   : > { %383 = vst [vmem:[%s858_s10 + $0x60] sm:$0xff] %v351_v12  ;;  %v323_v32 = vadd.f32 %v833_v5, %v287_v24  ;;  %v324_v33 = vadd.f32 %v833_v5, %v288_v25  ;;  %v325_v34 = vadd.f32 %v833_v5, %v289_v26  ;;  %v326_v35 = vadd.f32 %v833_v5, %v290_v27 }
  0x2e   : > { %384 = vst [vmem:[%s858_s10 + $0x68] sm:$0xff] %v352_v13  ;;  %v327_v36 = vadd.f32 %v833_v5, %v291_v28  ;;  %v328_v37 = vadd.f32 %v833_v5, %v292_v29  ;;  %v329_v38 = vadd.f32 %v833_v5, %v293_v30  ;;  %v330_v39 = vadd.f32 %v833_v5, %v294_v31 }
  0x2f   : > { %385 = vst [vmem:[%s858_s10 + $0x70] sm:$0xff] %v353_v14  ;;  %v355_v43 = vmax.f32 %v323_v32, 0.0  ;;  %v356_v44 = vmax.f32 %v324_v33, 0.0  ;;  %v357_v45 = vmax.f32 %v325_v34, 0.0  ;;  %v358_v46 = vmax.f32 %v326_v35, 0.0 }
  0x30   : > { %386 = vst [vmem:[%s858_s10 + $0x78] sm:$0xff] %v354_v15  ;;  %v359_v48 = vmax.f32 %v327_v36, 0.0  ;;  %v360_v49 = vmax.f32 %v328_v37, 0.0  ;;  %v361_v50 = vmax.f32 %v329_v38, 0.0  ;;  %v362_v51 = vmax.f32 %v330_v39, 0.0 }
  0x31   : > { %387 = vst [vmem:[%s858_s10 + $0x80] sm:$0xff] %v355_v43  ;;  %v569_v52 = vunpack.c.l.bf16 %v594_v40  ;;  %v570_v53 = vunpack.c.h.bf16 %v594_v40  ;;  %v573_v54 = vunpack.c.l.bf16 %v595_v41  ;;  %v574_v55 = vunpack.c.h.bf16 %v595_v41 }
  0x32   : > { %388 = vst [vmem:[%s858_s10 + $0x88] sm:$0xff] %v356_v44  ;;  %v577_v56 = vunpack.c.l.bf16 %v596_v42  ;;  %v578_v57 = vunpack.c.h.bf16 %v596_v42  ;;  %v581_v58 = vunpack.c.l.bf16 %v597_v47  ;;  %v582_v59 = vunpack.c.h.bf16 %v597_v47 }
  0x33   : > { %389 = vst [vmem:[%s858_s10 + $0x90] sm:$0xff] %v357_v45  ;;  %v295_v60 = vmul.f32 %v824_v0, %v569_v52  ;;  %v296_v61 = vmul.f32 %v824_v0, %v570_v53  ;;  %v297_v62 = vmul.f32 %v824_v0, %v573_v54  ;;  %v298_v63 = vmul.f32 %v824_v0, %v574_v55 }
  0x34   : > { %390 = vst [vmem:[%s858_s10 + $0x98] sm:$0xff] %v358_v46  ;;  %v299_v1 = vmul.f32 %v824_v0, %v577_v56  ;;  %v300_v2 = vmul.f32 %v824_v0, %v578_v57  ;;  %v301_v3 = vmul.f32 %v824_v0, %v581_v58  ;;  %v302_v4 = vmul.f32 %v824_v0, %v582_v59 }
  0x35   : > { %391 = vst [vmem:[%s858_s10 + $0xa0] sm:$0xff] %v359_v48  ;;  %v331_v6 = vadd.f32 %v833_v5, %v295_v60  ;;  %v332_v7 = vadd.f32 %v833_v5, %v296_v61  ;;  %v333_v8 = vadd.f32 %v833_v5, %v297_v62  ;;  %v334_v9 = vadd.f32 %v833_v5, %v298_v63 }
  0x36   : > { %392 = vst [vmem:[%s858_s10 + $0xa8] sm:$0xff] %v360_v49  ;;  %v335_v10 = vadd.f32 %v833_v5, %v299_v1  ;;  %v336_v11 = vadd.f32 %v833_v5, %v300_v2  ;;  %v337_v14 = vadd.f32 %v833_v5, %v301_v3  ;;  %v338_v16 = vadd.f32 %v833_v5, %v302_v4 }
  0x37   : > { %393 = vst [vmem:[%s858_s10 + $0xb0] sm:$0xff] %v361_v50  ;;  %v363_v0 = vmax.f32 %v331_v6, 0.0  ;;  %v364_v12 = vmax.f32 %v332_v7, 0.0  ;;  %v365_v13 = vmax.f32 %v333_v8, 0.0  ;;  %v366_v15 = vmax.f32 %v334_v9, 0.0 }
  0x38   : > { %394 = vst [vmem:[%s858_s10 + $0xb8] sm:$0xff] %v362_v51  ;;  %v367_v17 = vmax.f32 %v335_v10, 0.0  ;;  %v368_v18 = vmax.f32 %v336_v11, 0.0  ;;  %v369_v19 = vmax.f32 %v337_v14, 0.0  ;;  %v370_v20 = vmax.f32 %v338_v16, 0.0 }
  0x39   : > { %395 = vst [vmem:[%s858_s10 + $0xc0] sm:$0xff] %v363_v0 }
  0x3a   : > { %396 = vst [vmem:[%s858_s10 + $0xc8] sm:$0xff] %v364_v12 }
  0x3b   : > { %397 = vst [vmem:[%s858_s10 + $0xd0] sm:$0xff] %v365_v13 }
  0x3c   : > { %398 = vst [vmem:[%s858_s10 + $0xd8] sm:$0xff] %v366_v15 }
  0x3d   : > { %399 = vst [vmem:[%s858_s10 + $0xe0] sm:$0xff] %v367_v17 }
  0x3e   : > { %400 = vst [vmem:[%s858_s10 + $0xe8] sm:$0xff] %v368_v18 }
  0x3f   : > { %401 = vst [vmem:[%s858_s10 + $0xf0] sm:$0xff] %v369_v19 }
  0x40   : > { %402 = vst [vmem:[%s858_s10 + $0xf8] sm:$0xff] %v370_v20 }
  0x41   : > { %684 = shalt.err (!%p681_p5)
}
  0x42   : > { %s737_s6 = smov 128   ;;  %s738_s8 = smov 8  }
  0x43   : > { %598 = dma.vmem_to_hbm [thread:$0]  (%p799_p4), %s420_s21, 4096, %s422_s23, %s404_s26, %s737_s6, %s737_s6, %s738_s8  }
  0x44 PF: > { %p604_p6 = scmp.ge.s32.totalorder %s735_s17, 2  ;;  %s436_s9 = sand.u32 1, %s715_s12  }
  0x45   : > { %s437_s10 = scalar_lea.sflag [#allocation3], %s436_s9 }
  0x46   : > { %p601_p7 = pnand %p604_p6, %p806_p8 }
  0x48   : > { %p602_p9 = pneg %p601_p7 }
  0x4a   : > { %710 = dma.done.wait (%p602_p9), %s437_s10, 4096  }
  0x4b   : > { %712 = vsyncadd (%p602_p9), %s437_s10, 4294963200  ;;  %s16_s17 = sadd.s32 1, %s735_s17   ;;  %s993_s12 = smov %s719_s13 }
  0x4c   : > { %p13_p10 = scmp.ge.s32.totalorder %s16_s17, 4   ;;  %s994_s13 = smov %s723_s14 }
  0x4d   : > { %s995_s14 = smov %s812_s25  ;;  %s996_s15 = smov %s731_s16 }
  0x4e   : > { %s997_s16 = smov %s999_s20  ;;  %15 = sbr.rel (!%p13_p10) target bundleno = 4 (0x4), region = 67 }
  0x53   :  { %443 = vsyncpa [#allocation3], 1 }
  0x54   :  { %445 = vsyncpa [#allocation3 + $0x1], 1 }

// kernel: block_of_dmt4.2
= control target key start
LH: loop header
LB: loop body
LE: loop exit
PB: predicated region body
PF: predicated region fallthrough
CT: control target
= control target key end

     0   :  { %s5603_s15 = smov 0   ;;  %s5605_s16 = smov 0   ;;  %s6246_s0 = inlined_call_operand.vmem [shape: bf16[2,16,16,128], index: 0, kind: input, shape index: {}]   ;;  %s6247_s1 = inlined_call_operand.vmem [shape: bf16[3,384,128], index: 1, kind: input, shape index: {}]   ;;  %s6248_s2 = inlined_call_operand.vmem [shape: bf16[2,16,16,128], index: 2, kind: output, shape index: {0}]   ;;  %s6249_s3 = inlined_call_operand.vmem [shape: f32[2,1,1,128], index: 3, kind: output, shape index: {1}]   ;;  %s6250_s4 = inlined_call_operand.vmem [shape: f32[2,1,1,128], index: 4, kind: output, shape index: {2}]  }
   0x1   :  { %s5607_s17 = smov 0  }
   0x2 LB: > { %s34_s18 = sadd.s32 1, %s5570_s16  ;;  %p3934_p0 = scmp.ge.s32.totalorder %s5574_s17, 1  ;;  %s5574_s17 = sphi %s5607_s17, %s15_s17   ;;  %s5570_s16 = sphi %s5605_s16, %s6256_s16   ;;  %s5566_s15 = sphi %s5603_s15, %s6255_s15  }
   0x3   : > { %p36_p1 = scmp.ge.s32.totalorder %s34_s18, 2  ;;  %p203_p2 = scmp.lt.s32.totalorder %s5574_s17, 3 }
   0x5   : > { %s6258_s18 = smov (%p36_p1, %s34_s18), 0  ;;  %p204_p3 = pnand %p3934_p0, %p203_p2 }
   0x6   : > { %p253_p4 = scmp.lt.s32.totalorder (!%p204_p3), %s5566_s15, 1 }
   0x7   : > { %207 = sbr.rel (%p204_p3) target bundleno = 772 (0x304), region = 28 }
   0xc   : > { %v5318_v0 = vld [vmem:[%s6247_s1 + $0xf8] sm:$0xff]  ;;  %v5317_v1 = vld [vmem:[%s6247_s1 + $0xf0] sm:$0xff]  ;;  %s6260_s15 = smov (!%p253_p4, %s5566_s15), 1  ;;  %v5316_v2 = vld [vmem:[%s6247_s1 + $0xe8] sm:$0xff]  ;;  %vm542_vm0 = vcmask 1040384   ;;  %vm1010_vm3 = vcmask 1047552  }
   0xd   : > { %1808 = vmatpush.bf16.msra.mxu0 %v5318_v0  ;;  %5502 = vmatpush.bf16.msra.mxu1 %v5318_v0  ;;  %s5157_s23 = sshll.u32 %s6260_s15, 7  ;;  %vm543_vm1 = vsmask.f32 256  ;;  %v5315_v18 = vld [vmem:[%s6247_s1 + $0xe0] sm:$0xff]  ;;  %v5314_v36 = vld [vmem:[%s6247_s1 + $0xd8] sm:$0xff]  ;;  %v5313_v53 = vld [vmem:[%s6247_s1 + $0xd0] sm:$0xff]  ;;  %s6215_s30 = scalar_lea.vmem %s6249_s3, %s6260_s15 }
   0xe   : > { %5503 = vmatpush.bf16.msra.mxu2 %v5318_v0  ;;  %5504 = vmatpush.bf16.msra.mxu3 %v5318_v0  ;;  %s5638_s28 = scalar_lea.vmem %s6246_s0, %s5157_s23  ;;  %vm5654_vm2 = vmand %vm542_vm0, %vm543_vm1  ;;  %v5249_v23 = vld [vmem:[%s6247_s1 + $0x50] sm:$0xff]  ;;  %vm1011_vm4 = vsmask.f32 7424  ;;  %s6171_s27 = scalar_lea.vmem %s6248_s2, %s5157_s23 }
   0xf   : > { %v5159_v3 = vld [vmem:[%s5638_s28] sm:$0xff]  ;;  %v5160_v7 = vld [vmem:[%s5638_s28 + $0x8] sm:$0xff]  ;;  %vm5818_vm5 = vmand %vm1010_vm3, %vm1011_vm4  ;;  %s6221_s7 = scalar_lea.vmem %s6250_s4, %s6260_s15 }
  0x10   : > { %v5163_v4 = vld [vmem:[%s5638_s28 + $0x20] sm:$0xff]  ;;  %v5164_v8 = vld [vmem:[%s5638_s28 + $0x28] sm:$0xff]  ;;  %v415_v9 = vshrl.u32 %v5159_v3, 16  ;;  %v418_v10 = vshll.u32 %v5159_v3, 16  ;;  %v422_v21 = vshrl.u32 %v5160_v7, 16  ;;  %v425_v22 = vshll.u32 %v5160_v7, 16 }
  0x11   : > { %1809 = vmatpush.bf16.msra.mxu0 %v5317_v1  ;;  %5505 = vmatpush.bf16.msra.mxu1 %v5317_v1  ;;  %v5167_v5 = vld [vmem:[%s5638_s28 + $0x40] sm:$0xff]  ;;  %v443_v11 = vshrl.u32 %v5163_v4, 16  ;;  %v446_v12 = vshll.u32 %v5163_v4, 16  ;;  %v5647_v13 = vld [vmem:[%s5638_s28 + $0x48] sm:$0xff]  ;;  %v450_v26 = vshrl.u32 %v5164_v8, 16  ;;  %v453_v27 = vshll.u32 %v5164_v8, 16 }
  0x12   : > { %5506 = vmatpush.bf16.msra.mxu2 %v5317_v1  ;;  %5507 = vmatpush.bf16.msra.mxu3 %v5317_v1  ;;  %v5171_v6 = vld [vmem:[%s5638_s28 + $0x60] sm:$0xff]  ;;  %v471_v14 = vshrl.u32 %v5167_v5, 16  ;;  %v474_v15 = vshll.u32 %v5167_v5, 16  ;;  %v417_v19 = vrot.slane %v415_v9, 7  ;;  %v424_v30 = vrot.slane %v422_v21, 7  ;;  %v5172_v58 = vld [vmem:[%s5638_s28 + $0x68] sm:$0xff] }
  0x13   : > { %v499_v16 = vshrl.u32 %v5171_v6, 16  ;;  %v502_v17 = vshll.u32 %v5171_v6, 16  ;;  %v445_v20 = vrot.slane %v443_v11, 7  ;;  %v478_v31 = vshrl.u32 %v5647_v13, 16  ;;  %v5161_v1 = vld [vmem:[%s5638_s28 + $0x10] sm:$0xff]  ;;  %v5312_v7 = vld [vmem:[%s6247_s1 + $0xc8] sm:$0xff] }
  0x14   : > { %v473_v24 = vrot.slane %v471_v14, 7  ;;  %v420_v28 = vor.u32 %v418_v10, %v417_v19  ;;  %v452_v34 = vrot.slane %v450_v26, 7  ;;  %v481_v35 = vshll.u32 %v5647_v13, 16  ;;  %v5169_v6 = vld [vmem:[%s5638_s28 + $0x50] sm:$0xff] }
  0x15   : > { %1810 = vmatpush.bf16.msra.mxu0 %v5316_v2  ;;  %5508 = vmatpush.bf16.msra.mxu1 %v5316_v2  ;;  %v501_v25 = vrot.slane %v499_v16, 7  ;;  %v448_v29 = vor.u32 %v446_v12, %v445_v20  ;;  %v427_v39 = vor.u32 %v425_v22, %v424_v30  ;;  %v480_v40 = vrot.slane %v478_v31, 7  ;;  %v5311_v20 = vld [vmem:[%s6247_s1 + $0xc0] sm:$0xff] }
  0x16   : > { %5509 = vmatpush.bf16.msra.mxu2 %v5316_v2  ;;  %5510 = vmatpush.bf16.msra.mxu3 %v5316_v2  ;;  %v476_v32 = vor.u32 %v474_v15, %v473_v24  ;;  %v545_v37 = vsel %vm5654_vm2, 0, %v420_v28  ;;  %v455_v48 = vor.u32 %v453_v27, %v452_v34  ;;  %v5165_v2 = vld [vmem:[%s5638_s28 + $0x30] sm:$0xff]  ;;  %v506_v10 = vshrl.u32 %v5172_v58, 16  ;;  %v5334_v27 = vld [vmem:[%s6247_s1 + $0x178] sm:$0xff] }
  0x17   : > { %v504_v33 = vor.u32 %v502_v17, %v501_v25  ;;  %v549_v38 = vsel %vm5654_vm2, 0, %v448_v29  ;;  %v577_v41 = vunpack.c.l.b16 %v545_v37  ;;  %v578_v42 = vunpack.c.h.b16 %v545_v37  ;;  %v5691_v25 = vld [vmem:[%s5638_s28 + $0x70] sm:$0xff] }
  0x18   : > { %v585_v43 = vunpack.c.l.b16 %v549_v38  ;;  %v586_v44 = vunpack.c.h.b16 %v549_v38  ;;  %v553_v45 = vsel %vm5654_vm2, 0, %v476_v32  ;;  %v546_v47 = vsel %vm5654_vm2, 0, %v427_v39  ;;  %v5246_v39 = vld [vmem:[%s6247_s1 + $0x38] sm:$0xff] }
  0x19   : > { %1811 = vmatpush.bf16.msra.mxu0 %v5315_v18  ;;  %5511 = vmatpush.bf16.msra.mxu1 %v5315_v18  ;;  %v557_v46 = vsel %vm5654_vm2, 0, %v504_v33  ;;  %v609_v49 = vpack.c.b16 %v577_v41, %v577_v41  ;;  %v610_v50 = vpack.c.b16 %v578_v42, %v578_v42  ;;  %v593_v54 = vunpack.c.l.b16 %v553_v45 }
  0x1a   : > { %5512 = vmatpush.bf16.msra.mxu2 %v5315_v18  ;;  %5513 = vmatpush.bf16.msra.mxu3 %v5315_v18  ;;  %v617_v51 = vpack.c.b16 %v585_v43, %v585_v43  ;;  %v618_v52 = vpack.c.b16 %v586_v44, %v586_v44  ;;  %v594_v55 = vunpack.c.h.b16 %v553_v45  ;;  %v601_v56 = vunpack.c.l.b16 %v557_v46  ;;  %v5326_v44 = vld [vmem:[%s6247_s1 + $0x138] sm:$0xff] }
  0x1b   : > { %v602_v57 = vunpack.c.h.b16 %v557_v46  ;;  %674 = vst [vmem:[#allocation2 + $0x18] sm:$0xf] %v609_v49  ;;  %v579_v59 = vunpack.c.l.b16 %v546_v47  ;;  %v580_v60 = vunpack.c.h.b16 %v546_v47  ;;  %v550_v61 = vsel %vm5654_vm2, 0, %v455_v48 }
  0x1c   : > { %v483_v62 = vor.u32 %v481_v35, %v480_v40  ;;  %675 = vst [vmem:[#allocation2 + $0x24] sm:$0xf] %v610_v50  ;;  %v625_v63 = vpack.c.b16 %v593_v54, %v593_v54  ;;  %v626_v0 = vpack.c.b16 %v594_v55, %v594_v55  ;;  %v633_v3 = vpack.c.b16 %v601_v56, %v601_v56  ;;  %v5254_v54 = vld [vmem:[%s6247_s1 + $0x78] sm:$0xff] }
  0x1d   : > { %1812 = vmatpush.bf16.msra.mxu0 %v5314_v36  ;;  %5514 = vmatpush.bf16.msra.mxu1 %v5314_v36  ;;  %682 = vst [vmem:[#allocation2 + $0x78] sm:$0xf] %v617_v51  ;;  %v634_v4 = vpack.c.b16 %v602_v57, %v602_v57  ;;  %v587_v5 = vunpack.c.l.b16 %v550_v61  ;;  %v588_v8 = vunpack.c.h.b16 %v550_v61  ;;  %v509_v11 = vshll.u32 %v5172_v58, 16  ;;  %v5333_v61 = vld [vmem:[%s6247_s1 + $0x170] sm:$0xff] }
  0x1e   : > { %5515 = vmatpush.bf16.msra.mxu2 %v5314_v36  ;;  %5516 = vmatpush.bf16.msra.mxu3 %v5314_v36  ;;  %683 = vst [vmem:[#allocation2 + $0x84] sm:$0xf] %v618_v52  ;;  %v554_v9 = vsel %vm5654_vm2, 0, %v483_v62  ;;  %v611_v12 = vpack.c.b16 %v579_v59, %v579_v59  ;;  %v612_v13 = vpack.c.b16 %v580_v60, %v580_v60  ;;  %v508_v16 = vrot.slane %v506_v10, 7 }
  0x1f   : > { %690 = vst [vmem:[#allocation2 + $0xd8] sm:$0xf] %v625_v63  ;;  %v595_v14 = vunpack.c.l.b16 %v554_v9  ;;  %v596_v15 = vunpack.c.h.b16 %v554_v9  ;;  %v429_v17 = vshrl.u32 %v5161_v1, 16  ;;  %v432_v18 = vshll.u32 %v5161_v1, 16 }
  0x20   : > { %691 = vst [vmem:[#allocation2 + $0xe4] sm:$0xf] %v626_v0  ;;  %v457_v19 = vshrl.u32 %v5165_v2, 16  ;;  %v619_v21 = vpack.c.b16 %v587_v5, %v587_v5  ;;  %v460_v22 = vshll.u32 %v5165_v2, 16  ;;  %v485_v24 = vshrl.u32 %v5169_v6, 16  ;;  %v5245_v2 = vld [vmem:[%s6247_s1 + $0x30] sm:$0xff] }
  0x21   : > { %1813 = vmatpush.bf16.msra.mxu0 %v5313_v53  ;;  %5517 = vmatpush.bf16.msra.mxu1 %v5313_v53  ;;  %698 = vst [vmem:[#allocation2 + $0x138] sm:$0xf] %v633_v3  ;;  %v620_v28 = vpack.c.b16 %v588_v8, %v588_v8  ;;  %v511_v29 = vor.u32 %v509_v11, %v508_v16  ;;  %v431_v30 = vrot.slane %v429_v17, 7  ;;  %v488_v36 = vshll.u32 %v5169_v6, 16  ;;  %v5325_v8 = vld [vmem:[%s6247_s1 + $0x130] sm:$0xff]  ;;  %v5162_v17 = vld [vmem:[%s5638_s28 + $0x18] sm:$0xff] }
  0x22   : > { %5518 = vmatpush.bf16.msra.mxu2 %v5313_v53  ;;  %5519 = vmatpush.bf16.msra.mxu3 %v5313_v53  ;;  %v4181_v26 = vld [vmem:[#allocation2 + $0x18] sm:$0xf]  ;;  %699 = vst [vmem:[#allocation2 + $0x144] sm:$0xf] %v634_v4  ;;  %v459_v31 = vrot.slane %v457_v19, 7  ;;  %v627_v33 = vpack.c.b16 %v595_v14, %v595_v14  ;;  %v628_v34 = vpack.c.b16 %v596_v15, %v596_v15  ;;  %v487_v35 = vrot.slane %v485_v24, 7 }
  0x23   : > { %v5264_v32 = vld [vmem:[#allocation2 + $0x20] sm:$0xf0]  ;;  %676 = vst [vmem:[#allocation2 + $0x30] sm:$0xf] %v611_v12  ;;  %v558_v40 = vsel %vm5654_vm2, 0, %v511_v29  ;;  %v434_v41 = vor.u32 %v432_v18, %v431_v30  ;;  %v513_v48 = vshrl.u32 %v5691_v25, 16 }
  0x24   : > { %v4182_v37 = vor.u32 %v5264_v32, %v4181_v26  ;;  %v4229_v38 = vld [vmem:[#allocation2 + $0x78] sm:$0xf]  ;;  %677 = vst [vmem:[#allocation2 + $0x3c] sm:$0xf] %v612_v13  ;;  %v462_v42 = vor.u32 %v460_v22, %v459_v31  ;;  %v603_v45 = vunpack.c.l.b16 %v558_v40  ;;  %v604_v46 = vunpack.c.h.b16 %v558_v40  ;;  %v5253_v11 = vld [vmem:[%s6247_s1 + $0x70] sm:$0xff]  ;;  %v5332_v15 = vld [vmem:[%s6247_s1 + $0x168] sm:$0xff] }
  0x25   : > { %1814 = vmatpush.bf16.msra.mxu0 %v5312_v7  ;;  %5520 = vmatpush.bf16.msra.mxu1 %v5312_v7  ;;  %v5276_v43 = vld [vmem:[#allocation2 + $0x80] sm:$0xf0]  ;;  %684 = vst [vmem:[#allocation2 + $0x90] sm:$0xf] %v619_v21  ;;  %v490_v47 = vor.u32 %v488_v36, %v487_v35  ;;  %v547_v51 = vsel %vm5654_vm2, 0, %v434_v41  ;;  %v515_v13 = vrot.slane %v513_v48, 7 }
  0x26   : > { %5521 = vmatpush.bf16.msra.mxu2 %v5312_v7  ;;  %5522 = vmatpush.bf16.msra.mxu3 %v5312_v7  ;;  %v4230_v49 = vor.u32 %v5276_v43, %v4229_v38  ;;  %v4277_v50 = vld [vmem:[#allocation2 + $0xd8] sm:$0xf]  ;;  %685 = vst [vmem:[#allocation2 + $0x9c] sm:$0xf] %v620_v28  ;;  %v551_v52 = vsel %vm5654_vm2, 0, %v462_v42  ;;  %v635_v55 = vpack.c.b16 %v603_v45, %v603_v45  ;;  %v581_v57 = vunpack.c.l.b16 %v547_v51  ;;  %v5244_v18 = vld [vmem:[%s6247_s1 + $0x28] sm:$0xff] }
  0x27   : > { %v5288_v53 = vld [vmem:[#allocation2 + $0xe0] sm:$0xf0]  ;;  %692 = vst [vmem:[#allocation2 + $0xf0] sm:$0xf] %v627_v33  ;;  %v636_v56 = vpack.c.b16 %v604_v46, %v604_v46  ;;  %v582_v58 = vunpack.c.h.b16 %v547_v51  ;;  %v589_v62 = vunpack.c.l.b16 %v551_v52  ;;  %v590_v63 = vunpack.c.h.b16 %v551_v52  ;;  %v5170_v21 = vld [vmem:[%s5638_s28 + $0x58] sm:$0xff]  ;;  %v5324_v22 = vld [vmem:[%s6247_s1 + $0x128] sm:$0xff] }
  0x28   : > { %v4278_v59 = vor.u32 %v5288_v53, %v4277_v50  ;;  %v4325_v60 = vld [vmem:[#allocation2 + $0x138] sm:$0xf]  ;;  %693 = vst [vmem:[#allocation2 + $0xfc] sm:$0xf] %v628_v34  ;;  %v555_v0 = vsel %vm5654_vm2, 0, %v490_v47  ;;  %v613_v3 = vpack.c.b16 %v581_v57, %v581_v57  ;;  %v516_v14 = vshll.u32 %v5691_v25, 16 }
  0x29   : > { %1815 = vmatpush.bf16.msra.mxu0 %v5311_v20  ;;  %5523 = vmatpush.bf16.msra.mxu1 %v5311_v20  ;;  %v5300_v1 = vld [vmem:[#allocation2 + $0x140] sm:$0xf0]  ;;  %700 = vst [vmem:[#allocation2 + $0x150] sm:$0xf] %v635_v55  ;;  %v614_v4 = vpack.c.b16 %v582_v58, %v582_v58  ;;  %v597_v5 = vunpack.c.l.b16 %v555_v0  ;;  %v598_v6 = vunpack.c.h.b16 %v555_v0  ;;  %v621_v9 = vpack.c.b16 %v589_v62, %v589_v62  ;;  %v5252_v25 = vld [vmem:[%s6247_s1 + $0x68] sm:$0xff]  ;;  %v5752_v29 = vld [vmem:[%s5638_s28 + $0x78] sm:$0xff] }
  0x2a   : > { %5524 = vmatpush.bf16.msra.mxu2 %v5311_v20  ;;  %5525 = vmatpush.bf16.msra.mxu3 %v5311_v20  ;;  %v4326_v7 = vor.u32 %v5300_v1, %v4325_v60  ;;  %701 = vst [vmem:[#allocation2 + $0x15c] sm:$0xf] %v636_v56  ;;  %v622_v10 = vpack.c.b16 %v590_v63, %v590_v63  ;;  %v5166_v20 = vld [vmem:[%s5638_s28 + $0x38] sm:$0xff]  ;;  %v5331_v24 = vld [vmem:[%s6247_s1 + $0x160] sm:$0xff]  ;;  %v5745_v26 = vld [vmem:[#allocation2 + $0x30] sm:$0xf] }
  0x2b   : > { %678 = vst [vmem:[#allocation2 + $0x48] sm:$0xf] %v613_v3  ;;  %v629_v12 = vpack.c.b16 %v597_v5, %v597_v5  ;;  %v630_v16 = vpack.c.b16 %v598_v6, %v598_v6  ;;  %v518_v19 = vor.u32 %v516_v14, %v515_v13  ;;  %v5243_v31 = vld [vmem:[%s6247_s1 + $0x20] sm:$0xff]  ;;  %v436_v34 = vshrl.u32 %v5162_v17, 16  ;;  %v5242_v62 = vld [vmem:[%s6247_s1 + $0x18] sm:$0xff] }
  0x2c   : > { %1816 = vmatmul.bf16.vlgmr.msra.gmra.mxu0 %v4182_v37  ;;  %1836 = vmatmul.bf16.vlgmr.msra.gmra.mxu1 %v4230_v49  ;;  %679 = vst [vmem:[#allocation2 + $0x54] sm:$0xf] %v614_v4  ;;  %v4241_v30 = vld [vmem:[#allocation2 + $0x90] sm:$0xf]  ;;  %v439_v36 = vshll.u32 %v5162_v17, 16  ;;  %v464_v37 = vshrl.u32 %v5166_v20, 16 }
  0x2d   : > { %1856 = vmatmul.bf16.vlgmr.msra.gmra.mxu2 %v4278_v59  ;;  %1897 = vmatpush.bf16.msrb.mxu1 %v5326_v44  ;;  %686 = vst [vmem:[#allocation2 + $0xa8] sm:$0xf] %v621_v9  ;;  %v559_v28 = vsel %vm5654_vm2, 0, %v518_v19  ;;  %v5279_v35 = vld [vmem:[#allocation2 + $0x98] sm:$0xf0]  ;;  %v467_v38 = vshll.u32 %v5166_v20, 16 }
  0x2e   : > { %1986 = vmatpush.bf16.msrb.mxu2 %v5334_v27  ;;  %2475 = vmatpush.bf16.msrb.mxu3 %v5246_v39  ;;  %687 = vst [vmem:[#allocation2 + $0xb4] sm:$0xf] %v622_v10  ;;  %v5747_v27 = vld [vmem:[#allocation2 + $0x38] sm:$0xf0]  ;;  %v605_v32 = vunpack.c.l.b16 %v559_v28  ;;  %v606_v33 = vunpack.c.h.b16 %v559_v28  ;;  %v492_v39 = vshrl.u32 %v5170_v21, 16  ;;  %v5323_v43 = vld [vmem:[%s6247_s1 + $0x120] sm:$0xff]  ;;  %v4242_v52 = vor.u32 %v5279_v35, %v4241_v30 }
  0x2f   : > { %2564 = vmatpush.bf16.msrb.mxu0 %v5254_v54  ;;  %1876 = vmatmul.bf16.vlgmr.msra.gmra.mxu3 %v4326_v7  ;;  %694 = vst [vmem:[#allocation2 + $0x108] sm:$0xf] %v629_v12  ;;  %v4289_v40 = vld [vmem:[#allocation2 + $0xf0] sm:$0xf]  ;;  %v5251_v44 = vld [vmem:[%s6247_s1 + $0x60] sm:$0xff]  ;;  %v438_v45 = vrot.slane %v436_v34, 7  ;;  %v4194_v51 = vor.u32 %v5747_v27, %v5745_v26 }
  0x30   : > { %695 = vst [vmem:[#allocation2 + $0x114] sm:$0xf] %v630_v16  ;;  %v637_v41 = vpack.c.b16 %v605_v32, %v605_v32  ;;  %v638_v42 = vpack.c.b16 %v606_v33, %v606_v33  ;;  %v5291_v46 = vld [vmem:[#allocation2 + $0xf8] sm:$0xf0]  ;;  %v466_v47 = vrot.slane %v464_v37, 7  ;;  %v494_v48 = vrot.slane %v492_v39, 7 }
  0x31   : > { %1898 = vmatpush.bf16.msrb.mxu1 %v5325_v8  ;;  %v495_v49 = vshll.u32 %v5170_v21, 16  ;;  %v520_v50 = vshrl.u32 %v5752_v29, 16  ;;  %v4337_v53 = vld [vmem:[#allocation2 + $0x150] sm:$0xf]  ;;  %v5330_v54 = vld [vmem:[%s6247_s1 + $0x158] sm:$0xff]  ;;  %v441_v55 = vor.u32 %v439_v36, %v438_v45  ;;  %v523_v60 = vshll.u32 %v5752_v29, 16 }
  0x32   : > { %1987 = vmatpush.bf16.msrb.mxu2 %v5333_v61  ;;  %2476 = vmatpush.bf16.msrb.mxu3 %v5245_v2  ;;  %702 = vst [vmem:[#allocation2 + $0x168] sm:$0xf] %v637_v41  ;;  %v5303_v56 = vld [vmem:[#allocation2 + $0x158] sm:$0xf0]  ;;  %v469_v57 = vor.u32 %v467_v38, %v466_v47  ;;  %v4290_v61 = vor.u32 %v5291_v46, %v4289_v40  ;;  %v5175_v6 = vld [vmem:[%s5638_s28] sm:$0xff]  ;;  %v5329_v8 = vld [vmem:[%s6247_s1 + $0x150] sm:$0xff] }
  0x33   : > { %2565 = vmatpush.bf16.msrb.mxu0 %v5253_v11  ;;  %703 = vst [vmem:[#allocation2 + $0x174] sm:$0xf] %v638_v42  ;;  %v497_v58 = vor.u32 %v495_v49, %v494_v48  ;;  %v522_v59 = vrot.slane %v520_v50, 7  ;;  %v548_v63 = vsel %vm5654_vm2, 0, %v441_v55  ;;  %v5322_v0 = vld [vmem:[%s6247_s1 + $0x118] sm:$0xff]  ;;  %v4338_v7 = vor.u32 %v5303_v56, %v4337_v53  ;;  %v5241_v16 = vld [vmem:[%s6247_s1 + $0x10] sm:$0xff] }
  0x34   : > { %v5250_v1 = vld [vmem:[%s6247_s1 + $0x58] sm:$0xff]  ;;  %v583_v2 = vunpack.c.l.b16 %v548_v63  ;;  %v584_v3 = vunpack.c.h.b16 %v548_v63  ;;  %v552_v4 = vsel %vm5654_vm2, 0, %v469_v57  ;;  %v883_v21 = vshrl.u32 %v5175_v6, 16  ;;  %v5321_v27 = vld [vmem:[%s6247_s1 + $0x110] sm:$0xff]  ;;  %v5328_v28 = vld [vmem:[%s6247_s1 + $0x148] sm:$0xff] }
  0x35   : > { %1899 = vmatpush.bf16.msrb.mxu1 %v5324_v22  ;;  %v556_v5 = vsel %vm5654_vm2, 0, %v497_v58  ;;  %v591_v9 = vunpack.c.l.b16 %v552_v4  ;;  %v592_v10 = vunpack.c.h.b16 %v552_v4  ;;  %v885_v22 = vshll.u32 %v5175_v6, 16  ;;  %v5240_v32 = vld [vmem:[%s6247_s1 + $0x8] sm:$0xff]  ;;  %v5327_v34 = vld [vmem:[%s6247_s1 + $0x140] sm:$0xff]  ;;  %v5270_v38 = vld [vmem:[#allocation2 + $0x50] sm:$0xf0] }
  0x36   : > { %1988 = vmatpush.bf16.msrb.mxu2 %v5332_v15  ;;  %2477 = vmatpush.bf16.msrb.mxu3 %v5244_v18  ;;  %v599_v11 = vunpack.c.l.b16 %v556_v5  ;;  %v615_v12 = vpack.c.b16 %v583_v2, %v583_v2  ;;  %v616_v13 = vpack.c.b16 %v584_v3, %v584_v3  ;;  %v600_v14 = vunpack.c.h.b16 %v556_v5  ;;  %v5320_v33 = vld [vmem:[%s6247_s1 + $0x108] sm:$0xff]  ;;  %v5282_v40 = vld [vmem:[#allocation2 + $0xb0] sm:$0xf0]  ;;  %v706_v41 = vld [vmem:[%s5638_s28] sm:$0xf] }
  0x37   : > { %2566 = vmatpush.bf16.msrb.mxu0 %v5252_v25  ;;  %v525_v15 = vor.u32 %v523_v60, %v522_v59  ;;  %v623_v17 = vpack.c.b16 %v591_v9, %v591_v9  ;;  %v624_v18 = vpack.c.b16 %v592_v10, %v592_v10  ;;  %v887_v29 = vrot.slane %v885_v22, 1  ;;  %v5248_v35 = vld [vmem:[%s6247_s1 + $0x48] sm:$0xff]  ;;  %v5239_v45 = vld [vmem:[%s6247_s1] sm:$0xff]  ;;  %v5294_v47 = vld [vmem:[#allocation2 + $0x110] sm:$0xf0] }
  0x38   : > { %680 = vst [vmem:[#allocation2 + $0x60] sm:$0xf] %v615_v12  ;;  %v631_v19 = vpack.c.b16 %v599_v11, %v599_v11  ;;  %v4205_v37 = vld [vmem:[#allocation2 + $0x48] sm:$0xf]  ;;  %v5319_v48 = vld [vmem:[%s6247_s1 + $0x100] sm:$0xff]  ;;  %v5576_v58 = vmov 0  }
  0x39   : > { %1900 = vmatpush.bf16.msrb.mxu1 %v5323_v43  ;;  %v560_v20 = vsel %vm5654_vm2, 0, %v525_v15  ;;  %681 = vst [vmem:[#allocation2 + $0x6c] sm:$0xf] %v616_v13  ;;  %v888_v36 = vor.u32 %v887_v29, %v883_v21  ;;  %v4253_v39 = vld [vmem:[#allocation2 + $0xa8] sm:$0xf]  ;;  %v5247_v49 = vld [vmem:[%s6247_s1 + $0x40] sm:$0xff] }
  0x3a   : > { %1989 = vmatpush.bf16.msrb.mxu2 %v5331_v24  ;;  %2478 = vmatpush.bf16.msrb.mxu3 %v5243_v31  ;;  %v632_v24 = vpack.c.b16 %v600_v14, %v600_v14  ;;  %v607_v25 = vunpack.c.l.b16 %v560_v20  ;;  %v608_v26 = vunpack.c.h.b16 %v560_v20  ;;  %688 = vst [vmem:[#allocation2 + $0xc0] sm:$0xf] %v623_v17  ;;  %v4301_v42 = vld [vmem:[#allocation2 + $0x108] sm:$0xf]  ;;  %v707_v43 = vld [vmem:[%s5638_s28 + $0x4] sm:$0xf]  ;;  %v4254_v53 = vor.u32 %v5282_v40, %v4253_v39 }
  0x3b   : > { %2567 = vmatpush.bf16.msrb.mxu0 %v5251_v44  ;;  %689 = vst [vmem:[#allocation2 + $0xcc] sm:$0xf] %v624_v18  ;;  %v1013_v46 = vsel %vm5818_vm5, %v888_v36, 0  ;;  %v5306_v55 = vld [vmem:[#allocation2 + $0x170] sm:$0xf0]  ;;  %v5176_v59 = vld [vmem:[%s5638_s28 + $0x8] sm:$0xff]  ;;  %v4302_v60 = vor.u32 %v5294_v47, %v4301_v42 }
  0x3c   : > { %1821 = vmatmul.bf16.gmra.mxu0 %v4194_v51  ;;  %1841 = vmatmul.bf16.gmra.mxu1 %v4242_v52  ;;  %v639_v30 = vpack.c.b16 %v607_v25, %v607_v25  ;;  %v640_v31 = vpack.c.b16 %v608_v26, %v608_v26  ;;  %696 = vst [vmem:[#allocation2 + $0x120] sm:$0xf] %v631_v19  ;;  %v1045_v50 = vunpack.c.l.b16 %v1013_v46  ;;  %v1046_v51 = vunpack.c.h.b16 %v1013_v46  ;;  %v5390_v2 = vld [vmem:[%s6247_s1 + $0x1b8] sm:$0xff]  ;;  %v708_v6 = vld [vmem:[%s5638_s28 + $0x8] sm:$0xf] }
  0x3d   : > { %1861 = vmatmul.bf16.gmra.mxu2 %v4290_v61  ;;  %1901 = vmatpush.bf16.msrb.mxu1 %v5322_v0  ;;  %697 = vst [vmem:[#allocation2 + $0x12c] sm:$0xf] %v632_v24  ;;  %v4206_v52 = vor.u32 %v5270_v38, %v4205_v37  ;;  %v892_v61 = vshll.u32 %v5176_v59, 16  ;;  %v890_v63 = vshrl.u32 %v5176_v59, 16  ;;  %v5398_v3 = vld [vmem:[%s6247_s1 + $0x1f8] sm:$0xff]  ;;  %v5177_v24 = vld [vmem:[%s5638_s28 + $0x10] sm:$0xff] }
  0x3e   : > { %1990 = vmatpush.bf16.msrb.mxu2 %v5330_v54  ;;  %2479 = vmatpush.bf16.msrb.mxu3 %v5242_v62  ;;  %704 = vst [vmem:[#allocation2 + $0x180] sm:$0xf] %v639_v30  ;;  %v4349_v54 = vld [vmem:[#allocation2 + $0x168] sm:$0xf]  ;;  %v1077_v56 = vpack.c.b16 %v1045_v50, %v1045_v50  ;;  %v1078_v57 = vpack.c.b16 %v1046_v51, %v1046_v51  ;;  %v5262_v4 = vld [vmem:[%s6247_s1 + $0xb8] sm:$0xff]  ;;  %v899_v26 = vshll.u32 %v5177_v24, 16 }
  0x3f   : > { %2568 = vmatpush.bf16.msrb.mxu0 %v5250_v1  ;;  %1881 = vmatmul.bf16.gmra.mxu3 %v4338_v7  ;;  %705 = vst [vmem:[#allocation2 + $0x18c] sm:$0xf] %v640_v31  ;;  %v4350_v62 = vor.u32 %v5306_v55, %v4349_v54  ;;  %v894_v0 = vrot.slane %v892_v61, 1  ;;  %v5406_v5 = vld [vmem:[%s6247_s1 + $0x238] sm:$0xff]  ;;  %v4217_v11 = vld [vmem:[#allocation2 + $0x60] sm:$0xf] }
  0x40   : > { %738 = vst [vmem:[#allocation2 + $0x1c] sm:$0xf] %v706_v41  ;;  %v5273_v12 = vld [vmem:[#allocation2 + $0x68] sm:$0xf0]  ;;  %v710_v29 = vld [vmem:[%s5638_s28 + $0x10] sm:$0xf] }
  0x41   : > { %1902 = vmatpush.bf16.msrb.mxu1 %v5321_v27  ;;  %739 = vst [vmem:[#allocation2 + $0x28] sm:$0xf] %v707_v43  ;;  %v895_v1 = vor.u32 %v894_v0, %v890_v63  ;;  %v4265_v13 = vld [vmem:[#allocation2 + $0xc0] sm:$0xf]  ;;  %v4218_v20 = vor.u32 %v5273_v12, %v4217_v11  ;;  %v711_v30 = vld [vmem:[%s5638_s28 + $0x14] sm:$0xf] }
  0x42   : > { %1991 = vmatpush.bf16.msrb.mxu2 %v5329_v8  ;;  %2480 = vmatpush.bf16.msrb.mxu3 %v5241_v16  ;;  %293 = vst [vmem:[#allocation2] sm:$0xff] %v5576_v58  ;;  %v709_v8 = vld [vmem:[%s5638_s28 + $0xc] sm:$0xf]  ;;  %v5389_v54 = vld [vmem:[%s6247_s1 + $0x1b0] sm:$0xff]  ;;  %v712_v59 = vld [vmem:[%s5638_s28 + $0x18] sm:$0xf] }
  0x43   : > { %2569 = vmatpush.bf16.msrb.mxu0 %v5249_v23  ;;  %295 = vst [vmem:[#allocation2 + $0xc] sm:$0xff] %v5576_v58  ;;  %v1014_v7 = vsel %vm5818_vm5, %v895_v1, 0  ;;  %v5285_v14 = vld [vmem:[#allocation2 + $0xc8] sm:$0xf0]  ;;  %v4313_v17 = vld [vmem:[#allocation2 + $0x120] sm:$0xf] }
  0x44   : > { %1141 = vst [vmem:[#allocation2 + $0x20] sm:$0xf] %v1077_v56  ;;  %v1047_v9 = vunpack.c.l.b16 %v1014_v7  ;;  %v1048_v10 = vunpack.c.h.b16 %v1014_v7  ;;  %v5297_v18 = vld [vmem:[#allocation2 + $0x128] sm:$0xf0]  ;;  %v4266_v21 = vor.u32 %v5285_v14, %v4265_v13  ;;  %v901_v23 = vrot.slane %v899_v26, 1  ;;  %v5397_v55 = vld [vmem:[%s6247_s1 + $0x1f0] sm:$0xff] }
  0x45   : > { %1903 = vmatpush.bf16.msrb.mxu1 %v5320_v33  ;;  %1142 = vst [vmem:[#allocation2 + $0x2c] sm:$0xf] %v1078_v57  ;;  %v4361_v19 = vld [vmem:[#allocation2 + $0x180] sm:$0xf]  ;;  %v4314_v25 = vor.u32 %v5297_v18, %v4313_v17  ;;  %v5261_v56 = vld [vmem:[%s6247_s1 + $0xb0] sm:$0xff] }
  0x46   : > { %1992 = vmatpush.bf16.msrb.mxu2 %v5328_v28  ;;  %2481 = vmatpush.bf16.msrb.mxu3 %v5240_v32  ;;  %294 = vst [vmem:[#allocation2 + $0x8] sm:$0xf] %v5576_v58  ;;  %v1079_v15 = vpack.c.b16 %v1047_v9, %v1047_v9  ;;  %v1080_v16 = vpack.c.b16 %v1048_v10, %v1048_v10  ;;  %v5309_v22 = vld [vmem:[#allocation2 + $0x188] sm:$0xf0]  ;;  %v897_v28 = vshrl.u32 %v5177_v24, 16  ;;  %v5179_v12 = vld [vmem:[%s5638_s28 + $0x20] sm:$0xff] }
  0x47   : > { %2570 = vmatpush.bf16.msrb.mxu0 %v5248_v35  ;;  %296 = vst [vmem:[#allocation2 + $0x14] sm:$0xf] %v5576_v58  ;;  %v4362_v27 = vor.u32 %v5309_v22, %v4361_v19  ;;  %v5263_v35 = vld [vmem:[#allocation2 + $0x1c] sm:$0xf]  ;;  %v4481_v9 = vld [vmem:[#allocation2 + $0x18] sm:$0xf] }
  0x48   : > { %298 = vst [vmem:[#allocation2 + $0x198] sm:$0xff] %v5576_v58  ;;  %v902_v31 = vor.u32 %v901_v23, %v897_v28  ;;  %v4183_v38 = vld [vmem:[#allocation2 + $0x24] sm:$0xf0]  ;;  %v5195_v10 = vld [vmem:[#allocation2 + $0x20] sm:$0xf0]  ;;  %v913_v14 = vshll.u32 %v5179_v12, 16 }
  0x49   : > { %1904 = vmatpush.bf16.msrb.mxu1 %v5319_v48  ;;  %299 = vst [vmem:[#allocation2 + $0x1a0] sm:$0xf] %v5576_v58  ;;  %v5191_v39 = vld [vmem:[#allocation2 + $0x4] sm:$0xf]  ;;  %v4186_v43 = vor.u32 %v5263_v35, %v4183_v38  ;;  %v5178_v48 = vld [vmem:[%s5638_s28 + $0x18] sm:$0xff] }
  0x4a   : > { %1993 = vmatpush.bf16.msrb.mxu2 %v5327_v34  ;;  %2482 = vmatpush.bf16.msrb.mxu3 %v5239_v45  ;;  %300 = vst [vmem:[#allocation2 + $0x1a4] sm:$0xff] %v5576_v58  ;;  %v1015_v32 = vsel %vm5818_vm5, %v902_v31, 0  ;;  %v4471_v40 = vld [vmem:[#allocation2 + $0xc] sm:$0xf0]  ;;  %v4469_v45 = vld [vmem:[#allocation2] sm:$0xf] }
  0x4b   : > { %2571 = vmatpush.bf16.msrb.mxu0 %v5247_v49  ;;  %301 = vst [vmem:[#allocation2 + $0x1ac] sm:$0xf] %v5576_v58  ;;  %v1049_v33 = vunpack.c.l.b16 %v1015_v32  ;;  %v1050_v34 = vunpack.c.h.b16 %v1015_v32  ;;  %v4189_v41 = vld [vmem:[#allocation2 + $0x20] sm:$0xf]  ;;  %v5192_v46 = vld [vmem:[#allocation2 + $0x8] sm:$0xf0]  ;;  %v4474_v47 = vor.u32 %v5191_v39, %v4471_v40 }
  0x4c   : > { %1826 = vmatmul.bf16.gmra.mxu0 %v4206_v52  ;;  %1846 = vmatmul.bf16.gmra.mxu1 %v4254_v53  ;;  %740 = vst [vmem:[#allocation2 + $0x34] sm:$0xf] %v708_v6  ;;  %v5265_v42 = vld [vmem:[#allocation2 + $0x28] sm:$0xf0]  ;;  %v906_v50 = vshll.u32 %v5178_v48, 16  ;;  %v4470_v51 = vor.u32 %v5192_v46, %v4469_v45  ;;  %v904_v52 = vshrl.u32 %v5178_v48, 16 }
  0x4d   : > { %1866 = vmatmul.bf16.gmra.mxu2 %v4302_v60  ;;  %2653 = vmatpush.bf16.msra.mxu1 %v5262_v4  ;;  %741 = vst [vmem:[#allocation2 + $0x40] sm:$0xf] %v709_v8  ;;  %v1081_v36 = vpack.c.b16 %v1049_v33, %v1049_v33  ;;  %v1082_v37 = vpack.c.b16 %v1050_v34, %v1050_v34  ;;  %v5405_v58 = vld [vmem:[%s6247_s1 + $0x230] sm:$0xff]  ;;  %v713_v60 = vld [vmem:[%s5638_s28 + $0x1c] sm:$0xf]  ;;  %v915_v17 = vrot.slane %v913_v14, 1 }
  0x4e   : > { %3259 = vmatpush.bf16.msra.mxu2 %v5390_v2  ;;  %3348 = vmatpush.bf16.msra.mxu3 %v5398_v3  ;;  %1143 = vst [vmem:[#allocation2 + $0x38] sm:$0xf] %v1079_v15  ;;  %v4190_v49 = vor.u32 %v5265_v42, %v4189_v41  ;;  %v908_v53 = vrot.slane %v906_v50, 1  ;;  %v5194_v4 = vld [vmem:[#allocation2 + $0x1c] sm:$0xf]  ;;  %v4482_v15 = vor.u32 %v5195_v10, %v4481_v9  ;;  %v5388_v42 = vld [vmem:[%s6247_s1 + $0x1a8] sm:$0xff] }
  0x4f   : > { %1886 = vmatmul.bf16.gmra.mxu3 %v4350_v62  ;;  %3437 = vmatpush.bf16.msra.mxu0 %v5406_v5  ;;  %1144 = vst [vmem:[#allocation2 + $0x44] sm:$0xf] %v1080_v16  ;;  %v4483_v5 = vld [vmem:[#allocation2 + $0x24] sm:$0xf0]  ;;  %v911_v16 = vshrl.u32 %v5179_v12, 16 }
  0x50   : > { %742 = vst [vmem:[#allocation2 + $0x4c] sm:$0xf] %v710_v29  ;;  %v909_v57 = vor.u32 %v908_v53, %v904_v52  ;;  %v4486_v11 = vor.u32 %v5194_v4, %v4483_v5  ;;  %v715_v26 = vld [vmem:[%s5638_s28 + $0x24] sm:$0xf]  ;;  %v4493_v32 = vld [vmem:[#allocation2 + $0x30] sm:$0xf] }
  0x51   : > { %743 = vst [vmem:[#allocation2 + $0x58] sm:$0xf] %v711_v30  ;;  %2654 = vmatpush.bf16.msra.mxu1 %v5261_v56  ;;  %v916_v18 = vor.u32 %v915_v17, %v911_v16  ;;  %v5198_v34 = vld [vmem:[#allocation2 + $0x38] sm:$0xf0]  ;;  %v5260_v46 = vld [vmem:[%s6247_s1 + $0xa8] sm:$0xff] }
  0x52   : > { %1145 = vst [vmem:[#allocation2 + $0x50] sm:$0xf] %v1081_v36  ;;  %3260 = vmatpush.bf16.msra.mxu2 %v5389_v54  ;;  %3349 = vmatpush.bf16.msra.mxu3 %v5397_v55  ;;  %v1016_v61 = vsel %vm5818_vm5, %v909_v57, 0  ;;  %v5180_v36 = vld [vmem:[%s5638_s28 + $0x28] sm:$0xff]  ;;  %v4494_v39 = vor.u32 %v5198_v34, %v4493_v32  ;;  %v719_v14 = vld [vmem:[%s5638_s28 + $0x34] sm:$0xf] }
  0x53   : > { %1146 = vst [vmem:[#allocation2 + $0x5c] sm:$0xf] %v1082_v37  ;;  %3438 = vmatpush.bf16.msra.mxu0 %v5405_v58  ;;  %v1051_v62 = vunpack.c.l.b16 %v1016_v61  ;;  %v1052_v63 = vunpack.c.h.b16 %v1016_v61  ;;  %v5266_v0 = vld [vmem:[#allocation2 + $0x34] sm:$0xf]  ;;  %v1017_v19 = vsel %vm5818_vm5, %v916_v18, 0  ;;  %v920_v38 = vshll.u32 %v5180_v36, 16 }
  0x54   : > { %744 = vst [vmem:[#allocation2 + $0x64] sm:$0xf] %v712_v59  ;;  %v4195_v3 = vld [vmem:[#allocation2 + $0x3c] sm:$0xf0]  ;;  %v5197_v23 = vld [vmem:[#allocation2 + $0x34] sm:$0xf] }
  0x55   : > { %745 = vst [vmem:[#allocation2 + $0x70] sm:$0xf] %v713_v60  ;;  %v1083_v1 = vpack.c.b16 %v1051_v62, %v1051_v62  ;;  %v1084_v2 = vpack.c.b16 %v1052_v63, %v1052_v63  ;;  %v4201_v6 = vld [vmem:[#allocation2 + $0x38] sm:$0xf]  ;;  %v4198_v8 = vor.u32 %v5266_v0, %v4195_v3  ;;  %v4495_v29 = vld [vmem:[#allocation2 + $0x3c] sm:$0xf0]  ;;  %2655 = vmatpush.bf16.msra.mxu1 %v5260_v46 }
  0x56   : > { %v5268_v7 = vld [vmem:[#allocation2 + $0x40] sm:$0xf0]  ;;  %747 = vst [vmem:[#allocation2 + $0x88] sm:$0xf] %v715_v26  ;;  %v4498_v35 = vor.u32 %v5197_v23, %v4495_v29  ;;  %v918_v40 = vshrl.u32 %v5180_v36, 16  ;;  %v922_v41 = vrot.slane %v920_v38, 1  ;;  %3261 = vmatpush.bf16.msra.mxu2 %v5388_v42 }
  0x57   : > { %1147 = vst [vmem:[#allocation2 + $0x68] sm:$0xf] %v1083_v1  ;;  %v4202_v13 = vor.u32 %v5268_v7, %v4201_v6  ;;  %v5269_v22 = vld [vmem:[#allocation2 + $0x4c] sm:$0xf]  ;;  %v716_v53 = vld [vmem:[%s5638_s28 + $0x28] sm:$0xf] }
  0x58   : > { %1148 = vst [vmem:[#allocation2 + $0x74] sm:$0xf] %v1084_v2  ;;  %v4207_v24 = vld [vmem:[#allocation2 + $0x54] sm:$0xf0]  ;;  %v923_v45 = vor.u32 %v922_v41, %v918_v40  ;;  %v717_v54 = vld [vmem:[%s5638_s28 + $0x2c] sm:$0xf] }
  0x59   : > { %v4213_v30 = vld [vmem:[#allocation2 + $0x50] sm:$0xf]  ;;  %v4210_v33 = vor.u32 %v5269_v22, %v4207_v24  ;;  %v5200_v55 = vld [vmem:[#allocation2 + $0x4c] sm:$0xf]  ;;  %v4507_v56 = vld [vmem:[#allocation2 + $0x54] sm:$0xf0] }
  0x5a   : > { %v5271_v31 = vld [vmem:[#allocation2 + $0x58] sm:$0xf0]  ;;  %v1018_v48 = vsel %vm5818_vm5, %v923_v45, 0  ;;  %748 = vst [vmem:[#allocation2 + $0x94] sm:$0xf] %v716_v53  ;;  %v4510_v0 = vor.u32 %v5200_v55, %v4507_v56  ;;  %v5181_v1 = vld [vmem:[%s5638_s28 + $0x30] sm:$0xff] }
  0x5b   : > { %v4214_v37 = vor.u32 %v5271_v31, %v4213_v30  ;;  %v1055_v50 = vunpack.c.l.b16 %v1018_v48  ;;  %749 = vst [vmem:[#allocation2 + $0xa0] sm:$0xf] %v717_v54  ;;  %v4505_v61 = vld [vmem:[#allocation2 + $0x48] sm:$0xf]  ;;  %v5201_v63 = vld [vmem:[#allocation2 + $0x50] sm:$0xf0] }
  0x5c   : > { %1831 = vmatmul.bf16.gmra.mxu0 %v4218_v20  ;;  %1851 = vmatmul.bf16.gmra.mxu1 %v4266_v21  ;;  %v1053_v20 = vunpack.c.l.b16 %v1017_v19  ;;  %v1054_v21 = vunpack.c.h.b16 %v1017_v19  ;;  %v4219_v52 = vld [vmem:[#allocation2 + $0x6c] sm:$0xf0]  ;;  %v927_v3 = vshll.u32 %v5181_v1, 16  ;;  %v4506_v4 = vor.u32 %v5201_v63, %v4505_v61  ;;  %751 = vst [vmem:[#allocation2 + $0xb8] sm:$0xf] %v719_v14  ;;  %v5182_v26 = vld [vmem:[%s5638_s28 + $0x38] sm:$0xff] }
  0x5d   : > { %1871 = vmatmul.bf16.gmra.mxu2 %v4314_v25  ;;  %v714_v25 = vld [vmem:[%s5638_s28 + $0x20] sm:$0xf]  ;;  %v1087_v57 = vpack.c.b16 %v1055_v50, %v1055_v50  ;;  %v925_v5 = vshrl.u32 %v5181_v1, 16  ;;  %v4231_v12 = vld [vmem:[#allocation2 + $0x84] sm:$0xf0]  ;;  %v934_v29 = vshll.u32 %v5182_v26, 16 }
  0x5e   : > { %v1086_v28 = vpack.c.b16 %v1054_v21, %v1054_v21  ;;  %746 = vst [vmem:[#allocation2 + $0x7c] sm:$0xf] %v714_v25  ;;  %v4225_v59 = vld [vmem:[#allocation2 + $0x68] sm:$0xf]  ;;  %v929_v6 = vrot.slane %v927_v3, 1  ;;  %v932_v31 = vshrl.u32 %v5182_v26, 16 }
  0x5f   : > { %1891 = vmatmul.bf16.gmra.mxu3 %v4362_v27  ;;  %v1085_v27 = vpack.c.b16 %v1053_v20, %v1053_v20  ;;  %v5274_v60 = vld [vmem:[#allocation2 + $0x70] sm:$0xf0]  ;;  %1151 = vst [vmem:[#allocation2 + $0x98] sm:$0xf] %v1087_v57  ;;  %v4519_v16 = vld [vmem:[#allocation2 + $0x6c] sm:$0xf0] }
  0x60   : > { %1150 = vst [vmem:[#allocation2 + $0x8c] sm:$0xf] %v1086_v28  ;;  %v4226_v2 = vor.u32 %v5274_v60, %v4225_v59  ;;  %v930_v7 = vor.u32 %v929_v6, %v925_v5  ;;  %v4517_v21 = vld [vmem:[#allocation2 + $0x60] sm:$0xf]  ;;  %v5204_v24 = vld [vmem:[#allocation2 + $0x68] sm:$0xf0] }
  0x61   : > { %1149 = vst [vmem:[#allocation2 + $0x80] sm:$0xf] %v1085_v27  ;;  %v4518_v30 = vor.u32 %v5204_v24, %v4517_v21  ;;  %v936_v32 = vrot.slane %v934_v29, 1  ;;  %v5395_v34 = vld [vmem:[%s6247_s1 + $0x1e0] sm:$0xff]  ;;  %v4529_v56 = vld [vmem:[#allocation2 + $0x78] sm:$0xf] }
  0x62   : > { %v5259_v40 = vld [vmem:[%s6247_s1 + $0xa0] sm:$0xff]  ;;  %v5210_v29 = vld [vmem:[#allocation2 + $0x98] sm:$0xf0] }
  0x63   : > { %v937_v36 = vor.u32 %v936_v32, %v932_v31  ;;  %v5403_v41 = vld [vmem:[%s6247_s1 + $0x220] sm:$0xff]  ;;  %2656 = vmatpush.bf16.msra.mxu1 %v5259_v40  ;;  %v5184_v31 = vld [vmem:[%s5638_s28 + $0x48] sm:$0xff] }
  0x64   : > { %v5207_v59 = vld [vmem:[#allocation2 + $0x80] sm:$0xf0]  ;;  %v948_v40 = vshll.u32 %v5184_v31, 16 }
  0x65   : > { %v5275_v9 = vld [vmem:[#allocation2 + $0x7c] sm:$0xf]  ;;  %v1020_v42 = vsel %vm5818_vm5, %v937_v36, 0  ;;  %v5183_v61 = vld [vmem:[%s5638_s28 + $0x40] sm:$0xff]  ;;  %v4530_v3 = vor.u32 %v5207_v59, %v4529_v56 }
  0x66   : > { %v4234_v22 = vor.u32 %v5275_v9, %v4231_v12  ;;  %v1059_v45 = vunpack.c.l.b16 %v1020_v42  ;;  %v1060_v46 = vunpack.c.h.b16 %v1020_v42  ;;  %v5206_v50 = vld [vmem:[#allocation2 + $0x7c] sm:$0xf]  ;;  %v4249_v54 = vld [vmem:[#allocation2 + $0x98] sm:$0xf]  ;;  %v946_v42 = vshrl.u32 %v5184_v31, 16 }
  0x67   : > { %v5277_v20 = vld [vmem:[#allocation2 + $0x88] sm:$0xf0] }
  0x68   : > { %v4237_v19 = vld [vmem:[#allocation2 + $0x80] sm:$0xf]  ;;  %v1092_v53 = vpack.c.b16 %v1060_v46, %v1060_v46  ;;  %v5394_v46 = vld [vmem:[%s6247_s1 + $0x1d8] sm:$0xff] }
  0x69   : > { %v4238_v23 = vor.u32 %v5277_v20, %v4237_v19  ;;  %v4543_v19 = vld [vmem:[#allocation2 + $0x9c] sm:$0xf0] }
  0x6a   : > { %1156 = vst [vmem:[#allocation2 + $0xd4] sm:$0xf] %v1092_v53 }
  0x6c   : > { %1905 = vmatmul.bf16.vlgmr.msrb.gmra.mxu1 %v4186_v43  ;;  %2572 = vmatmul.bf16.vlgmr.msrb.gmra.mxu0 %v4474_v47  ;;  %v5396_v43 = vld [vmem:[%s6247_s1 + $0x1e8] sm:$0xff] }
  0x6d   : > { %1994 = vmatmul.bf16.vlgmr.msrb.gmra.mxu2 %v4190_v49  ;;  %3350 = vmatpush.bf16.msra.mxu3 %v5396_v43  ;;  %v5404_v47 = vld [vmem:[%s6247_s1 + $0x228] sm:$0xff]  ;;  %v5272_v49 = vld [vmem:[#allocation2 + $0x64] sm:$0xf]  ;;  %v5278_v43 = vld [vmem:[#allocation2 + $0x94] sm:$0xf] }
  0x6e   : > { %3439 = vmatpush.bf16.msra.mxu0 %v5404_v47  ;;  %v4222_v62 = vor.u32 %v5272_v49, %v4219_v52  ;;  %v4243_v47 = vld [vmem:[#allocation2 + $0x9c] sm:$0xf0]  ;;  %v721_v49 = vld [vmem:[%s5638_s28 + $0x3c] sm:$0xf]  ;;  %v1091_v52 = vpack.c.b16 %v1059_v45, %v1059_v45 }
  0x6f   : > { %2483 = vmatmul.bf16.vlgmr.msrb.gmra.mxu3 %v4470_v51  ;;  %v1056_v51 = vunpack.c.h.b16 %v1018_v48  ;;  %v720_v48 = vld [vmem:[%s5638_s28 + $0x38] sm:$0xf]  ;;  %753 = vst [vmem:[#allocation2 + $0xd0] sm:$0xf] %v721_v49 }
  0x70   : > { %752 = vst [vmem:[#allocation2 + $0xc4] sm:$0xf] %v720_v48  ;;  %v5386_v45 = vld [vmem:[%s6247_s1 + $0x198] sm:$0xff] }
  0x71   : > { %v1088_v58 = vpack.c.b16 %v1056_v51, %v1056_v51  ;;  %3351 = vmatpush.bf16.msra.mxu3 %v5395_v34  ;;  %v4531_v51 = vld [vmem:[#allocation2 + $0x84] sm:$0xf0]  ;;  %1155 = vst [vmem:[#allocation2 + $0xc8] sm:$0xf] %v1091_v52 }
  0x72   : > { %3440 = vmatpush.bf16.msra.mxu0 %v5403_v41  ;;  %v4534_v60 = vor.u32 %v5206_v50, %v4531_v51 }
  0x73   : > { %1152 = vst [vmem:[#allocation2 + $0xa4] sm:$0xf] %v1088_v58  ;;  %v4246_v58 = vor.u32 %v5278_v43, %v4243_v47  ;;  %v950_v43 = vrot.slane %v948_v40, 1 }
  0x75   : > { %v951_v48 = vor.u32 %v950_v43, %v946_v42  ;;  %3352 = vmatpush.bf16.msra.mxu3 %v5394_v46  ;;  %v726_v46 = vld [vmem:[%s5638_s28 + $0x50] sm:$0xf] }
  0x76   : > { %v4267_v59 = vld [vmem:[#allocation2 + $0xcc] sm:$0xf0]  ;;  %758 = vst [vmem:[#allocation2 + $0x10c] sm:$0xf] %v726_v46 }
  0x77   : > { %v1022_v52 = vsel %vm5818_vm5, %v951_v48, 0  ;;  %v5284_v53 = vld [vmem:[#allocation2 + $0xc4] sm:$0xf]  ;;  %v727_v48 = vld [vmem:[%s5638_s28 + $0x54] sm:$0xf] }
  0x78   : > { %v1063_v56 = vunpack.c.l.b16 %v1022_v52  ;;  %759 = vst [vmem:[#allocation2 + $0x118] sm:$0xf] %v727_v48  ;;  %v5257_v48 = vld [vmem:[%s6247_s1 + $0x90] sm:$0xff] }
  0x7a   : > { %v5280_v55 = vld [vmem:[#allocation2 + $0xa0] sm:$0xf0] }
  0x7c   : > { %1910 = vmatmul.bf16.gmra.mxu1 %v4198_v8  ;;  %2577 = vmatmul.bf16.gmra.mxu0 %v4486_v11  ;;  %v1019_v8 = vsel %vm5818_vm5, %v930_v7, 0 }
  0x7d   : > { %1999 = vmatmul.bf16.gmra.mxu2 %v4202_v13  ;;  %v1057_v10 = vunpack.c.l.b16 %v1019_v8  ;;  %v1058_v11 = vunpack.c.h.b16 %v1019_v8  ;;  %v718_v13 = vld [vmem:[%s5638_s28 + $0x30] sm:$0xf] }
  0x7e   : > { %750 = vst [vmem:[#allocation2 + $0xac] sm:$0xf] %v718_v13 }
  0x7f   : > { %2488 = vmatmul.bf16.gmra.mxu3 %v4482_v15  ;;  %v5203_v15 = vld [vmem:[#allocation2 + $0x64] sm:$0xf]  ;;  %v1089_v17 = vpack.c.b16 %v1057_v10, %v1057_v10  ;;  %v1090_v18 = vpack.c.b16 %v1058_v11, %v1058_v11 }
  0x80   : > { %v4522_v25 = vor.u32 %v5203_v15, %v4519_v16  ;;  %v4255_v15 = vld [vmem:[#allocation2 + $0xb4] sm:$0xf0]  ;;  %v722_v16 = vld [vmem:[%s5638_s28 + $0x40] sm:$0xf] }
  0x81   : > { %1153 = vst [vmem:[#allocation2 + $0xb0] sm:$0xf] %v1089_v17  ;;  %v723_v17 = vld [vmem:[%s5638_s28 + $0x44] sm:$0xf] }
  0x82   : > { %1154 = vst [vmem:[#allocation2 + $0xbc] sm:$0xf] %v1090_v18  ;;  %v5209_v18 = vld [vmem:[#allocation2 + $0x94] sm:$0xf] }
  0x83   : > { %754 = vst [vmem:[#allocation2 + $0xdc] sm:$0xf] %v722_v16  ;;  %v5185_v16 = vld [vmem:[%s5638_s28 + $0x50] sm:$0xff] }
  0x84   : > { %755 = vst [vmem:[#allocation2 + $0xe8] sm:$0xf] %v723_v17 }
  0x85   : > { %v5281_v12 = vld [vmem:[#allocation2 + $0xac] sm:$0xf] }
  0x89   : > { %v5283_v24 = vld [vmem:[#allocation2 + $0xb8] sm:$0xf0] }
  0x8c   : > { %1915 = vmatmul.bf16.gmra.mxu1 %v4210_v33  ;;  %2582 = vmatmul.bf16.gmra.mxu0 %v4498_v35  ;;  %v5387_v33 = vld [vmem:[%s6247_s1 + $0x1a0] sm:$0xff] }
  0x8d   : > { %2004 = vmatmul.bf16.gmra.mxu2 %v4214_v37 }
  0x8e   : > { %3262 = vmatpush.bf16.msra.mxu2 %v5387_v33 }
  0x8f   : > { %2493 = vmatmul.bf16.gmra.mxu3 %v4494_v39 }
  0x92   : > { %3263 = vmatpush.bf16.msra.mxu2 %v5386_v45  ;;  %v4279_v45 = vld [vmem:[#allocation2 + $0xe4] sm:$0xf0] }
  0x9c   : > { %1920 = vmatmul.bf16.gmra.mxu1 %v4222_v62  ;;  %2587 = vmatmul.bf16.gmra.mxu0 %v4510_v0  ;;  %v4250_v0 = vor.u32 %v5280_v55, %v4249_v54  ;;  %v5258_v54 = vld [vmem:[%s6247_s1 + $0x98] sm:$0xff] }
  0x9d   : > { %2009 = vmatmul.bf16.gmra.mxu2 %v4226_v2  ;;  %v941_v2 = vshll.u32 %v5183_v61, 16  ;;  %v5402_v55 = vld [vmem:[%s6247_s1 + $0x218] sm:$0xff]  ;;  %2657 = vmatpush.bf16.msra.mxu1 %v5258_v54 }
  0x9e   : > { %3441 = vmatpush.bf16.msra.mxu0 %v5402_v55 }
  0x9f   : > { %2498 = vmatmul.bf16.gmra.mxu3 %v4506_v4  ;;  %v939_v4 = vshrl.u32 %v5183_v61, 16  ;;  %v943_v5 = vrot.slane %v941_v2, 1  ;;  %v725_v61 = vld [vmem:[%s5638_s28 + $0x4c] sm:$0xf]  ;;  %v4555_v2 = vld [vmem:[#allocation2 + $0xb4] sm:$0xf0] }
  0xa0   : > { %757 = vst [vmem:[#allocation2 + $0x100] sm:$0xf] %v725_v61 }
  0xa1   : > { %v944_v7 = vor.u32 %v943_v5, %v939_v4  ;;  %v4273_v5 = vld [vmem:[#allocation2 + $0xc8] sm:$0xf]  ;;  %2658 = vmatpush.bf16.msra.mxu1 %v5257_v48 }
  0xa3   : > { %v1021_v11 = vsel %vm5818_vm5, %v944_v7, 0  ;;  %v5286_v7 = vld [vmem:[#allocation2 + $0xd0] sm:$0xf0] }
  0xa4   : > { %v1061_v13 = vunpack.c.l.b16 %v1021_v11  ;;  %v1062_v14 = vunpack.c.h.b16 %v1021_v11  ;;  %v4553_v11 = vld [vmem:[#allocation2 + $0xa8] sm:$0xf] }
  0xa6   : > { %v1093_v20 = vpack.c.b16 %v1061_v13, %v1061_v13  ;;  %v1094_v21 = vpack.c.b16 %v1062_v14, %v1062_v14  ;;  %v4270_v13 = vor.u32 %v5284_v53, %v4267_v59  ;;  %v5213_v14 = vld [vmem:[#allocation2 + $0xb0] sm:$0xf0]  ;;  %v4567_v53 = vld [vmem:[#allocation2 + $0xcc] sm:$0xf0]  ;;  %v4565_v59 = vld [vmem:[#allocation2 + $0xc0] sm:$0xf] }
  0xa8   : > { %1157 = vst [vmem:[#allocation2 + $0xe0] sm:$0xf] %v1093_v20 }
  0xa9   : > { %v5900_v27 = vpop.f32.mrf.mxu0  ;;  %v5902_v28 = vpop.f32.mrf.mxu1  ;;  %1158 = vst [vmem:[#allocation2 + $0xec] sm:$0xf] %v1094_v21  ;;  %v955_v21 = vshll.u32 %v5185_v16, 16 }
  0xac   : > { %1925 = vmatmul.bf16.gmra.mxu1 %v4234_v22  ;;  %2592 = vmatmul.bf16.gmra.mxu0 %v4522_v25  ;;  %v4261_v22 = vld [vmem:[#allocation2 + $0xb0] sm:$0xf] }
  0xad   : > { %2014 = vmatmul.bf16.gmra.mxu2 %v4238_v23  ;;  %v4541_v25 = vld [vmem:[#allocation2 + $0x90] sm:$0xf]  ;;  %v4258_v23 = vor.u32 %v5281_v12, %v4255_v15  ;;  %v4262_v34 = vor.u32 %v5283_v24, %v4261_v22  ;;  %v4554_v22 = vor.u32 %v5213_v14, %v4553_v11  ;;  %v953_v24 = vshrl.u32 %v5185_v16, 16 }
  0xae   : > { %v4542_v41 = vor.u32 %v5210_v29, %v4541_v25  ;;  %v957_v25 = vrot.slane %v955_v21, 1  ;;  %v5385_v21 = vld [vmem:[%s6247_s1 + $0x190] sm:$0xff] }
  0xaf   : > { %2503 = vmatmul.bf16.gmra.mxu3 %v4518_v30  ;;  %v4546_v30 = vor.u32 %v5209_v18, %v4543_v19  ;;  %v4274_v19 = vor.u32 %v5286_v7, %v4273_v5  ;;  %3264 = vmatpush.bf16.msra.mxu2 %v5385_v21 }
  0xb0   : > { %v5910_v35 = vpop.f32.mrf.mxu2  ;;  %v958_v29 = vor.u32 %v957_v25, %v953_v24 }
  0xb1   : > { %v5912_v37 = vpop.f32.mrf.mxu0  ;;  %v5914_v38 = vpop.f32.mrf.mxu1 }
  0xb2   : > { %v5916_v39 = vpop.f32.mrf.mxu3  ;;  %v1023_v40 = vsel %vm5818_vm5, %v958_v29, 0 }
  0xb3   : > { %v1065_v42 = vunpack.c.l.b16 %v1023_v40  ;;  %v1066_v43 = vunpack.c.h.b16 %v1023_v40 }
  0xb5   : > { %v1097_v54 = vpack.c.b16 %v1065_v42, %v1065_v42  ;;  %v1098_v55 = vpack.c.b16 %v1066_v43, %v1066_v43 }
  0xb7   : > { %1161 = vst [vmem:[#allocation2 + $0x110] sm:$0xf] %v1097_v54 }
  0xb8   : > { %v5928_v57 = vpop.f32.mrf.mxu2  ;;  %1162 = vst [vmem:[#allocation2 + $0x11c] sm:$0xf] %v1098_v55  ;;  %v4291_v55 = vld [vmem:[#allocation2 + $0xfc] sm:$0xf0] }
  0xb9   : > { %v5931_v62 = vpop.f32.mrf.mxu0  ;;  %v5933_v63 = vpop.f32.mrf.mxu1 }
  0xba   : > { %v5935_v1 = vpop.f32.mrf.mxu3 }
  0xbc   : > { %1930 = vmatmul.bf16.gmra.mxu1 %v4246_v58  ;;  %2597 = vmatmul.bf16.gmra.mxu0 %v4534_v60  ;;  %v1064_v58 = vunpack.c.h.b16 %v1022_v52  ;;  %v724_v60 = vld [vmem:[%s5638_s28 + $0x48] sm:$0xf]  ;;  %v5215_v52 = vld [vmem:[#allocation2 + $0xc4] sm:$0xf] }
  0xbd   : > { %2019 = vmatmul.bf16.gmra.mxu2 %v4250_v0  ;;  %v5212_v0 = vld [vmem:[#allocation2 + $0xac] sm:$0xf]  ;;  %756 = vst [vmem:[#allocation2 + $0xf4] sm:$0xf] %v724_v60 }
  0xbe   : > { %v1096_v4 = vpack.c.b16 %v1064_v58, %v1064_v58  ;;  %v4558_v15 = vor.u32 %v5212_v0, %v4555_v2  ;;  %v5289_v58 = vld [vmem:[#allocation2 + $0xe8] sm:$0xf0]  ;;  %v4570_v2 = vor.u32 %v5215_v52, %v4567_v53  ;;  %v5401_v52 = vld [vmem:[%s6247_s1 + $0x210] sm:$0xff] }
  0xbf   : > { %2508 = vmatmul.bf16.gmra.mxu3 %v4530_v3  ;;  %v1095_v3 = vpack.c.b16 %v1063_v56, %v1063_v56  ;;  %v4285_v56 = vld [vmem:[#allocation2 + $0xe0] sm:$0xf]  ;;  %v5216_v0 = vld [vmem:[#allocation2 + $0xc8] sm:$0xf0]  ;;  %3442 = vmatpush.bf16.msra.mxu0 %v5401_v52 }
  0xc0   : > { %v5937_v6 = vpop.f32.mrf.mxu2  ;;  %1160 = vst [vmem:[#allocation2 + $0x104] sm:$0xf] %v1096_v4  ;;  %v4286_v7 = vor.u32 %v5289_v58, %v4285_v56  ;;  %v728_v56 = vld [vmem:[%s5638_s28 + $0x58] sm:$0xf]  ;;  %v729_v58 = vld [vmem:[%s5638_s28 + $0x5c] sm:$0xf] }
  0xc1   : > { %v5939_v8 = vpop.f32.mrf.mxu0  ;;  %v5941_v9 = vpop.f32.mrf.mxu1  ;;  %1159 = vst [vmem:[#allocation2 + $0xf8] sm:$0xf] %v1095_v3  ;;  %v5186_v3 = vld [vmem:[%s5638_s28 + $0x58] sm:$0xff] }
  0xc2   : > { %v5943_v10 = vpop.f32.mrf.mxu3  ;;  %v962_v14 = vshll.u32 %v5186_v3, 16  ;;  %v960_v16 = vshrl.u32 %v5186_v3, 16  ;;  %760 = vst [vmem:[#allocation2 + $0x124] sm:$0xf] %v728_v56 }
  0xc3   : > { %761 = vst [vmem:[#allocation2 + $0x130] sm:$0xf] %v729_v58 }
  0xc4   : > { %v5290_v46 = vld [vmem:[#allocation2 + $0xf4] sm:$0xf] }
  0xc8   : > { %v5949_v26 = vpop.f32.mrf.mxu2  ;;  %v4297_v3 = vld [vmem:[#allocation2 + $0xf8] sm:$0xf] }
  0xc9   : > { %v5952_v32 = vpop.f32.mrf.mxu0  ;;  %v5954_v33 = vpop.f32.mrf.mxu1 }
  0xca   : > { %v5956_v36 = vpop.f32.mrf.mxu3 }
  0xcc   : > { %1935 = vmatmul.bf16.gmra.mxu1 %v4258_v23  ;;  %2602 = vmatmul.bf16.gmra.mxu0 %v4546_v30 }
  0xcd   : > { %2024 = vmatmul.bf16.gmra.mxu2 %v4262_v34 }
  0xcf   : > { %2513 = vmatmul.bf16.gmra.mxu3 %v4542_v41  ;;  %v5287_v41 = vld [vmem:[#allocation2 + $0xdc] sm:$0xf] }
  0xd0   : > { %v5964_v47 = vpop.f32.mrf.mxu2  ;;  %v4282_v61 = vor.u32 %v5287_v41, %v4279_v45 }
  0xd1   : > { %v5966_v49 = vpop.f32.mrf.mxu0  ;;  %v5968_v50 = vpop.f32.mrf.mxu1 }
  0xd2   : > { %v5970_v51 = vpop.f32.mrf.mxu3 }
  0xd8   : > { %v5982_v12 = vpop.f32.mrf.mxu2 }
  0xd9   : > { %v5985_v17 = vpop.f32.mrf.mxu0  ;;  %v5987_v18 = vpop.f32.mrf.mxu1 }
  0xda   : > { %v5989_v20 = vpop.f32.mrf.mxu3 }
  0xdc   : > { %1940 = vmatmul.bf16.gmra.mxu1 %v4270_v13  ;;  %2607 = vmatmul.bf16.gmra.mxu0 %v4558_v15  ;;  %v4566_v15 = vor.u32 %v5216_v0, %v4565_v59  ;;  %v5218_v59 = vld [vmem:[#allocation2 + $0xdc] sm:$0xf] }
  0xdd   : > { %2029 = vmatmul.bf16.gmra.mxu2 %v4274_v19  ;;  %v964_v19 = vrot.slane %v962_v14, 1  ;;  %v4294_v14 = vor.u32 %v5290_v46, %v4291_v55 }
  0xdf   : > { %2518 = vmatmul.bf16.gmra.mxu3 %v4554_v22  ;;  %v5393_v22 = vld [vmem:[%s6247_s1 + $0x1d0] sm:$0xff]  ;;  %v965_v25 = vor.u32 %v964_v19, %v960_v16  ;;  %v5187_v19 = vld [vmem:[%s5638_s28 + $0x60] sm:$0xff] }
  0xe0   : > { %v5991_v23 = vpop.f32.mrf.mxu2  ;;  %3353 = vmatpush.bf16.msra.mxu3 %v5393_v22  ;;  %v967_v46 = vshrl.u32 %v5187_v19, 16 }
  0xe1   : > { %v5993_v30 = vpop.f32.mrf.mxu0  ;;  %v5995_v31 = vpop.f32.mrf.mxu1  ;;  %v1024_v43 = vsel %vm5818_vm5, %v965_v25, 0 }
  0xe2   : > { %v5997_v34 = vpop.f32.mrf.mxu3  ;;  %v1067_v53 = vunpack.c.l.b16 %v1024_v43  ;;  %v1068_v54 = vunpack.c.h.b16 %v1024_v43 }
  0xe4   : > { %v1100_v0 = vpack.c.b16 %v1068_v54, %v1068_v54 }
  0xe6   : > { %1164 = vst [vmem:[#allocation2 + $0x134] sm:$0xf] %v1100_v0  ;;  %v4303_v0 = vld [vmem:[#allocation2 + $0x114] sm:$0xf0] }
  0xe8   : > { %v6003_v60 = vpop.f32.mrf.mxu2 }
  0xe9   : > { %v1906_v4 = vpop.f32.mrf.mxu1  ;;  %v2573_v5 = vpop.f32.mrf.mxu0 }
  0xea   : > { %v6006_v11 = vpop.f32.mrf.mxu3  ;;  %v1907_v13 = vadd.f32 %v1906_v4, %v5900_v27  ;;  %v5292_v4 = vld [vmem:[#allocation2 + $0x100] sm:$0xf0] }
  0xeb   : > { %v4298_v25 = vor.u32 %v5292_v4, %v4297_v3  ;;  %v730_v3 = vld [vmem:[%s5638_s28 + $0x60] sm:$0xf]  ;;  %v731_v4 = vld [vmem:[%s5638_s28 + $0x64] sm:$0xf] }
  0xec   : > { %1945 = vmatmul.bf16.gmra.mxu1 %v4282_v61  ;;  %2612 = vmatmul.bf16.gmra.mxu0 %v4570_v2  ;;  %v1099_v61 = vpack.c.b16 %v1067_v53, %v1067_v53  ;;  %762 = vst [vmem:[#allocation2 + $0x13c] sm:$0xf] %v730_v3 }
  0xed   : > { %2034 = vmatmul.bf16.gmra.mxu2 %v4286_v7  ;;  %v4577_v7 = vld [vmem:[#allocation2 + $0xd8] sm:$0xf]  ;;  %763 = vst [vmem:[#allocation2 + $0x148] sm:$0xf] %v731_v4 }
  0xee   : > { %1163 = vst [vmem:[#allocation2 + $0x128] sm:$0xf] %v1099_v61 }
  0xef   : > { %2523 = vmatmul.bf16.gmra.mxu3 %v4566_v15  ;;  %v5219_v15 = vld [vmem:[#allocation2 + $0xe0] sm:$0xf0] }
  0xf0   : > { %v1995_v24 = vpop.f32.mrf.mxu2  ;;  %v4578_v43 = vor.u32 %v5219_v15, %v4577_v7  ;;  %v5221_v7 = vld [vmem:[#allocation2 + $0xf4] sm:$0xf] }
  0xf1   : > { %v1996_v27 = vadd.f32 %v1995_v24, %v1907_v13  ;;  %v1908_v29 = vpop.f32.mrf.mxu1  ;;  %v2575_v40 = vpop.f32.mrf.mxu0 }
  0xf2   : > { %v2484_v41 = vpop.f32.mrf.mxu3  ;;  %v1909_v42 = vadd.f32 %v1908_v29, %v5912_v37  ;;  %v4579_v37 = vld [vmem:[#allocation2 + $0xe4] sm:$0xf0] }
  0xf3   : > { %v2485_v45 = vadd.f32 %v2484_v41, %v1996_v27  ;;  %v4582_v16 = vor.u32 %v5218_v59, %v4579_v37  ;;  %v5293_v37 = vld [vmem:[#allocation2 + $0x10c] sm:$0xf] }
  0xf5   : > { %v6026_v2 = vadd.f32 %v2573_v5, %v2485_v45  ;;  %v969_v5 = vshll.u32 %v5187_v19, 16  ;;  %v4309_v19 = vld [vmem:[#allocation2 + $0x110] sm:$0xf] }
  0xf7   : > { %v971_v48 = vrot.slane %v969_v5, 1  ;;  %v5188_v5 = vld [vmem:[%s5638_s28 + $0x68] sm:$0xff] }
  0xf8   : > { %v1997_v13 = vpop.f32.mrf.mxu2 }
  0xf9   : > { %v1998_v21 = vadd.f32 %v1997_v13, %v1909_v42  ;;  %v1911_v22 = vpop.f32.mrf.mxu1  ;;  %v2578_v24 = vpop.f32.mrf.mxu0  ;;  %v972_v52 = vor.u32 %v971_v48, %v967_v46  ;;  %v4591_v13 = vld [vmem:[#allocation2 + $0xfc] sm:$0xf0] }
  0xfa   : > { %v2486_v27 = vpop.f32.mrf.mxu3  ;;  %v1912_v29 = vadd.f32 %v1911_v22, %v5931_v62 }
  0xfb   : > { %v2487_v41 = vadd.f32 %v2486_v27, %v1998_v21  ;;  %v1025_v58 = vsel %vm5818_vm5, %v972_v52, 0  ;;  %v4589_v21 = vld [vmem:[#allocation2 + $0xf0] sm:$0xf]  ;;  %v5222_v27 = vld [vmem:[#allocation2 + $0xf8] sm:$0xf0] }
  0xfc   : > { %1950 = vmatmul.bf16.gmra.mxu1 %v4294_v14  ;;  %2617 = vmatmul.bf16.gmra.mxu0 %v4582_v16  ;;  %v1070_v61 = vunpack.c.h.b16 %v1025_v58 }
  0xfd   : > { %2039 = vmatmul.bf16.gmra.mxu2 %v4298_v25  ;;  %v6030_v45 = vadd.f32 %v2575_v40, %v2487_v41  ;;  %v1069_v40 = vunpack.c.l.b16 %v1025_v58  ;;  %v4306_v25 = vor.u32 %v5293_v37, %v4303_v0  ;;  %v974_v58 = vshrl.u32 %v5188_v5, 16  ;;  %v5392_v37 = vld [vmem:[%s6247_s1 + $0x1c8] sm:$0xff] }
  0xfe   : > { %v1102_v15 = vpack.c.b16 %v1070_v61, %v1070_v61  ;;  %3354 = vmatpush.bf16.msra.mxu3 %v5392_v37 }
  0xff   : > { %2528 = vmatmul.bf16.gmra.mxu3 %v4578_v43  ;;  %v1101_v14 = vpack.c.b16 %v1069_v40, %v1069_v40 }
 0x100   : > { %v2000_v42 = vpop.f32.mrf.mxu2  ;;  %1166 = vst [vmem:[#allocation2 + $0x14c] sm:$0xf] %v1102_v15  ;;  %v5256_v15 = vld [vmem:[%s6247_s1 + $0x88] sm:$0xff] }
 0x101   : > { %v2001_v53 = vadd.f32 %v2000_v42, %v1912_v29  ;;  %v1913_v54 = vpop.f32.mrf.mxu1  ;;  %v2580_v55 = vpop.f32.mrf.mxu0  ;;  %1165 = vst [vmem:[#allocation2 + $0x140] sm:$0xf] %v1101_v14  ;;  %v4594_v29 = vor.u32 %v5221_v7, %v4591_v13  ;;  %v5296_v14 = vld [vmem:[#allocation2 + $0x124] sm:$0xf]  ;;  %2659 = vmatpush.bf16.msra.mxu1 %v5256_v15 }
 0x102   : > { %v2489_v56 = vpop.f32.mrf.mxu3  ;;  %v1914_v62 = vadd.f32 %v1913_v54, %v5939_v8  ;;  %v5295_v8 = vld [vmem:[#allocation2 + $0x118] sm:$0xf0]  ;;  %v4590_v54 = vor.u32 %v5222_v27, %v4589_v21  ;;  %v733_v27 = vld [vmem:[%s5638_s28 + $0x6c] sm:$0xf] }
 0x103   : > { %v2490_v59 = vadd.f32 %v2489_v56, %v2001_v53  ;;  %v4310_v48 = vor.u32 %v5295_v8, %v4309_v19  ;;  %v5400_v19 = vld [vmem:[%s6247_s1 + $0x208] sm:$0xff]  ;;  %765 = vst [vmem:[#allocation2 + $0x160] sm:$0xf] %v733_v27 }
 0x104   : > { %3443 = vmatpush.bf16.msra.mxu0 %v5400_v19 }
 0x105   : > { %v6037_v16 = vadd.f32 %v2578_v24, %v2490_v59  ;;  %v976_v24 = vshll.u32 %v5188_v5, 16 }
 0x107   : > { %v978_v59 = vrot.slane %v976_v24, 1 }
 0x108   : > { %v2002_v22 = vpop.f32.mrf.mxu2 }
 0x109   : > { %v2003_v41 = vadd.f32 %v2002_v22, %v1914_v62  ;;  %v1916_v43 = vpop.f32.mrf.mxu1  ;;  %v2583_v46 = vpop.f32.mrf.mxu0  ;;  %v5384_v62 = vld [vmem:[%s6247_s1 + $0x188] sm:$0xff]  ;;  %v979_v40 = vor.u32 %v978_v59, %v974_v58  ;;  %v4315_v22 = vld [vmem:[#allocation2 + $0x12c] sm:$0xf0] }
 0x10a   : > { %v2491_v42 = vpop.f32.mrf.mxu3  ;;  %v1917_v52 = vadd.f32 %v1916_v43, %v5952_v32  ;;  %3265 = vmatpush.bf16.msra.mxu2 %v5384_v62  ;;  %v5189_v59 = vld [vmem:[%s5638_s28 + $0x70] sm:$0xff] }
 0x10b   : > { %v2492_v53 = vadd.f32 %v2491_v42, %v2003_v41  ;;  %v1026_v7 = vsel %vm5818_vm5, %v979_v40, 0  ;;  %v5298_v42 = vld [vmem:[#allocation2 + $0x130] sm:$0xf0] }
 0x10c   : > { %1955 = vmatmul.bf16.gmra.mxu1 %v4306_v25  ;;  %2622 = vmatmul.bf16.gmra.mxu0 %v4594_v29  ;;  %v1071_v8 = vunpack.c.l.b16 %v1026_v7  ;;  %v1072_v21 = vunpack.c.h.b16 %v1026_v7  ;;  %v732_v25 = vld [vmem:[%s5638_s28 + $0x68] sm:$0xf]  ;;  %v5224_v29 = vld [vmem:[#allocation2 + $0x10c] sm:$0xf] }
 0x10d   : > { %2044 = vmatmul.bf16.gmra.mxu2 %v4310_v48  ;;  %v6041_v56 = vadd.f32 %v2580_v55, %v2492_v53  ;;  %764 = vst [vmem:[#allocation2 + $0x154] sm:$0xf] %v732_v25  ;;  %v4321_v48 = vld [vmem:[#allocation2 + $0x128] sm:$0xf]  ;;  %v4318_v53 = vor.u32 %v5296_v14, %v4315_v22  ;;  %v981_v14 = vshrl.u32 %v5189_v59, 16 }
 0x10e   : > { %v1103_v5 = vpack.c.b16 %v1071_v8, %v1071_v8  ;;  %v1104_v41 = vpack.c.b16 %v1072_v21, %v1072_v21  ;;  %v4322_v40 = vor.u32 %v5298_v42, %v4321_v48  ;;  %v734_v48 = vld [vmem:[%s5638_s28 + $0x70] sm:$0xf]  ;;  %v735_v42 = vld [vmem:[%s5638_s28 + $0x74] sm:$0xf] }
 0x10f   : > { %2533 = vmatmul.bf16.gmra.mxu3 %v4590_v54  ;;  %v5225_v54 = vld [vmem:[#allocation2 + $0x110] sm:$0xf0]  ;;  %766 = vst [vmem:[#allocation2 + $0x16c] sm:$0xf] %v734_v48 }
 0x110   : > { %v2005_v32 = vpop.f32.mrf.mxu2  ;;  %1167 = vst [vmem:[#allocation2 + $0x158] sm:$0xf] %v1103_v5 }
 0x111   : > { %v2006_v61 = vadd.f32 %v2005_v32, %v1917_v52  ;;  %v1918_v0 = vpop.f32.mrf.mxu1  ;;  %v2585_v3 = vpop.f32.mrf.mxu0  ;;  %v4601_v52 = vld [vmem:[#allocation2 + $0x108] sm:$0xf]  ;;  %1168 = vst [vmem:[#allocation2 + $0x164] sm:$0xf] %v1104_v41 }
 0x112   : > { %v2494_v55 = vpop.f32.mrf.mxu3  ;;  %v1919_v4 = vadd.f32 %v1918_v0, %v5966_v49  ;;  %v4603_v49 = vld [vmem:[#allocation2 + $0x114] sm:$0xf0]  ;;  %v4602_v7 = vor.u32 %v5225_v54, %v4601_v52  ;;  %v4327_v41 = vld [vmem:[#allocation2 + $0x144] sm:$0xf0]  ;;  %v5227_v52 = vld [vmem:[#allocation2 + $0x124] sm:$0xf] }
 0x113   : > { %v2495_v13 = vadd.f32 %v2494_v55, %v2006_v61  ;;  %v4606_v58 = vor.u32 %v5224_v29, %v4603_v49  ;;  %v5299_v49 = vld [vmem:[#allocation2 + $0x13c] sm:$0xf]  ;;  %767 = vst [vmem:[#allocation2 + $0x178] sm:$0xf] %v735_v42 }
 0x115   : > { %v6060_v43 = vadd.f32 %v2583_v46, %v2495_v13  ;;  %v983_v46 = vshll.u32 %v5189_v59, 16  ;;  %v4333_v59 = vld [vmem:[#allocation2 + $0x140] sm:$0xf] }
 0x117   : > { %v985_v15 = vrot.slane %v983_v46, 1  ;;  %v5190_v46 = vld [vmem:[%s5638_s28 + $0x78] sm:$0xff] }
 0x118   : > { %v2007_v24 = vpop.f32.mrf.mxu2 }
 0x119   : > { %v2008_v62 = vadd.f32 %v2007_v24, %v1919_v4  ;;  %v1921_v37 = vpop.f32.mrf.mxu1  ;;  %v2588_v32 = vpop.f32.mrf.mxu0  ;;  %v986_v19 = vor.u32 %v985_v15, %v981_v14  ;;  %v4615_v24 = vld [vmem:[#allocation2 + $0x12c] sm:$0xf0] }
 0x11a   : > { %v2496_v61 = vpop.f32.mrf.mxu3  ;;  %v1922_v0 = vadd.f32 %v1921_v37, %v5985_v17 }
 0x11b   : > { %v2497_v55 = vadd.f32 %v2496_v61, %v2008_v62  ;;  %v1027_v27 = vsel %vm5818_vm5, %v986_v19, 0  ;;  %v4613_v62 = vld [vmem:[#allocation2 + $0x120] sm:$0xf]  ;;  %v5228_v61 = vld [vmem:[#allocation2 + $0x128] sm:$0xf0]  ;;  %v990_v19 = vshll.u32 %v5190_v46, 16 }
 0x11c   : > { %1960 = vmatmul.bf16.gmra.mxu1 %v4318_v53  ;;  %2627 = vmatmul.bf16.gmra.mxu0 %v4606_v58  ;;  %v1074_v5 = vunpack.c.h.b16 %v1027_v27 }
 0x11d   : > { %2049 = vmatmul.bf16.gmra.mxu2 %v4322_v40  ;;  %v6064_v13 = vadd.f32 %v2585_v3, %v2497_v55  ;;  %v1073_v3 = vunpack.c.l.b16 %v1027_v27  ;;  %v4330_v40 = vor.u32 %v5299_v49, %v4327_v41  ;;  %v992_v27 = vrot.slane %v990_v19, 1  ;;  %v5391_v49 = vld [vmem:[%s6247_s1 + $0x1c0] sm:$0xff] }
 0x11e   : > { %v1106_v54 = vpack.c.b16 %v1074_v5, %v1074_v5  ;;  %3355 = vmatpush.bf16.msra.mxu3 %v5391_v49 }
 0x11f   : > { %2538 = vmatmul.bf16.gmra.mxu3 %v4602_v7  ;;  %v1105_v53 = vpack.c.b16 %v1073_v3, %v1073_v3 }
 0x120   : > { %v2010_v4 = vpop.f32.mrf.mxu2  ;;  %1170 = vst [vmem:[#allocation2 + $0x17c] sm:$0xf] %v1106_v54  ;;  %v5399_v54 = vld [vmem:[%s6247_s1 + $0x200] sm:$0xff] }
 0x121   : > { %v2011_v8 = vadd.f32 %v2010_v4, %v1922_v0  ;;  %v1923_v21 = vpop.f32.mrf.mxu1  ;;  %v2590_v22 = vpop.f32.mrf.mxu0  ;;  %1169 = vst [vmem:[#allocation2 + $0x170] sm:$0xf] %v1105_v53  ;;  %v4618_v0 = vor.u32 %v5227_v52, %v4615_v24  ;;  %v5302_v24 = vld [vmem:[#allocation2 + $0x154] sm:$0xf]  ;;  %v5255_v53 = vld [vmem:[%s6247_s1 + $0x80] sm:$0xff]  ;;  %3444 = vmatpush.bf16.msra.mxu0 %v5399_v54 }
 0x122   : > { %v2499_v25 = vpop.f32.mrf.mxu3  ;;  %v1924_v17 = vadd.f32 %v1923_v21, %v5993_v30  ;;  %v5301_v30 = vld [vmem:[#allocation2 + $0x148] sm:$0xf0]  ;;  %2660 = vmatpush.bf16.msra.mxu1 %v5255_v53 }
 0x123   : > { %v2500_v29 = vadd.f32 %v2499_v25, %v2011_v8  ;;  %v4334_v15 = vor.u32 %v5301_v30, %v4333_v59  ;;  %v988_v25 = vshrl.u32 %v5190_v46, 16 }
 0x125   : > { %v6071_v58 = vadd.f32 %v2588_v32, %v2500_v29  ;;  %v4614_v32 = vor.u32 %v5228_v61, %v4613_v62  ;;  %v993_v5 = vor.u32 %v992_v27, %v988_v25  ;;  %v4339_v62 = vld [vmem:[#allocation2 + $0x15c] sm:$0xf0]  ;;  %v5230_v61 = vld [vmem:[#allocation2 + $0x13c] sm:$0xf]  ;;  %v5231_v25 = vld [vmem:[#allocation2 + $0x140] sm:$0xf0] }
 0x128   : > { %v2012_v37 = vpop.f32.mrf.mxu2 }
 0x129   : > { %v2013_v55 = vadd.f32 %v2012_v37, %v1924_v17  ;;  %v1926_v7 = vpop.f32.mrf.mxu1  ;;  %v2593_v14 = vpop.f32.mrf.mxu0  ;;  %v5383_v17 = vld [vmem:[%s6247_s1 + $0x180] sm:$0xff]  ;;  %v736_v37 = vld [vmem:[%s5638_s28 + $0x78] sm:$0xf] }
 0x12a   : > { %v2501_v4 = vpop.f32.mrf.mxu3  ;;  %v1927_v29 = vadd.f32 %v1926_v7, %v5902_v28  ;;  %3266 = vmatpush.bf16.msra.mxu2 %v5383_v17  ;;  %v1028_v28 = vsel %vm5818_vm5, %v993_v5, 0  ;;  %768 = vst [vmem:[#allocation2 + $0x184] sm:$0xf] %v736_v37  ;;  %v4345_v7 = vld [vmem:[#allocation2 + $0x158] sm:$0xf] }
 0x12b   : > { %v2502_v8 = vadd.f32 %v2501_v4, %v2013_v55  ;;  %v1075_v59 = vunpack.c.l.b16 %v1028_v28  ;;  %v1076_v30 = vunpack.c.h.b16 %v1028_v28  ;;  %v4639_v37 = vld [vmem:[#allocation2 + $0x15c] sm:$0xf0] }
 0x12c   : > { %1965 = vmatmul.bf16.gmra.mxu1 %v4330_v40  ;;  %2632 = vmatmul.bf16.gmra.mxu0 %v4618_v0  ;;  %v737_v40 = vld [vmem:[%s5638_s28 + $0x7c] sm:$0xf]  ;;  %v4627_v0 = vld [vmem:[#allocation2 + $0x144] sm:$0xf0] }
 0x12d   : > { %2054 = vmatmul.bf16.gmra.mxu2 %v4334_v15  ;;  %v6074_v21 = vadd.f32 %v2590_v22, %v2502_v8  ;;  %v1107_v44 = vpack.c.b16 %v1075_v59, %v1075_v59  ;;  %v1108_v46 = vpack.c.b16 %v1076_v30, %v1076_v30  ;;  %v5304_v15 = vld [vmem:[#allocation2 + $0x160] sm:$0xf0]  ;;  %769 = vst [vmem:[#allocation2 + $0x190] sm:$0xf] %v737_v40  ;;  %v5305_v59 = vld [vmem:[#allocation2 + $0x16c] sm:$0xf] }
 0x12e   : > { %v4342_v8 = vor.u32 %v5302_v24, %v4339_v62  ;;  %v4630_v27 = vor.u32 %v5230_v61, %v4627_v0  ;;  %v4351_v30 = vld [vmem:[#allocation2 + $0x174] sm:$0xf0]  ;;  %v5233_v62 = vld [vmem:[#allocation2 + $0x154] sm:$0xf]  ;;  %v4357_v61 = vld [vmem:[#allocation2 + $0x170] sm:$0xf] }
 0x12f   : > { %2543 = vmatmul.bf16.gmra.mxu3 %v4614_v32  ;;  %1171 = vst [vmem:[#allocation2 + $0x188] sm:$0xf] %v1107_v44  ;;  %v4625_v32 = vld [vmem:[#allocation2 + $0x138] sm:$0xf]  ;;  %v5307_v0 = vld [vmem:[#allocation2 + $0x178] sm:$0xf0] }
 0x130   : > { %v2015_v3 = vpop.f32.mrf.mxu2  ;;  %1172 = vst [vmem:[#allocation2 + $0x194] sm:$0xf] %v1108_v46  ;;  %v4354_v46 = vor.u32 %v5305_v59, %v4351_v30 }
 0x131   : > { %v2016_v41 = vadd.f32 %v2015_v3, %v1927_v29  ;;  %v1928_v22 = vpop.f32.mrf.mxu1  ;;  %v2595_v48 = vpop.f32.mrf.mxu0  ;;  %v4346_v3 = vor.u32 %v5304_v15, %v4345_v7  ;;  %v5234_v7 = vld [vmem:[#allocation2 + $0x158] sm:$0xf0]  ;;  %v4642_v15 = vor.u32 %v5233_v62, %v4639_v37 }
 0x132   : > { %v2504_v42 = vpop.f32.mrf.mxu3  ;;  %v1929_v4 = vadd.f32 %v1928_v22, %v5914_v38 }
 0x133   : > { %v2505_v52 = vadd.f32 %v2504_v42, %v2016_v41 }
 0x135   : > { %v6093_v55 = vadd.f32 %v2593_v14, %v2505_v52  ;;  %v4626_v14 = vor.u32 %v5231_v25, %v4625_v32  ;;  %v4358_v32 = vor.u32 %v5307_v0, %v4357_v61  ;;  %v5237_v61 = vld [vmem:[#allocation2 + $0x170] sm:$0xf0] }
 0x136   : > { %v4369_v59 = vld [vmem:[#allocation2 + $0x188] sm:$0xf] }
 0x137   : > { %v5310_v30 = vld [vmem:[#allocation2 + $0x190] sm:$0xf0] }
 0x138   : > { %v2017_v19 = vpop.f32.mrf.mxu2 }
 0x139   : > { %v2018_v29 = vadd.f32 %v2017_v19, %v1929_v4  ;;  %v1931_v17 = vpop.f32.mrf.mxu1  ;;  %v2598_v49 = vpop.f32.mrf.mxu0 }
 0x13a   : > { %v2506_v5 = vpop.f32.mrf.mxu3  ;;  %v1932_v38 = vadd.f32 %v1931_v17, %v5933_v63  ;;  %v4637_v63 = vld [vmem:[#allocation2 + $0x150] sm:$0xf] }
 0x13b   : > { %v2507_v41 = vadd.f32 %v2506_v5, %v2018_v29  ;;  %v4638_v29 = vor.u32 %v5234_v7, %v4637_v63  ;;  %v4370_v63 = vor.u32 %v5310_v30, %v4369_v59  ;;  %v4871_v59 = vld [vmem:[#allocation2 + $0x3c] sm:$0xf0] }
 0x13c   : > { %1970 = vmatmul.bf16.gmra.mxu1 %v4342_v8  ;;  %2637 = vmatmul.bf16.gmra.mxu0 %v4630_v27 }
 0x13d   : > { %2059 = vmatmul.bf16.gmra.mxu2 %v4346_v3  ;;  %v6096_v42 = vadd.f32 %v2595_v48, %v2507_v41 }
 0x13f   : > { %2548 = vmatmul.bf16.gmra.mxu3 %v4626_v14 }
 0x140   : > { %v2020_v22 = vpop.f32.mrf.mxu2 }
 0x141   : > { %v2021_v28 = vadd.f32 %v2020_v22, %v1932_v38  ;;  %v1933_v52 = vpop.f32.mrf.mxu1  ;;  %v2600_v24 = vpop.f32.mrf.mxu0  ;;  %v5308_v22 = vld [vmem:[#allocation2 + $0x184] sm:$0xf] }
 0x142   : > { %v2509_v53 = vpop.f32.mrf.mxu3  ;;  %v1934_v48 = vadd.f32 %v1933_v52, %v5941_v9  ;;  %v5236_v52 = vld [vmem:[#allocation2 + $0x16c] sm:$0xf] }
 0x143   : > { %v2510_v54 = vadd.f32 %v2509_v53, %v2021_v28  ;;  %v4363_v28 = vld [vmem:[#allocation2 + $0x18c] sm:$0xf0]  ;;  %v4651_v53 = vld [vmem:[#allocation2 + $0x174] sm:$0xf0] }
 0x144   : > { %v4366_v37 = vor.u32 %v5308_v22, %v4363_v28  ;;  %v4654_v0 = vor.u32 %v5236_v52, %v4651_v53  ;;  %v4869_v22 = vld [vmem:[#allocation2 + $0x30] sm:$0xf]  ;;  %v5336_v28 = vld [vmem:[#allocation2 + $0x38] sm:$0xf0] }
 0x145   : > { %v6099_v40 = vadd.f32 %v2598_v49, %v2510_v54 }
 0x148   : > { %v2022_v44 = vpop.f32.mrf.mxu2 }
 0x149   : > { %v2023_v4 = vadd.f32 %v2022_v44, %v1934_v48  ;;  %v1936_v19 = vpop.f32.mrf.mxu1  ;;  %v2603_v8 = vpop.f32.mrf.mxu0 }
 0x14a   : > { %v2511_v25 = vpop.f32.mrf.mxu3  ;;  %v1937_v49 = vadd.f32 %v1936_v19, %v5954_v33  ;;  %v4649_v33 = vld [vmem:[#allocation2 + $0x168] sm:$0xf] }
 0x14b   : > { %v2512_v27 = vadd.f32 %v2511_v25, %v2023_v4  ;;  %v4650_v4 = vor.u32 %v5237_v61, %v4649_v33  ;;  %v4870_v33 = vor.u32 %v5336_v28, %v4869_v22  ;;  %v4883_v22 = vld [vmem:[#allocation2 + $0x54] sm:$0xf0] }
 0x14c   : > { %1975 = vmatmul.bf16.gmra.mxu1 %v4354_v46  ;;  %2642 = vmatmul.bf16.gmra.mxu0 %v4642_v15 }
 0x14d   : > { %2064 = vmatmul.bf16.gmra.mxu2 %v4358_v32  ;;  %v6102_v17 = vadd.f32 %v2600_v24, %v2512_v27 }
 0x14f   : > { %2553 = vmatmul.bf16.gmra.mxu3 %v4638_v29 }
 0x150   : > { %v2025_v9 = vpop.f32.mrf.mxu2 }
 0x151   : > { %v2026_v3 = vadd.f32 %v2025_v9, %v1937_v49  ;;  %v1938_v5 = vpop.f32.mrf.mxu1  ;;  %v2605_v41 = vpop.f32.mrf.mxu0  ;;  %v4477_v9 = vld [vmem:[#allocation2 + $0x8] sm:$0xf] }
 0x152   : > { %v2514_v14 = vpop.f32.mrf.mxu3  ;;  %v1939_v24 = vadd.f32 %v1938_v5, %v5968_v50  ;;  %v4877_v5 = vld [vmem:[#allocation2 + $0x38] sm:$0xf] }
 0x153   : > { %v2515_v38 = vadd.f32 %v2514_v14, %v2026_v3  ;;  %v5193_v3 = vld [vmem:[#allocation2 + $0x10] sm:$0xf0]  ;;  %v5337_v14 = vld [vmem:[#allocation2 + $0x40] sm:$0xf0] }
 0x154   : > { %v4478_v53 = vor.u32 %v5193_v3, %v4477_v9  ;;  %v4878_v30 = vor.u32 %v5337_v14, %v4877_v5  ;;  %v4881_v9 = vld [vmem:[#allocation2 + $0x48] sm:$0xf]  ;;  %v5339_v3 = vld [vmem:[#allocation2 + $0x50] sm:$0xf0] }
 0x155   : > { %v6105_v54 = vadd.f32 %v2603_v8, %v2515_v38 }
 0x158   : > { %v2027_v62 = vpop.f32.mrf.mxu2 }
 0x159   : > { %v2028_v48 = vadd.f32 %v2027_v62, %v1939_v24  ;;  %v1941_v44 = vpop.f32.mrf.mxu1  ;;  %v2608_v46 = vpop.f32.mrf.mxu0 }
 0x15a   : > { %v2516_v7 = vpop.f32.mrf.mxu3  ;;  %v1942_v8 = vadd.f32 %v1941_v44, %v5987_v18  ;;  %v5335_v18 = vld [vmem:[#allocation2 + $0x34] sm:$0xf] }
 0x15b   : > { %v2517_v15 = vadd.f32 %v2516_v7, %v2028_v48  ;;  %v4874_v48 = vor.u32 %v5335_v18, %v4871_v59  ;;  %v4882_v18 = vor.u32 %v5339_v3, %v4881_v9  ;;  %v4895_v9 = vld [vmem:[#allocation2 + $0x6c] sm:$0xf0] }
 0x15c   : > { %1980 = vmatmul.bf16.gmra.mxu1 %v4366_v37  ;;  %2647 = vmatmul.bf16.gmra.mxu0 %v4654_v0 }
 0x15d   : > { %2069 = vmatmul.bf16.gmra.mxu2 %v4370_v63  ;;  %v6108_v19 = vadd.f32 %v2605_v41, %v2517_v15 }
 0x15f   : > { %2558 = vmatmul.bf16.gmra.mxu3 %v4650_v4 }
 0x160   : > { %v2030_v50 = vpop.f32.mrf.mxu2 }
 0x161   : > { %v2031_v32 = vadd.f32 %v2030_v50, %v1942_v8  ;;  %v1943_v25 = vpop.f32.mrf.mxu1  ;;  %v2610_v27 = vpop.f32.mrf.mxu0  ;;  %v4489_v50 = vld [vmem:[#allocation2 + $0x20] sm:$0xf] }
 0x162   : > { %v2519_v29 = vpop.f32.mrf.mxu3  ;;  %v1944_v41 = vadd.f32 %v1943_v25, %v5995_v31  ;;  %v4889_v25 = vld [vmem:[#allocation2 + $0x50] sm:$0xf] }
 0x163   : > { %v2520_v49 = vadd.f32 %v2519_v29, %v2031_v32  ;;  %v5196_v32 = vld [vmem:[#allocation2 + $0x28] sm:$0xf0]  ;;  %v5340_v29 = vld [vmem:[#allocation2 + $0x58] sm:$0xf0] }
 0x164   : > { %v4490_v14 = vor.u32 %v5196_v32, %v4489_v50  ;;  %v4890_v28 = vor.u32 %v5340_v29, %v4889_v25  ;;  %v4893_v50 = vld [vmem:[#allocation2 + $0x60] sm:$0xf]  ;;  %v5342_v32 = vld [vmem:[#allocation2 + $0x68] sm:$0xf0] }
 0x165   : > { %v6111_v38 = vadd.f32 %v2608_v46, %v2520_v49 }
 0x168   : > { %v2032_v52 = vpop.f32.mrf.mxu2 }
 0x169   : > { %v2033_v24 = vadd.f32 %v2032_v52, %v1944_v41  ;;  %v1946_v62 = vpop.f32.mrf.mxu1  ;;  %v2613_v37 = vpop.f32.mrf.mxu0 }
 0x16a   : > { %v2521_v61 = vpop.f32.mrf.mxu3  ;;  %v1947_v46 = vadd.f32 %v1946_v62, %v5910_v35  ;;  %v5338_v35 = vld [vmem:[#allocation2 + $0x4c] sm:$0xf] }
 0x16b   : > { %v2522_v0 = vadd.f32 %v2521_v61, %v2033_v24  ;;  %v4886_v24 = vor.u32 %v5338_v35, %v4883_v22  ;;  %v4894_v35 = vor.u32 %v5342_v32, %v4893_v50  ;;  %v4907_v50 = vld [vmem:[#allocation2 + $0x84] sm:$0xf0] }
 0x16c   : > { %2661 = vmatmul.bf16.vlgmr.msra.gmra.mxu1 %v4478_v53  ;;  %3445 = vmatmul.bf16.vlgmr.msra.gmra.mxu0 %v4878_v30 }
 0x16d   : > { %3267 = vmatmul.bf16.vlgmr.msra.gmra.mxu2 %v4870_v33  ;;  %v6114_v44 = vadd.f32 %v2610_v27, %v2522_v0 }
 0x16f   : > { %3356 = vmatmul.bf16.vlgmr.msra.gmra.mxu3 %v4874_v48 }
 0x170   : > { %v2035_v31 = vpop.f32.mrf.mxu2 }
 0x171   : > { %v2036_v63 = vadd.f32 %v2035_v31, %v1947_v46  ;;  %v1948_v7 = vpop.f32.mrf.mxu1  ;;  %v2615_v15 = vpop.f32.mrf.mxu0  ;;  %v4501_v31 = vld [vmem:[#allocation2 + $0x38] sm:$0xf] }
 0x172   : > { %v2524_v4 = vpop.f32.mrf.mxu3  ;;  %v1949_v27 = vadd.f32 %v1948_v7, %v5928_v57  ;;  %v4901_v7 = vld [vmem:[#allocation2 + $0x68] sm:$0xf] }
 0x173   : > { %v2525_v8 = vadd.f32 %v2524_v4, %v2036_v63  ;;  %v5199_v63 = vld [vmem:[#allocation2 + $0x40] sm:$0xf0]  ;;  %v5343_v4 = vld [vmem:[#allocation2 + $0x70] sm:$0xf0] }
 0x174   : > { %v4502_v29 = vor.u32 %v5199_v63, %v4501_v31  ;;  %v4902_v3 = vor.u32 %v5343_v4, %v4901_v7  ;;  %v4905_v31 = vld [vmem:[#allocation2 + $0x78] sm:$0xf]  ;;  %v5345_v63 = vld [vmem:[#allocation2 + $0x80] sm:$0xf0] }
 0x175   : > { %v6117_v49 = vadd.f32 %v2613_v37, %v2525_v8 }
 0x178   : > { %v2037_v5 = vpop.f32.mrf.mxu2 }
 0x179   : > { %v2038_v41 = vadd.f32 %v2037_v5, %v1949_v27  ;;  %v1951_v52 = vpop.f32.mrf.mxu1  ;;  %v2618_v53 = vpop.f32.mrf.mxu0 }
 0x17a   : > { %v2526_v59 = vpop.f32.mrf.mxu3  ;;  %v1952_v37 = vadd.f32 %v1951_v52, %v5937_v6  ;;  %v5341_v6 = vld [vmem:[#allocation2 + $0x64] sm:$0xf] }
 0x17b   : > { %v2527_v30 = vadd.f32 %v2526_v59, %v2038_v41  ;;  %v4898_v41 = vor.u32 %v5341_v6, %v4895_v9  ;;  %v4906_v6 = vor.u32 %v5345_v63, %v4905_v31  ;;  %v4919_v31 = vld [vmem:[#allocation2 + $0x9c] sm:$0xf0] }
 0x17c   : > { %2666 = vmatmul.bf16.gmra.mxu1 %v4490_v14  ;;  %3450 = vmatmul.bf16.gmra.mxu0 %v4890_v28 }
 0x17d   : > { %3272 = vmatmul.bf16.gmra.mxu2 %v4882_v18  ;;  %v6120_v62 = vadd.f32 %v2615_v15, %v2527_v30 }
 0x17f   : > { %3361 = vmatmul.bf16.gmra.mxu3 %v4886_v24 }
 0x180   : > { %v2040_v57 = vpop.f32.mrf.mxu2 }
 0x181   : > { %v2041_v33 = vadd.f32 %v2040_v57, %v1952_v37  ;;  %v1953_v61 = vpop.f32.mrf.mxu1  ;;  %v2620_v0 = vpop.f32.mrf.mxu0  ;;  %v4513_v57 = vld [vmem:[#allocation2 + $0x50] sm:$0xf] }
 0x182   : > { %v2529_v48 = vpop.f32.mrf.mxu3  ;;  %v1954_v15 = vadd.f32 %v1953_v61, %v5949_v26  ;;  %v4913_v61 = vld [vmem:[#allocation2 + $0x80] sm:$0xf] }
 0x183   : > { %v2530_v46 = vadd.f32 %v2529_v48, %v2041_v33  ;;  %v5202_v33 = vld [vmem:[#allocation2 + $0x58] sm:$0xf0]  ;;  %v5346_v48 = vld [vmem:[#allocation2 + $0x88] sm:$0xf0] }
 0x184   : > { %v4514_v4 = vor.u32 %v5202_v33, %v4513_v57  ;;  %v4914_v32 = vor.u32 %v5346_v48, %v4913_v61  ;;  %v4917_v57 = vld [vmem:[#allocation2 + $0x90] sm:$0xf]  ;;  %v5348_v33 = vld [vmem:[#allocation2 + $0x98] sm:$0xf0] }
 0x185   : > { %v6123_v8 = vadd.f32 %v2618_v53, %v2530_v46 }
 0x188   : > { %v2042_v25 = vpop.f32.mrf.mxu2 }
 0x189   : > { %v2043_v27 = vadd.f32 %v2042_v25, %v1954_v15  ;;  %v1956_v5 = vpop.f32.mrf.mxu1  ;;  %v2623_v14 = vpop.f32.mrf.mxu0 }
 0x18a   : > { %v2531_v22 = vpop.f32.mrf.mxu3  ;;  %v1957_v53 = vadd.f32 %v1956_v5, %v5964_v47  ;;  %v5344_v47 = vld [vmem:[#allocation2 + $0x7c] sm:$0xf] }
 0x18b   : > { %v2532_v28 = vadd.f32 %v2531_v22, %v2043_v27  ;;  %v4910_v27 = vor.u32 %v5344_v47, %v4907_v50  ;;  %v4918_v47 = vor.u32 %v5348_v33, %v4917_v57  ;;  %v4931_v57 = vld [vmem:[#allocation2 + $0xb4] sm:$0xf0] }
 0x18c   : > { %2671 = vmatmul.bf16.gmra.mxu1 %v4502_v29  ;;  %3455 = vmatmul.bf16.gmra.mxu0 %v4902_v3 }
 0x18d   : > { %3277 = vmatmul.bf16.gmra.mxu2 %v4894_v35  ;;  %v6126_v52 = vadd.f32 %v2620_v0, %v2532_v28 }
 0x18f   : > { %3366 = vmatmul.bf16.gmra.mxu3 %v4898_v41 }
 0x190   : > { %v2045_v26 = vpop.f32.mrf.mxu2 }
 0x191   : > { %v2046_v18 = vadd.f32 %v2045_v26, %v1957_v53  ;;  %v1958_v59 = vpop.f32.mrf.mxu1  ;;  %v2625_v30 = vpop.f32.mrf.mxu0  ;;  %v4525_v26 = vld [vmem:[#allocation2 + $0x68] sm:$0xf] }
 0x192   : > { %v2534_v24 = vpop.f32.mrf.mxu3  ;;  %v1959_v0 = vadd.f32 %v1958_v59, %v5982_v12  ;;  %v4925_v59 = vld [vmem:[#allocation2 + $0x98] sm:$0xf] }
 0x193   : > { %v2535_v37 = vadd.f32 %v2534_v24, %v2046_v18  ;;  %v5205_v18 = vld [vmem:[#allocation2 + $0x70] sm:$0xf0]  ;;  %v5349_v24 = vld [vmem:[#allocation2 + $0xa0] sm:$0xf0] }
 0x194   : > { %v4526_v48 = vor.u32 %v5205_v18, %v4525_v26  ;;  %v4926_v63 = vor.u32 %v5349_v24, %v4925_v59  ;;  %v4929_v26 = vld [vmem:[#allocation2 + $0xa8] sm:$0xf]  ;;  %v5351_v18 = vld [vmem:[#allocation2 + $0xb0] sm:$0xf0] }
 0x195   : > { %v6129_v46 = vadd.f32 %v2623_v14, %v2535_v37 }
 0x198   : > { %v2047_v7 = vpop.f32.mrf.mxu2 }
 0x199   : > { %v2048_v15 = vadd.f32 %v2047_v7, %v1959_v0  ;;  %v1961_v25 = vpop.f32.mrf.mxu1  ;;  %v2628_v29 = vpop.f32.mrf.mxu0 }
 0x19a   : > { %v2536_v9 = vpop.f32.mrf.mxu3  ;;  %v1962_v14 = vadd.f32 %v1961_v25, %v5991_v23  ;;  %v5347_v23 = vld [vmem:[#allocation2 + $0x94] sm:$0xf] }
 0x19b   : > { %v2537_v3 = vadd.f32 %v2536_v9, %v2048_v15  ;;  %v4922_v15 = vor.u32 %v5347_v23, %v4919_v31  ;;  %v4930_v23 = vor.u32 %v5351_v18, %v4929_v26  ;;  %v4943_v26 = vld [vmem:[#allocation2 + $0xcc] sm:$0xf0] }
 0x19c   : > { %2676 = vmatmul.bf16.gmra.mxu1 %v4514_v4  ;;  %3460 = vmatmul.bf16.gmra.mxu0 %v4914_v32 }
 0x19d   : > { %3282 = vmatmul.bf16.gmra.mxu2 %v4906_v6  ;;  %v6132_v5 = vadd.f32 %v2625_v30, %v2537_v3 }
 0x19f   : > { %3371 = vmatmul.bf16.gmra.mxu3 %v4910_v27 }
 0x1a0   : > { %v2050_v12 = vpop.f32.mrf.mxu2 }
 0x1a1   : > { %v2051_v35 = vadd.f32 %v2050_v12, %v1962_v14  ;;  %v1963_v22 = vpop.f32.mrf.mxu1  ;;  %v2630_v28 = vpop.f32.mrf.mxu0  ;;  %v4537_v12 = vld [vmem:[#allocation2 + $0x80] sm:$0xf] }
 0x1a2   : > { %v2539_v41 = vpop.f32.mrf.mxu3  ;;  %v1964_v30 = vadd.f32 %v1963_v22, %v6003_v60  ;;  %v4937_v22 = vld [vmem:[#allocation2 + $0xb0] sm:$0xf] }
 0x1a3   : > { %v2540_v53 = vadd.f32 %v2539_v41, %v2051_v35  ;;  %v5208_v35 = vld [vmem:[#allocation2 + $0x88] sm:$0xf0]  ;;  %v5352_v41 = vld [vmem:[#allocation2 + $0xb8] sm:$0xf0] }
 0x1a4   : > { %v4538_v24 = vor.u32 %v5208_v35, %v4537_v12  ;;  %v4938_v33 = vor.u32 %v5352_v41, %v4937_v22  ;;  %v4941_v12 = vld [vmem:[#allocation2 + $0xc0] sm:$0xf]  ;;  %v5354_v35 = vld [vmem:[#allocation2 + $0xc8] sm:$0xf0] }
 0x1a5   : > { %v6135_v37 = vadd.f32 %v2628_v29, %v2540_v53 }
 0x1a8   : > { %v2052_v61 = vpop.f32.mrf.mxu2 }
 0x1a9   : > { %v2053_v0 = vadd.f32 %v2052_v61, %v1964_v30  ;;  %v1966_v7 = vpop.f32.mrf.mxu1  ;;  %v2633_v4 = vpop.f32.mrf.mxu0 }
 0x1aa   : > { %v2541_v50 = vpop.f32.mrf.mxu3  ;;  %v1967_v29 = vadd.f32 %v1966_v7, %v5916_v39  ;;  %v5350_v39 = vld [vmem:[#allocation2 + $0xac] sm:$0xf] }
 0x1ab   : > { %v2542_v32 = vadd.f32 %v2541_v50, %v2053_v0  ;;  %v4934_v0 = vor.u32 %v5350_v39, %v4931_v57  ;;  %v4942_v39 = vor.u32 %v5354_v35, %v4941_v12  ;;  %v4955_v12 = vld [vmem:[#allocation2 + $0xe4] sm:$0xf0] }
 0x1ac   : > { %2681 = vmatmul.bf16.gmra.mxu1 %v4526_v48  ;;  %3465 = vmatmul.bf16.gmra.mxu0 %v4926_v63 }
 0x1ad   : > { %3287 = vmatmul.bf16.gmra.mxu2 %v4918_v47  ;;  %v6138_v25 = vadd.f32 %v2630_v28, %v2542_v32 }
 0x1af   : > { %3376 = vmatmul.bf16.gmra.mxu3 %v4922_v15 }
 0x1b0   : > { %v2055_v60 = vpop.f32.mrf.mxu2 }
 0x1b1   : > { %v2056_v6 = vadd.f32 %v2055_v60, %v1967_v29  ;;  %v1968_v9 = vpop.f32.mrf.mxu1  ;;  %v2635_v3 = vpop.f32.mrf.mxu0  ;;  %v4549_v60 = vld [vmem:[#allocation2 + $0x98] sm:$0xf] }
 0x1b2   : > { %v2544_v27 = vpop.f32.mrf.mxu3  ;;  %v1969_v28 = vadd.f32 %v1968_v9, %v5935_v1  ;;  %v4949_v9 = vld [vmem:[#allocation2 + $0xc8] sm:$0xf] }
 0x1b3   : > { %v2545_v14 = vadd.f32 %v2544_v27, %v2056_v6  ;;  %v5211_v6 = vld [vmem:[#allocation2 + $0xa0] sm:$0xf0]  ;;  %v5355_v27 = vld [vmem:[#allocation2 + $0xd0] sm:$0xf0] }
 0x1b4   : > { %v4550_v41 = vor.u32 %v5211_v6, %v4549_v60  ;;  %v4950_v18 = vor.u32 %v5355_v27, %v4949_v9  ;;  %v4953_v60 = vld [vmem:[#allocation2 + $0xd8] sm:$0xf]  ;;  %v5357_v6 = vld [vmem:[#allocation2 + $0xe0] sm:$0xf0] }
 0x1b5   : > { %v6141_v53 = vadd.f32 %v2633_v4, %v2545_v14 }
 0x1b8   : > { %v2057_v59 = vpop.f32.mrf.mxu2 }
 0x1b9   : > { %v2058_v30 = vadd.f32 %v2057_v59, %v1969_v28  ;;  %v1971_v61 = vpop.f32.mrf.mxu1  ;;  %v2638_v48 = vpop.f32.mrf.mxu0 }
 0x1ba   : > { %v2546_v31 = vpop.f32.mrf.mxu3  ;;  %v1972_v4 = vadd.f32 %v1971_v61, %v5943_v10  ;;  %v5353_v10 = vld [vmem:[#allocation2 + $0xc4] sm:$0xf] }
 0x1bb   : > { %v2547_v63 = vadd.f32 %v2546_v31, %v2058_v30  ;;  %v4946_v30 = vor.u32 %v5353_v10, %v4943_v26  ;;  %v4954_v10 = vor.u32 %v5357_v6, %v4953_v60  ;;  %v4967_v60 = vld [vmem:[#allocation2 + $0xfc] sm:$0xf0] }
 0x1bc   : > { %2686 = vmatmul.bf16.gmra.mxu1 %v4538_v24  ;;  %3470 = vmatmul.bf16.gmra.mxu0 %v4938_v33 }
 0x1bd   : > { %3292 = vmatmul.bf16.gmra.mxu2 %v4930_v23  ;;  %v6144_v7 = vadd.f32 %v2635_v3, %v2547_v63 }
 0x1bf   : > { %3381 = vmatmul.bf16.gmra.mxu3 %v4934_v0 }
 0x1c0   : > { %v2060_v1 = vpop.f32.mrf.mxu2 }
 0x1c1   : > { %v2061_v47 = vadd.f32 %v2060_v1, %v1972_v4  ;;  %v1973_v50 = vpop.f32.mrf.mxu1  ;;  %v2640_v32 = vpop.f32.mrf.mxu0  ;;  %v4561_v1 = vld [vmem:[#allocation2 + $0xb0] sm:$0xf] }
 0x1c2   : > { %v2549_v15 = vpop.f32.mrf.mxu3  ;;  %v1974_v3 = vadd.f32 %v1973_v50, %v5956_v36  ;;  %v4961_v50 = vld [vmem:[#allocation2 + $0xe0] sm:$0xf] }
 0x1c3   : > { %v2550_v29 = vadd.f32 %v2549_v15, %v2061_v47  ;;  %v5214_v47 = vld [vmem:[#allocation2 + $0xb8] sm:$0xf0]  ;;  %v5358_v15 = vld [vmem:[#allocation2 + $0xe8] sm:$0xf0] }
 0x1c4   : > { %v4562_v27 = vor.u32 %v5214_v47, %v4561_v1  ;;  %v4962_v35 = vor.u32 %v5358_v15, %v4961_v50  ;;  %v4965_v1 = vld [vmem:[#allocation2 + $0xf0] sm:$0xf]  ;;  %v5360_v47 = vld [vmem:[#allocation2 + $0xf8] sm:$0xf0] }
 0x1c5   : > { %v6147_v14 = vadd.f32 %v2638_v48, %v2550_v29 }
 0x1c8   : > { %v2062_v22 = vpop.f32.mrf.mxu2 }
 0x1c9   : > { %v2063_v28 = vadd.f32 %v2062_v22, %v1974_v3  ;;  %v1976_v59 = vpop.f32.mrf.mxu1  ;;  %v2643_v24 = vpop.f32.mrf.mxu0 }
 0x1ca   : > { %v2551_v57 = vpop.f32.mrf.mxu3  ;;  %v1977_v48 = vadd.f32 %v1976_v59, %v5970_v51  ;;  %v5356_v51 = vld [vmem:[#allocation2 + $0xdc] sm:$0xf] }
 0x1cb   : > { %v2552_v33 = vadd.f32 %v2551_v57, %v2063_v28  ;;  %v4958_v28 = vor.u32 %v5356_v51, %v4955_v12  ;;  %v4966_v51 = vor.u32 %v5360_v47, %v4965_v1 }
 0x1cc   : > { %2691 = vmatmul.bf16.gmra.mxu1 %v4550_v41  ;;  %3475 = vmatmul.bf16.gmra.mxu0 %v4950_v18 }
 0x1cd   : > { %3297 = vmatmul.bf16.gmra.mxu2 %v4942_v39  ;;  %v6150_v61 = vadd.f32 %v2640_v32, %v2552_v33 }
 0x1cf   : > { %3386 = vmatmul.bf16.gmra.mxu3 %v4946_v30 }
 0x1d0   : > { %v2065_v36 = vpop.f32.mrf.mxu2 }
 0x1d1   : > { %v2066_v23 = vadd.f32 %v2065_v36, %v1977_v48  ;;  %v1978_v31 = vpop.f32.mrf.mxu1  ;;  %v2645_v63 = vpop.f32.mrf.mxu0  ;;  %v4573_v36 = vld [vmem:[#allocation2 + $0xc8] sm:$0xf] }
 0x1d2   : > { %v2554_v0 = vpop.f32.mrf.mxu3  ;;  %v1979_v32 = vadd.f32 %v1978_v31, %v5989_v20  ;;  %v4973_v31 = vld [vmem:[#allocation2 + $0xf8] sm:$0xf] }
 0x1d3   : > { %v2555_v4 = vadd.f32 %v2554_v0, %v2066_v23  ;;  %v5217_v23 = vld [vmem:[#allocation2 + $0xd0] sm:$0xf0]  ;;  %v5361_v0 = vld [vmem:[#allocation2 + $0x100] sm:$0xf0] }
 0x1d4   : > { %v4574_v15 = vor.u32 %v5217_v23, %v4573_v36  ;;  %v4974_v6 = vor.u32 %v5361_v0, %v4973_v31  ;;  %v5362_v23 = vld [vmem:[#allocation2 + $0x10c] sm:$0xf]  ;;  %v4979_v31 = vld [vmem:[#allocation2 + $0x114] sm:$0xf0] }
 0x1d5   : > { %v6153_v29 = vadd.f32 %v2643_v24, %v2555_v4 }
 0x1d8   : > { %v2067_v9 = vpop.f32.mrf.mxu2 }
 0x1d9   : > { %v2068_v3 = vadd.f32 %v2067_v9, %v1979_v32  ;;  %v1981_v22 = vpop.f32.mrf.mxu1  ;;  %v2648_v41 = vpop.f32.mrf.mxu0 }
 0x1da   : > { %v2556_v26 = vpop.f32.mrf.mxu3  ;;  %v1982_v24 = vadd.f32 %v1981_v22, %v5997_v34  ;;  %v5359_v34 = vld [vmem:[#allocation2 + $0xf4] sm:$0xf] }
 0x1db   : > { %v2557_v18 = vadd.f32 %v2556_v26, %v2068_v3  ;;  %v4970_v3 = vor.u32 %v5359_v34, %v4967_v60  ;;  %v4982_v60 = vor.u32 %v5362_v23, %v4979_v31 }
 0x1dc   : > { %2696 = vmatmul.bf16.gmra.mxu1 %v4562_v27  ;;  %3480 = vmatmul.bf16.gmra.mxu0 %v4962_v35 }
 0x1dd   : > { %3302 = vmatmul.bf16.gmra.mxu2 %v4954_v10  ;;  %v6156_v59 = vadd.f32 %v2645_v63, %v2557_v18  ;;  %v4585_v18 = vld [vmem:[#allocation2 + $0xe0] sm:$0xf] }
 0x1df   : > { %3391 = vmatmul.bf16.gmra.mxu3 %v4958_v28 }
 0x1e0   : > { %v2070_v20 = vpop.f32.mrf.mxu2 }
 0x1e1   : > { %v2071_v39 = vadd.f32 %v2070_v20, %v1982_v24  ;;  %v1983_v57 = vpop.f32.mrf.mxu1  ;;  %v2650_v33 = vpop.f32.mrf.mxu0  ;;  %v5220_v24 = vld [vmem:[#allocation2 + $0xe8] sm:$0xf0]  ;;  %v4985_v20 = vld [vmem:[#allocation2 + $0x110] sm:$0xf] }
 0x1e2   : > { %v2559_v30 = vpop.f32.mrf.mxu3  ;;  %v1984_v63 = vadd.f32 %v1983_v57, %v6006_v11  ;;  %v4977_v57 = vld [vmem:[#allocation2 + $0x108] sm:$0xf]  ;;  %v4586_v36 = vor.u32 %v5220_v24, %v4585_v18 }
 0x1e3   : > { %v2560_v48 = vadd.f32 %v2559_v30, %v2071_v39  ;;  %v5364_v39 = vld [vmem:[#allocation2 + $0x118] sm:$0xf0]  ;;  %v5363_v30 = vld [vmem:[#allocation2 + $0x110] sm:$0xf0] }
 0x1e4   : > { %v4986_v0 = vor.u32 %v5364_v39, %v4985_v20  ;;  %v5223_v20 = vld [vmem:[#allocation2 + $0x100] sm:$0xf0]  ;;  %v4997_v39 = vld [vmem:[#allocation2 + $0x128] sm:$0xf] }
 0x1e5   : > { %v6159_v4 = vadd.f32 %v2648_v41, %v2560_v48 }
 0x1e8   : > { %v2072_v50 = vpop.f32.mrf.mxu2 }
 0x1e9   : > { %v2073_v32 = vadd.f32 %v2072_v50, %v1984_v63  ;;  %v2662_v9 = vpop.f32.mrf.mxu1  ;;  %v3446_v27 = vpop.f32.mrf.mxu0  ;;  %v4978_v63 = vor.u32 %v5363_v30, %v4977_v57  ;;  %v5367_v57 = vld [vmem:[#allocation2 + $0x130] sm:$0xf0]  ;;  %v4989_v30 = vld [vmem:[#allocation2 + $0x120] sm:$0xf] }
 0x1ea   : > { %v2561_v12 = vpop.f32.mrf.mxu3 }
 0x1eb   : > { %v2562_v35 = vadd.f32 %v2561_v12, %v2073_v32 }
 0x1ec   : > { %2701 = vmatmul.bf16.gmra.mxu1 %v4574_v15  ;;  %3485 = vmatmul.bf16.gmra.mxu0 %v4974_v6  ;;  %v2663_v15 = vadd.f32 %v2662_v9, %v6026_v2 }
 0x1ed   : > { %3307 = vmatmul.bf16.gmra.mxu2 %v4966_v51  ;;  %v6162_v22 = vadd.f32 %v2650_v33, %v2562_v35 }
 0x1ef   : > { %3396 = vmatmul.bf16.gmra.mxu3 %v4970_v3 }
 0x1f0   : > { %v3268_v41 = vpop.f32.mrf.mxu2 }
 0x1f1   : > { %v2664_v11 = vpop.f32.mrf.mxu1  ;;  %v3448_v10 = vpop.f32.mrf.mxu0 }
 0x1f2   : > { %v3357_v26 = vpop.f32.mrf.mxu3  ;;  %v2665_v32 = vadd.f32 %v2664_v11, %v6030_v45 }
 0x1f3   : > { %v3358_v28 = vadd.f32 %v3357_v26, %v3268_v41 }
 0x1f5   : > { %v3447_v1 = vadd.f32 %v3446_v27, %v3358_v28 }
 0x1f7   : > { %v3526_v6 = vadd.f32 %v3447_v1, %v2663_v15  ;;  %v4991_v1 = vld [vmem:[#allocation2 + $0x12c] sm:$0xf0] }
 0x1f8   : > { %v3270_v48 = vpop.f32.mrf.mxu2 }
 0x1f9   : > { %v2667_v33 = vpop.f32.mrf.mxu1  ;;  %v3451_v47 = vpop.f32.mrf.mxu0  ;;  %v3663_v2 = vmul.f32 %v3526_v6, %v3526_v6 }
 0x1fa   : > { %v3359_v50 = vpop.f32.mrf.mxu3  ;;  %v2668_v28 = vadd.f32 %v2667_v33, %v6037_v16 }
 0x1fb   : > { %v3360_v34 = vadd.f32 %v3359_v50, %v3270_v48  ;;  %v5366_v48 = vld [vmem:[#allocation2 + $0x128] sm:$0xf0] }
 0x1fc   : > { %2706 = vmatmul.bf16.gmra.mxu1 %v4586_v36  ;;  %3490 = vmatmul.bf16.gmra.mxu0 %v4986_v0  ;;  %v5365_v0 = vld [vmem:[#allocation2 + $0x124] sm:$0xf] }
 0x1fd   : > { %v3449_v51 = vadd.f32 %v3448_v10, %v3360_v34  ;;  %3312 = vmatmul.bf16.gmra.mxu2 %v4978_v63  ;;  %v4597_v10 = vld [vmem:[#allocation2 + $0xf8] sm:$0xf]  ;;  %v4998_v63 = vor.u32 %v5367_v57, %v4997_v39  ;;  %v4994_v33 = vor.u32 %v5365_v0, %v4991_v1  ;;  %v5226_v57 = vld [vmem:[#allocation2 + $0x118] sm:$0xf0]  ;;  %v5003_v0 = vld [vmem:[#allocation2 + $0x144] sm:$0xf0] }
 0x1fe   : > { %v4598_v31 = vor.u32 %v5223_v20, %v4597_v10 }
 0x1ff   : > { %v3527_v12 = vadd.f32 %v3449_v51, %v2665_v32  ;;  %3401 = vmatmul.bf16.gmra.mxu3 %v4982_v60 }
 0x200   : > { %v3273_v27 = vpop.f32.mrf.mxu2 }
 0x201   : > { %v5410_v9 = vpack.c.bf16 %v3527_v12, %v3526_v6  ;;  %v3623_v35 = vadd.f32 %v3527_v12, %v3526_v6  ;;  %v3664_v3 = vmul.f32 %v3527_v12, %v3527_v12  ;;  %v2669_v41 = vpop.f32.mrf.mxu1  ;;  %v3453_v26 = vpop.f32.mrf.mxu0  ;;  %v4990_v6 = vor.u32 %v5366_v48, %v4989_v30  ;;  %v5369_v30 = vld [vmem:[#allocation2 + $0x140] sm:$0xf0] }
 0x202   : > { %v3362_v18 = vpop.f32.mrf.mxu3 }
 0x203   : > { %5411 = vst [vmem:[%s6171_s27] sm:$0xff] %v5410_v9   ;;  %v3695_v45 = vadd.f32 %v3664_v3, %v3663_v2  ;;  %v3363_v11 = vadd.f32 %v3362_v18, %v3273_v27 }
 0x205   : > { %v3452_v24 = vadd.f32 %v3451_v47, %v3363_v11  ;;  %v2670_v47 = vadd.f32 %v2669_v41, %v6041_v56  ;;  %v5009_v56 = vld [vmem:[#allocation2 + $0x140] sm:$0xf]  ;;  %v5370_v41 = vld [vmem:[#allocation2 + $0x148] sm:$0xf0] }
 0x206   : > { %v5010_v1 = vor.u32 %v5370_v41, %v5009_v56  ;;  %v5372_v56 = vld [vmem:[#allocation2 + $0x158] sm:$0xf0] }
 0x207   : > { %v3528_v36 = vadd.f32 %v3452_v24, %v2668_v28  ;;  %v4609_v24 = vld [vmem:[#allocation2 + $0x110] sm:$0xf] }
 0x208   : > { %v3275_v23 = vpop.f32.mrf.mxu2 }
 0x209   : > { %v3624_v50 = vadd.f32 %v3623_v35, %v3528_v36  ;;  %v3665_v15 = vmul.f32 %v3528_v36, %v3528_v36  ;;  %v2672_v34 = vpop.f32.mrf.mxu1  ;;  %v3456_v60 = vpop.f32.mrf.mxu0 }
 0x20a   : > { %v3364_v32 = vpop.f32.mrf.mxu3  ;;  %v2673_v20 = vadd.f32 %v2672_v34, %v6060_v43 }
 0x20b   : > { %v3696_v51 = vadd.f32 %v3695_v45, %v3665_v15  ;;  %v3365_v16 = vadd.f32 %v3364_v32, %v3275_v23 }
 0x20c   : > { %2711 = vmatmul.bf16.gmra.mxu1 %v4598_v31  ;;  %3495 = vmatmul.bf16.gmra.mxu0 %v4998_v63  ;;  %v5368_v31 = vld [vmem:[#allocation2 + $0x13c] sm:$0xf] }
 0x20d   : > { %v3454_v12 = vadd.f32 %v3453_v26, %v3365_v16  ;;  %3317 = vmatmul.bf16.gmra.mxu2 %v4990_v6  ;;  %v5001_v26 = vld [vmem:[#allocation2 + $0x138] sm:$0xf]  ;;  %v5006_v34 = vor.u32 %v5368_v31, %v5003_v0 }
 0x20e   : > { %v5002_v32 = vor.u32 %v5369_v30, %v5001_v26 }
 0x20f   : > { %v3529_v27 = vadd.f32 %v3454_v12, %v2670_v47  ;;  %3406 = vmatmul.bf16.gmra.mxu3 %v4994_v33 }
 0x210   : > { %v3278_v2 = vpop.f32.mrf.mxu2 }
 0x211   : > { %v5415_v9 = vpack.c.bf16 %v3529_v27, %v3528_v36  ;;  %v3625_v35 = vadd.f32 %v3624_v50, %v3529_v27  ;;  %v3666_v3 = vmul.f32 %v3529_v27, %v3529_v27  ;;  %v2674_v18 = vpop.f32.mrf.mxu1  ;;  %v3458_v11 = vpop.f32.mrf.mxu0  ;;  %v4610_v36 = vor.u32 %v5226_v57, %v4609_v24  ;;  %v4621_v24 = vld [vmem:[#allocation2 + $0x128] sm:$0xf]  ;;  %v5229_v57 = vld [vmem:[#allocation2 + $0x130] sm:$0xf0] }
 0x212   : > { %v3367_v10 = vpop.f32.mrf.mxu3  ;;  %v4622_v30 = vor.u32 %v5229_v57, %v4621_v24 }
 0x213   : > { %5487 = vst [vmem:[%s6171_s27 + $0x8] sm:$0xff] %v5415_v9   ;;  %v3697_v45 = vadd.f32 %v3696_v51, %v3666_v3  ;;  %v3368_v28 = vadd.f32 %v3367_v10, %v3278_v2 }
 0x215   : > { %v3457_v39 = vadd.f32 %v3456_v60, %v3368_v28  ;;  %v2675_v60 = vadd.f32 %v2674_v18, %v6064_v13  ;;  %v5021_v13 = vld [vmem:[#allocation2 + $0x158] sm:$0xf]  ;;  %v5373_v18 = vld [vmem:[#allocation2 + $0x160] sm:$0xf0] }
 0x217   : > { %v3530_v48 = vadd.f32 %v3457_v39, %v2673_v20 }
 0x218   : > { %v3280_v23 = vpop.f32.mrf.mxu2 }
 0x219   : > { %v3626_v63 = vadd.f32 %v3625_v35, %v3530_v48  ;;  %v3667_v50 = vmul.f32 %v3530_v48, %v3530_v48  ;;  %v2677_v15 = vpop.f32.mrf.mxu1  ;;  %v3461_v6 = vpop.f32.mrf.mxu0 }
 0x21a   : > { %v3369_v51 = vpop.f32.mrf.mxu3  ;;  %v2678_v20 = vadd.f32 %v2677_v15, %v6071_v58 }
 0x21b   : > { %v3698_v16 = vadd.f32 %v3697_v45, %v3667_v50  ;;  %v3370_v43 = vadd.f32 %v3369_v51, %v3280_v23  ;;  %v5015_v23 = vld [vmem:[#allocation2 + $0x15c] sm:$0xf0] }
 0x21c   : > { %2716 = vmatmul.bf16.gmra.mxu1 %v4610_v36  ;;  %3500 = vmatmul.bf16.gmra.mxu0 %v5010_v1  ;;  %v5022_v36 = vor.u32 %v5373_v18, %v5021_v13 }
 0x21d   : > { %v3459_v33 = vadd.f32 %v3458_v11, %v3370_v43  ;;  %3322 = vmatmul.bf16.gmra.mxu2 %v5002_v32  ;;  %v5013_v11 = vld [vmem:[#allocation2 + $0x150] sm:$0xf] }
 0x21e   : > { %v5014_v50 = vor.u32 %v5372_v56, %v5013_v11  ;;  %v5374_v11 = vld [vmem:[#allocation2 + $0x16c] sm:$0xf]  ;;  %v5027_v56 = vld [vmem:[#allocation2 + $0x174] sm:$0xf0] }
 0x21f   : > { %v3531_v47 = vadd.f32 %v3459_v33, %v2675_v60  ;;  %3411 = vmatmul.bf16.gmra.mxu3 %v5006_v34 }
 0x220   : > { %v3283_v12 = vpop.f32.mrf.mxu2 }
 0x221   : > { %v5420_v27 = vpack.c.bf16 %v3531_v47, %v3530_v48  ;;  %v3627_v2 = vadd.f32 %v3626_v63, %v3531_v47  ;;  %v3668_v9 = vmul.f32 %v3531_v47, %v3531_v47  ;;  %v2679_v35 = vpop.f32.mrf.mxu1  ;;  %v3463_v3 = vpop.f32.mrf.mxu0  ;;  %v5371_v48 = vld [vmem:[#allocation2 + $0x154] sm:$0xf] }
 0x222   : > { %v3372_v10 = vpop.f32.mrf.mxu3  ;;  %v5018_v15 = vor.u32 %v5371_v48, %v5015_v23 }
 0x223   : > { %5488 = vst [vmem:[%s6171_s27 + $0x10] sm:$0xff] %v5420_v27   ;;  %v3699_v45 = vadd.f32 %v3698_v16, %v3668_v9  ;;  %v3373_v28 = vadd.f32 %v3372_v10, %v3283_v12 }
 0x225   : > { %v3462_v39 = vadd.f32 %v3461_v6, %v3373_v28  ;;  %v2680_v6 = vadd.f32 %v2679_v35, %v6074_v21  ;;  %v5033_v21 = vld [vmem:[#allocation2 + $0x170] sm:$0xf]  ;;  %v5376_v35 = vld [vmem:[#allocation2 + $0x178] sm:$0xf0] }
 0x227   : > { %v3532_v41 = vadd.f32 %v3462_v39, %v2678_v20  ;;  %v5232_v20 = vld [vmem:[#allocation2 + $0x148] sm:$0xf0]  ;;  %v5375_v39 = vld [vmem:[#allocation2 + $0x170] sm:$0xf0] }
 0x228   : > { %v3285_v26 = vpop.f32.mrf.mxu2 }
 0x229   : > { %v3628_v31 = vadd.f32 %v3627_v2, %v3532_v41  ;;  %v3669_v0 = vmul.f32 %v3532_v41, %v3532_v41  ;;  %v2682_v1 = vpop.f32.mrf.mxu1  ;;  %v3466_v63 = vpop.f32.mrf.mxu0 }
 0x22a   : > { %v3374_v32 = vpop.f32.mrf.mxu3  ;;  %v2683_v28 = vadd.f32 %v2682_v1, %v6093_v55  ;;  %v5030_v1 = vor.u32 %v5374_v11, %v5027_v56 }
 0x22b   : > { %v3700_v51 = vadd.f32 %v3699_v45, %v3669_v0  ;;  %v3375_v58 = vadd.f32 %v3374_v32, %v3285_v26  ;;  %v4633_v45 = vld [vmem:[#allocation2 + $0x140] sm:$0xf] }
 0x22c   : > { %2721 = vmatmul.bf16.gmra.mxu1 %v4622_v30  ;;  %3505 = vmatmul.bf16.gmra.mxu0 %v5022_v36  ;;  %v4634_v18 = vor.u32 %v5232_v20, %v4633_v45  ;;  %v5378_v45 = vld [vmem:[#allocation2 + $0x188] sm:$0xf0] }
 0x22d   : > { %v3464_v16 = vadd.f32 %v3463_v3, %v3375_v58  ;;  %3327 = vmatmul.bf16.gmra.mxu2 %v5014_v50  ;;  %v5025_v3 = vld [vmem:[#allocation2 + $0x168] sm:$0xf] }
 0x22e   : > { %v5026_v36 = vor.u32 %v5375_v39, %v5025_v3 }
 0x22f   : > { %v3533_v43 = vadd.f32 %v3464_v16, %v2680_v6  ;;  %3416 = vmatmul.bf16.gmra.mxu3 %v5018_v15 }
 0x230   : > { %v3288_v34 = vpop.f32.mrf.mxu2 }
 0x231   : > { %v5425_v60 = vpack.c.bf16 %v3533_v43, %v3532_v41  ;;  %v3629_v33 = vadd.f32 %v3628_v31, %v3533_v43  ;;  %v3670_v47 = vmul.f32 %v3533_v43, %v3533_v43  ;;  %v2684_v12 = vpop.f32.mrf.mxu1  ;;  %v3468_v27 = vpop.f32.mrf.mxu0  ;;  %v5034_v41 = vor.u32 %v5376_v35, %v5033_v21  ;;  %v5377_v21 = vld [vmem:[#allocation2 + $0x184] sm:$0xf]  ;;  %v5039_v35 = vld [vmem:[#allocation2 + $0x18c] sm:$0xf0] }
 0x232   : > { %v3377_v2 = vpop.f32.mrf.mxu3 }
 0x233   : > { %5489 = vst [vmem:[%s6171_s27 + $0x18] sm:$0xff] %v5425_v60   ;;  %v3701_v9 = vadd.f32 %v3700_v51, %v3670_v47  ;;  %v3378_v10 = vadd.f32 %v3377_v2, %v3288_v34  ;;  %v4645_v47 = vld [vmem:[#allocation2 + $0x158] sm:$0xf] }
 0x235   : > { %v3467_v24 = vadd.f32 %v3466_v63, %v3378_v10  ;;  %v2685_v63 = vadd.f32 %v2684_v12, %v6096_v42  ;;  %v5235_v10 = vld [vmem:[#allocation2 + $0x160] sm:$0xf0]  ;;  %v5045_v42 = vld [vmem:[#allocation2 + $0x188] sm:$0xf]  ;;  %v5379_v12 = vld [vmem:[#allocation2 + $0x190] sm:$0xf0] }
 0x236   : > { %v4646_v20 = vor.u32 %v5235_v10, %v4645_v47  ;;  %v5046_v3 = vor.u32 %v5379_v12, %v5045_v42  ;;  %v5051_v10 = vld [vmem:[#allocation2 + $0x1a4] sm:$0xf0] }
 0x237   : > { %v3534_v57 = vadd.f32 %v3467_v24, %v2683_v28 }
 0x238   : > { %v3290_v13 = vpop.f32.mrf.mxu2 }
 0x239   : > { %v3630_v26 = vadd.f32 %v3629_v33, %v3534_v57  ;;  %v3671_v30 = vmul.f32 %v3534_v57, %v3534_v57  ;;  %v2687_v48 = vpop.f32.mrf.mxu1  ;;  %v3471_v23 = vpop.f32.mrf.mxu0 }
 0x23a   : > { %v3379_v31 = vpop.f32.mrf.mxu3  ;;  %v2688_v2 = vadd.f32 %v2687_v48, %v6099_v40 }
 0x23b   : > { %v3702_v0 = vadd.f32 %v3701_v9, %v3671_v30  ;;  %v3380_v55 = vadd.f32 %v3379_v31, %v3290_v13 }
 0x23c   : > { %2726 = vmatmul.bf16.gmra.mxu1 %v4634_v18  ;;  %3510 = vmatmul.bf16.gmra.mxu0 %v5034_v41 }
 0x23d   : > { %v3469_v50 = vadd.f32 %v3468_v27, %v3380_v55  ;;  %3332 = vmatmul.bf16.gmra.mxu2 %v5026_v36  ;;  %v5037_v27 = vld [vmem:[#allocation2 + $0x180] sm:$0xf] }
 0x23e   : > { %v5038_v11 = vor.u32 %v5378_v45, %v5037_v27 }
 0x23f   : > { %v3535_v32 = vadd.f32 %v3469_v50, %v2685_v63  ;;  %3421 = vmatmul.bf16.gmra.mxu3 %v5030_v1 }
 0x240   : > { %v3293_v51 = vpop.f32.mrf.mxu2 }
 0x241   : > { %v5430_v58 = vpack.c.bf16 %v3535_v32, %v3534_v57  ;;  %v3631_v15 = vadd.f32 %v3630_v26, %v3535_v32  ;;  %v3672_v6 = vmul.f32 %v3535_v32, %v3535_v32  ;;  %v2689_v16 = vpop.f32.mrf.mxu1  ;;  %v3473_v43 = vpop.f32.mrf.mxu0  ;;  %v5042_v26 = vor.u32 %v5377_v21, %v5039_v35 }
 0x242   : > { %v3382_v34 = vpop.f32.mrf.mxu3  ;;  %v2690_v30 = vadd.f32 %v2689_v16, %v6102_v17  ;;  %v5057_v17 = vld [vmem:[#allocation2 + $0x1a0] sm:$0xf]  ;;  %v5382_v16 = vld [vmem:[#allocation2 + $0x1a8] sm:$0xf0] }
 0x243   : > { %5490 = vst [vmem:[%s6171_s27 + $0x20] sm:$0xff] %v5430_v58   ;;  %v3703_v60 = vadd.f32 %v3702_v0, %v3672_v6  ;;  %v3383_v33 = vadd.f32 %v3382_v34, %v3293_v51  ;;  %v4657_v58 = vld [vmem:[#allocation2 + $0x170] sm:$0xf]  ;;  %v5238_v34 = vld [vmem:[#allocation2 + $0x178] sm:$0xf0]  ;;  %v5058_v42 = vor.u32 %v5382_v16, %v5057_v17 }
 0x245   : > { %v3472_v9 = vadd.f32 %v3471_v23, %v3383_v33 }
 0x247   : > { %v3536_v28 = vadd.f32 %v3472_v9, %v2688_v2  ;;  %v4658_v2 = vor.u32 %v5238_v34, %v4657_v58  ;;  %v5380_v9 = vld [vmem:[#allocation2 + $0x19c] sm:$0xf] }
 0x248   : > { %v3295_v24 = vpop.f32.mrf.mxu2  ;;  %v5054_v35 = vor.u32 %v5380_v9, %v5051_v10 }
 0x249   : > { %v3632_v39 = vadd.f32 %v3631_v15, %v3536_v28  ;;  %v3673_v57 = vmul.f32 %v3536_v28, %v3536_v28  ;;  %v2692_v13 = vpop.f32.mrf.mxu1  ;;  %v3476_v18 = vpop.f32.mrf.mxu0 }
 0x24a   : > { %v3384_v56 = vpop.f32.mrf.mxu3  ;;  %v2693_v15 = vadd.f32 %v2692_v13, %v6105_v54 }
 0x24b   : > { %v3704_v41 = vadd.f32 %v3703_v60, %v3673_v57  ;;  %v3385_v40 = vadd.f32 %v3384_v56, %v3295_v24  ;;  %v5381_v60 = vld [vmem:[#allocation2 + $0x1a0] sm:$0xf0] }
 0x24c   : > { %2731 = vmatmul.bf16.gmra.mxu1 %v4646_v20  ;;  %3515 = vmatmul.bf16.gmra.mxu0 %v5046_v3 }
 0x24d   : > { %v3474_v48 = vadd.f32 %v3473_v43, %v3385_v40  ;;  %3337 = vmatmul.bf16.gmra.mxu2 %v5038_v11  ;;  %v5049_v43 = vld [vmem:[#allocation2 + $0x198] sm:$0xf] }
 0x24e   : > { %v5050_v24 = vor.u32 %v5381_v60, %v5049_v43 }
 0x24f   : > { %v3537_v23 = vadd.f32 %v3474_v48, %v2690_v30  ;;  %3426 = vmatmul.bf16.gmra.mxu3 %v5042_v26 }
 0x250   : > { %v3298_v36 = vpop.f32.mrf.mxu2 }
 0x251   : > { %v5435_v31 = vpack.c.bf16 %v3537_v23, %v3536_v28  ;;  %v3633_v0 = vadd.f32 %v3632_v39, %v3537_v23  ;;  %v3674_v55 = vmul.f32 %v3537_v23, %v3537_v23  ;;  %v2694_v1 = vpop.f32.mrf.mxu1  ;;  %v3478_v63 = vpop.f32.mrf.mxu0 }
 0x252   : > { %v3387_v50 = vpop.f32.mrf.mxu3  ;;  %v2695_v3 = vadd.f32 %v2694_v1, %v6108_v19 }
 0x253   : > { %5491 = vst [vmem:[%s6171_s27 + $0x28] sm:$0xff] %v5435_v31   ;;  %v3705_v32 = vadd.f32 %v3704_v41, %v3674_v55  ;;  %v3388_v51 = vadd.f32 %v3387_v50, %v3298_v36 }
 0x255   : > { %v3477_v6 = vadd.f32 %v3476_v18, %v3388_v51 }
 0x257   : > { %v3538_v33 = vadd.f32 %v3477_v6, %v2693_v15 }
 0x258   : > { %v3300_v47 = vpop.f32.mrf.mxu2 }
 0x259   : > { %v3634_v12 = vadd.f32 %v3633_v0, %v3538_v33  ;;  %v3675_v27 = vmul.f32 %v3538_v33, %v3538_v33  ;;  %v2697_v45 = vpop.f32.mrf.mxu1  ;;  %v3481_v28 = vpop.f32.mrf.mxu0 }
 0x25a   : > { %v3389_v20 = vpop.f32.mrf.mxu3  ;;  %v2698_v23 = vadd.f32 %v2697_v45, %v6111_v38 }
 0x25b   : > { %v3706_v21 = vadd.f32 %v3705_v32, %v3675_v27  ;;  %v3390_v54 = vadd.f32 %v3389_v20, %v3300_v47 }
 0x25c   : > { %2736 = vmatmul.bf16.gmra.mxu1 %v4658_v2  ;;  %3520 = vmatmul.bf16.gmra.mxu0 %v5058_v42 }
 0x25d   : > { %v3479_v39 = vadd.f32 %v3478_v63, %v3390_v54  ;;  %3342 = vmatmul.bf16.gmra.mxu2 %v5050_v24 }
 0x25f   : > { %v3539_v57 = vadd.f32 %v3479_v39, %v2695_v3  ;;  %3431 = vmatmul.bf16.gmra.mxu3 %v5054_v35 }
 0x260   : > { %v3303_v13 = vpop.f32.mrf.mxu2 }
 0x261   : > { %v5440_v18 = vpack.c.bf16 %v3539_v57, %v3538_v33  ;;  %v3635_v11 = vadd.f32 %v3634_v12, %v3539_v57  ;;  %v3676_v56 = vmul.f32 %v3539_v57, %v3539_v57  ;;  %v2699_v41 = vpop.f32.mrf.mxu1  ;;  %v3483_v40 = vpop.f32.mrf.mxu0 }
 0x262   : > { %v3392_v26 = vpop.f32.mrf.mxu3  ;;  %v2700_v58 = vadd.f32 %v2699_v41, %v6114_v44 }
 0x263   : > { %5492 = vst [vmem:[%s6171_s27 + $0x30] sm:$0xff] %v5440_v18   ;;  %v3707_v30 = vadd.f32 %v3706_v21, %v3676_v56  ;;  %v3393_v48 = vadd.f32 %v3392_v26, %v3303_v13 }
 0x265   : > { %v3482_v36 = vadd.f32 %v3481_v28, %v3393_v48 }
 0x267   : > { %v3540_v31 = vadd.f32 %v3482_v36, %v2698_v23 }
 0x268   : > { %v3305_v0 = vpop.f32.mrf.mxu2 }
 0x269   : > { %v3636_v19 = vadd.f32 %v3635_v11, %v3540_v31  ;;  %v3677_v55 = vmul.f32 %v3540_v31, %v3540_v31  ;;  %v2702_v1 = vpop.f32.mrf.mxu1  ;;  %v3486_v63 = vpop.f32.mrf.mxu0 }
 0x26a   : > { %v3394_v50 = vpop.f32.mrf.mxu3  ;;  %v2703_v9 = vadd.f32 %v2702_v1, %v6117_v49 }
 0x26b   : > { %v3708_v32 = vadd.f32 %v3707_v30, %v3677_v55  ;;  %v3395_v51 = vadd.f32 %v3394_v50, %v3305_v0 }
 0x26d   : > { %v3484_v15 = vadd.f32 %v3483_v40, %v3395_v51 }
 0x26f   : > { %v3541_v6 = vadd.f32 %v3484_v15, %v2700_v58 }
 0x270   : > { %v3308_v34 = vpop.f32.mrf.mxu2 }
 0x271   : > { %v5445_v17 = vpack.c.bf16 %v3541_v6, %v3540_v31  ;;  %v3637_v16 = vadd.f32 %v3636_v19, %v3541_v6  ;;  %v3678_v43 = vmul.f32 %v3541_v6, %v3541_v6  ;;  %v2704_v38 = vpop.f32.mrf.mxu1  ;;  %v3488_v60 = vpop.f32.mrf.mxu0 }
 0x272   : > { %v3397_v33 = vpop.f32.mrf.mxu3  ;;  %v2705_v54 = vadd.f32 %v2704_v38, %v6120_v62 }
 0x273   : > { %5493 = vst [vmem:[%s6171_s27 + $0x38] sm:$0xff] %v5445_v17   ;;  %v3709_v47 = vadd.f32 %v3708_v32, %v3678_v43  ;;  %v3398_v2 = vadd.f32 %v3397_v33, %v3308_v34 }
 0x275   : > { %v3487_v10 = vadd.f32 %v3486_v63, %v3398_v2 }
 0x277   : > { %v3542_v42 = vadd.f32 %v3487_v10, %v2703_v9 }
 0x278   : > { %v3310_v12 = vpop.f32.mrf.mxu2 }
 0x279   : > { %v3638_v27 = vadd.f32 %v3637_v16, %v3542_v42  ;;  %v3679_v45 = vmul.f32 %v3542_v42, %v3542_v42  ;;  %v2707_v44 = vpop.f32.mrf.mxu1  ;;  %v3491_v28 = vpop.f32.mrf.mxu0 }
 0x27a   : > { %v3399_v24 = vpop.f32.mrf.mxu3  ;;  %v2708_v26 = vadd.f32 %v2707_v44, %v6123_v8 }
 0x27b   : > { %v3710_v20 = vadd.f32 %v3709_v47, %v3679_v45  ;;  %v3400_v21 = vadd.f32 %v3399_v24, %v3310_v12 }
 0x27d   : > { %v3489_v35 = vadd.f32 %v3488_v60, %v3400_v21 }
 0x27f   : > { %v3543_v3 = vadd.f32 %v3489_v35, %v2705_v54 }
 0x280   : > { %v3313_v39 = vpop.f32.mrf.mxu2 }
 0x281   : > { %v5450_v57 = vpack.c.bf16 %v3543_v3, %v3542_v42  ;;  %v3639_v13 = vadd.f32 %v3638_v27, %v3543_v3  ;;  %v3680_v18 = vmul.f32 %v3543_v3, %v3543_v3  ;;  %v2709_v49 = vpop.f32.mrf.mxu1  ;;  %v3493_v11 = vpop.f32.mrf.mxu0 }
 0x282   : > { %v3402_v56 = vpop.f32.mrf.mxu3  ;;  %v2710_v63 = vadd.f32 %v2709_v49, %v6126_v52 }
 0x283   : > { %5494 = vst [vmem:[%s6171_s27 + $0x40] sm:$0xff] %v5450_v57   ;;  %v3711_v41 = vadd.f32 %v3710_v20, %v3680_v18  ;;  %v3403_v40 = vadd.f32 %v3402_v56, %v3313_v39 }
 0x285   : > { %v3492_v30 = vadd.f32 %v3491_v28, %v3403_v40 }
 0x287   : > { %v3544_v48 = vadd.f32 %v3492_v30, %v2708_v26 }
 0x288   : > { %v3315_v23 = vpop.f32.mrf.mxu2 }
 0x289   : > { %v3640_v36 = vadd.f32 %v3639_v13, %v3544_v48  ;;  %v3681_v31 = vmul.f32 %v3544_v48, %v3544_v48  ;;  %v2712_v62 = vpop.f32.mrf.mxu1  ;;  %v3496_v0 = vpop.f32.mrf.mxu0 }
 0x28a   : > { %v3404_v19 = vpop.f32.mrf.mxu3  ;;  %v2713_v38 = vadd.f32 %v2712_v62, %v6129_v46 }
 0x28b   : > { %v3712_v55 = vadd.f32 %v3711_v41, %v3681_v31  ;;  %v3405_v1 = vadd.f32 %v3404_v19, %v3315_v23 }
 0x28d   : > { %v3494_v50 = vadd.f32 %v3493_v11, %v3405_v1 }
 0x28f   : > { %v3545_v32 = vadd.f32 %v3494_v50, %v2710_v63 }
 0x290   : > { %v3318_v51 = vpop.f32.mrf.mxu2 }
 0x291   : > { %v5455_v58 = vpack.c.bf16 %v3545_v32, %v3544_v48  ;;  %v3641_v15 = vadd.f32 %v3640_v36, %v3545_v32  ;;  %v3682_v6 = vmul.f32 %v3545_v32, %v3545_v32  ;;  %v2714_v8 = vpop.f32.mrf.mxu1  ;;  %v3498_v34 = vpop.f32.mrf.mxu0 }
 0x292   : > { %v3407_v17 = vpop.f32.mrf.mxu3  ;;  %v2715_v45 = vadd.f32 %v2714_v8, %v6132_v5 }
 0x293   : > { %5495 = vst [vmem:[%s6171_s27 + $0x48] sm:$0xff] %v5455_v58   ;;  %v3713_v16 = vadd.f32 %v3712_v55, %v3682_v6  ;;  %v3408_v43 = vadd.f32 %v3407_v17, %v3318_v51 }
 0x295   : > { %v3497_v60 = vadd.f32 %v3496_v0, %v3408_v43 }
 0x297   : > { %v3546_v33 = vadd.f32 %v3497_v60, %v2713_v38 }
 0x298   : > { %v3320_v47 = vpop.f32.mrf.mxu2 }
 0x299   : > { %v3642_v2 = vadd.f32 %v3641_v15, %v3546_v33  ;;  %v3683_v9 = vmul.f32 %v3546_v33, %v3546_v33  ;;  %v2717_v52 = vpop.f32.mrf.mxu1  ;;  %v3501_v10 = vpop.f32.mrf.mxu0 }
 0x29a   : > { %v3409_v42 = vpop.f32.mrf.mxu3  ;;  %v2718_v13 = vadd.f32 %v2717_v52, %v6135_v37 }
 0x29b   : > { %v3714_v12 = vadd.f32 %v3713_v16, %v3683_v9  ;;  %v3410_v27 = vadd.f32 %v3409_v42, %v3320_v47 }
 0x29d   : > { %v3499_v44 = vadd.f32 %v3498_v34, %v3410_v27 }
 0x29f   : > { %v3547_v28 = vadd.f32 %v3499_v44, %v2715_v45 }
 0x2a0   : > { %v3323_v24 = vpop.f32.mrf.mxu2 }
 0x2a1   : > { %v5460_v20 = vpack.c.bf16 %v3547_v28, %v3546_v33  ;;  %v3643_v21 = vadd.f32 %v3642_v2, %v3547_v28  ;;  %v3684_v54 = vmul.f32 %v3547_v28, %v3547_v28  ;;  %v2719_v46 = vpop.f32.mrf.mxu1  ;;  %v3503_v35 = vpop.f32.mrf.mxu0 }
 0x2a2   : > { %v3412_v3 = vpop.f32.mrf.mxu3  ;;  %v2720_v23 = vadd.f32 %v2719_v46, %v6138_v25 }
 0x2a3   : > { %5496 = vst [vmem:[%s6171_s27 + $0x50] sm:$0xff] %v5460_v20   ;;  %v3715_v39 = vadd.f32 %v3714_v12, %v3684_v54  ;;  %v3413_v57 = vadd.f32 %v3412_v3, %v3323_v24  ;;  %v5577_v3 = vmov 0.0  }
 0x2a4   : > { %1173 = vst [vmem:[%s6215_s30] sm:$0x1] %v5577_v3 }
 0x2a5   : > { %v3502_v18 = vadd.f32 %v3501_v10, %v3413_v57  ;;  %1174 = vst [vmem:[%s6221_s7] sm:$0x1] %v5577_v3 }
 0x2a7   : > { %v3548_v49 = vadd.f32 %v3502_v18, %v2718_v13 }
 0x2a8   : > { %v3325_v11 = vpop.f32.mrf.mxu2 }
 0x2a9   : > { %v3644_v56 = vadd.f32 %v3643_v21, %v3548_v49  ;;  %v3685_v41 = vmul.f32 %v3548_v49, %v3548_v49  ;;  %v2722_v5 = vpop.f32.mrf.mxu1  ;;  %v3506_v40 = vpop.f32.mrf.mxu0 }
 0x2aa   : > { %v3414_v26 = vpop.f32.mrf.mxu3  ;;  %v2723_v51 = vadd.f32 %v2722_v5, %v6141_v53 }
 0x2ab   : > { %v3716_v30 = vadd.f32 %v3715_v39, %v3685_v41  ;;  %v3415_v48 = vadd.f32 %v3414_v26, %v3325_v11 }
 0x2ad   : > { %v3504_v36 = vadd.f32 %v3503_v35, %v3415_v48 }
 0x2af   : > { %v3549_v31 = vadd.f32 %v3504_v36, %v2720_v23 }
 0x2b0   : > { %v3328_v62 = vpop.f32.mrf.mxu2 }
 0x2b1   : > { %v5465_v0 = vpack.c.bf16 %v3549_v31, %v3548_v49  ;;  %v3645_v19 = vadd.f32 %v3644_v56, %v3549_v31  ;;  %v3686_v55 = vmul.f32 %v3549_v31, %v3549_v31  ;;  %v2724_v37 = vpop.f32.mrf.mxu1  ;;  %v3508_v1 = vpop.f32.mrf.mxu0 }
 0x2b2   : > { %v3417_v63 = vpop.f32.mrf.mxu3  ;;  %v2725_v60 = vadd.f32 %v2724_v37, %v6144_v7 }
 0x2b3   : > { %5497 = vst [vmem:[%s6171_s27 + $0x58] sm:$0xff] %v5465_v0   ;;  %v3717_v50 = vadd.f32 %v3716_v30, %v3686_v55  ;;  %v3418_v32 = vadd.f32 %v3417_v63, %v3328_v62 }
 0x2b5   : > { %v3507_v58 = vadd.f32 %v3506_v40, %v3418_v32 }
 0x2b7   : > { %v3550_v15 = vadd.f32 %v3507_v58, %v2723_v51 }
 0x2b8   : > { %v3330_v6 = vpop.f32.mrf.mxu2 }
 0x2b9   : > { %v3646_v8 = vadd.f32 %v3645_v19, %v3550_v15  ;;  %v3687_v25 = vmul.f32 %v3550_v15, %v3550_v15  ;;  %v2727_v34 = vpop.f32.mrf.mxu1  ;;  %v3511_v16 = vpop.f32.mrf.mxu0 }
 0x2ba   : > { %v3419_v17 = vpop.f32.mrf.mxu3  ;;  %v2728_v44 = vadd.f32 %v2727_v34, %v6147_v14 }
 0x2bb   : > { %v3718_v43 = vadd.f32 %v3717_v50, %v3687_v25  ;;  %v3420_v38 = vadd.f32 %v3419_v17, %v3330_v6 }
 0x2bd   : > { %v3509_v33 = vadd.f32 %v3508_v1, %v3420_v38 }
 0x2bf   : > { %v3551_v47 = vadd.f32 %v3509_v33, %v2725_v60 }
 0x2c0   : > { %v3333_v2 = vpop.f32.mrf.mxu2 }
 0x2c1   : > { %v5470_v9 = vpack.c.bf16 %v3551_v47, %v3550_v15  ;;  %v3647_v52 = vadd.f32 %v3646_v8, %v3551_v47  ;;  %v3688_v53 = vmul.f32 %v3551_v47, %v3551_v47  ;;  %v2729_v42 = vpop.f32.mrf.mxu1  ;;  %v3513_v45 = vpop.f32.mrf.mxu0 }
 0x2c2   : > { %v3422_v10 = vpop.f32.mrf.mxu3  ;;  %v2730_v39 = vadd.f32 %v2729_v42, %v6150_v61 }
 0x2c3   : > { %5498 = vst [vmem:[%s6171_s27 + $0x60] sm:$0xff] %v5470_v9   ;;  %v3719_v12 = vadd.f32 %v3718_v43, %v3688_v53  ;;  %v3423_v27 = vadd.f32 %v3422_v10, %v3333_v2 }
 0x2c5   : > { %v3512_v28 = vadd.f32 %v3511_v16, %v3423_v27 }
 0x2c7   : > { %v3552_v24 = vadd.f32 %v3512_v28, %v2728_v44 }
 0x2c8   : > { %v3335_v20 = vpop.f32.mrf.mxu2 }
 0x2c9   : > { %v3648_v7 = vadd.f32 %v3647_v52, %v3552_v24  ;;  %v3689_v21 = vmul.f32 %v3552_v24, %v3552_v24  ;;  %v2732_v35 = vpop.f32.mrf.mxu1  ;;  %v3516_v13 = vpop.f32.mrf.mxu0 }
 0x2ca   : > { %v3424_v54 = vpop.f32.mrf.mxu3  ;;  %v2733_v30 = vadd.f32 %v2732_v35, %v6153_v29 }
 0x2cb   : > { %v3720_v14 = vadd.f32 %v3719_v12, %v3689_v21  ;;  %v3425_v46 = vadd.f32 %v3424_v54, %v3335_v20 }
 0x2cd   : > { %v3514_v57 = vadd.f32 %v3513_v45, %v3425_v46  ;;  %v3622_v46 = vld [vmem:[%s6215_s30] sm:$0x1] }
 0x2cf   : > { %v3553_v18 = vadd.f32 %v3514_v57, %v2730_v39  ;;  %v3662_v39 = vld [vmem:[%s6221_s7] sm:$0x1] }
 0x2d0   : > { %v3338_v49 = vpop.f32.mrf.mxu2 }
 0x2d1   : > { %v5475_v11 = vpack.c.bf16 %v3553_v18, %v3552_v24  ;;  %v3649_v56 = vadd.f32 %v3648_v7, %v3553_v18  ;;  %v3690_v41 = vmul.f32 %v3553_v18, %v3553_v18  ;;  %v2734_v23 = vpop.f32.mrf.mxu1  ;;  %v3518_v31 = vpop.f32.mrf.mxu0 }
 0x2d2   : > { %v3427_v5 = vpop.f32.mrf.mxu3  ;;  %v2735_v1 = vadd.f32 %v2734_v23, %v6156_v59 }
 0x2d3   : > { %5499 = vst [vmem:[%s6171_s27 + $0x68] sm:$0xff] %v5475_v11   ;;  %v3721_v40 = vadd.f32 %v3720_v14, %v3690_v41  ;;  %v3428_v26 = vadd.f32 %v3427_v5, %v3338_v49 }
 0x2d5   : > { %v3517_v48 = vadd.f32 %v3516_v13, %v3428_v26 }
 0x2d7   : > { %v3554_v36 = vadd.f32 %v3517_v48, %v2733_v30 }
 0x2d8   : > { %v3340_v62 = vpop.f32.mrf.mxu2 }
 0x2d9   : > { %v3650_v61 = vadd.f32 %v3649_v56, %v3554_v36  ;;  %v3691_v0 = vmul.f32 %v3554_v36, %v3554_v36  ;;  %v2737_v32 = vpop.f32.mrf.mxu1  ;;  %v3521_v6 = vpop.f32.mrf.mxu0 }
 0x2da   : > { %v3429_v19 = vpop.f32.mrf.mxu3  ;;  %v2738_v17 = vadd.f32 %v2737_v32, %v6159_v4 }
 0x2db   : > { %v3722_v55 = vadd.f32 %v3721_v40, %v3691_v0  ;;  %v3430_v37 = vadd.f32 %v3429_v19, %v3340_v62 }
 0x2dd   : > { %v3519_v63 = vadd.f32 %v3518_v31, %v3430_v37 }
 0x2df   : > { %v3555_v50 = vadd.f32 %v3519_v63, %v2735_v1 }
 0x2e0   : > { %v3343_v51 = vpop.f32.mrf.mxu2 }
 0x2e1   : > { %v5480_v58 = vpack.c.bf16 %v3555_v50, %v3554_v36  ;;  %v3651_v15 = vadd.f32 %v3650_v61, %v3555_v50  ;;  %v3692_v29 = vmul.f32 %v3555_v50, %v3555_v50  ;;  %v2739_v33 = vpop.f32.mrf.mxu1  ;;  %v3523_v52 = vpop.f32.mrf.mxu0 }
 0x2e2   : > { %v3432_v8 = vpop.f32.mrf.mxu3  ;;  %v2740_v53 = vadd.f32 %v2739_v33, %v6162_v22 }
 0x2e3   : > { %5500 = vst [vmem:[%s6171_s27 + $0x70] sm:$0xff] %v5480_v58   ;;  %v3723_v25 = vadd.f32 %v3722_v55, %v3692_v29  ;;  %v3433_v34 = vadd.f32 %v3432_v8, %v3343_v51 }
 0x2e5   : > { %v3522_v16 = vadd.f32 %v3521_v6, %v3433_v34 }
 0x2e7   : > { %v3556_v43 = vadd.f32 %v3522_v16, %v2738_v17 }
 0x2e8   : > { %v3345_v38 = vpop.f32.mrf.mxu2 }
 0x2e9   : > { %v3652_v60 = vadd.f32 %v3651_v15, %v3556_v43  ;;  %v3693_v59 = vmul.f32 %v3556_v43, %v3556_v43 }
 0x2ea   : > { %v3434_v47 = vpop.f32.mrf.mxu3 }
 0x2eb   : > { %v3724_v2 = vadd.f32 %v3723_v25, %v3693_v59  ;;  %v3435_v9 = vadd.f32 %v3434_v47, %v3345_v38 }
 0x2ed   : > { %v3524_v10 = vadd.f32 %v3523_v52, %v3435_v9 }
 0x2ef   : > { %v3557_v42 = vadd.f32 %v3524_v10, %v2740_v53 }
 0x2f1   : > { %v5485_v12 = vpack.c.bf16 %v3557_v42, %v3556_v43  ;;  %v3653_v27 = vadd.f32 %v3652_v60, %v3557_v42  ;;  %v3694_v4 = vmul.f32 %v3557_v42, %v3557_v42 }
 0x2f3   : > { %5501 = vst [vmem:[%s6171_s27 + $0x78] sm:$0xff] %v5485_v12   ;;  %v3654_v45 = vrot.slane %v3653_v27, 4  ;;  %v3725_v44 = vadd.f32 %v3724_v2, %v3694_v4 }
 0x2f5   : > { %v3655_v28 = vadd.f32 %v3654_v45, %v3653_v27  ;;  %v3726_v24 = vrot.slane %v3725_v44, 4 }
 0x2f7   : > { %v3656_v20 = vrot.slane %v3655_v28, 2  ;;  %v3727_v7 = vadd.f32 %v3726_v24, %v3725_v44 }
 0x2f9   : > { %v3657_v21 = vadd.f32 %v3656_v20, %v3655_v28  ;;  %v3728_v54 = vrot.slane %v3727_v7, 2 }
 0x2fb   : > { %v3658_v14 = vrot.slane %v3657_v21, 1  ;;  %v3729_v22 = vadd.f32 %v3728_v54, %v3727_v7 }
 0x2fd   : > { %v3659_v35 = vadd.f32 %v3658_v14, %v3657_v21  ;;  %v3730_v3 = vrot.slane %v3729_v22, 1 }
 0x2ff   : > { %v3660_v57 = vadd.f32 %v3659_v35, %v3622_v46  ;;  %v3731_v13 = vadd.f32 %v3730_v3, %v3729_v22 }
 0x301   : > { %3661 = vst [vmem:[%s6215_s30] sm:$0x1] %v3660_v57  ;;  %v3732_v18 = vadd.f32 %v3731_v13, %v3662_v39 }
 0x303   : > { %3733 = vst [vmem:[%s6221_s7] sm:$0x1] %v3732_v18 }
 0x304 PF: > { %s15_s17 = sadd.s32 1, %s5574_s17   ;;  %s6255_s15 = smov %s5570_s16 }
 0x305   : > { %p12_p5 = scmp.ge.s32.totalorder %s15_s17, 4   ;;  %s6256_s16 = smov %s6258_s18 }
 0x307   :  { %14 = sbr.rel (!%p12_p5) target bundleno = 2 (0x2), region = 96 }

</bundles_post_ra>
